<compile_context>
chip_gen: v6e
topology: v6e:2x2x1
jax: 0.10.0
libtpu: 0.0.40
codegen_flags: <defaults>
</compile_context>

<pallas_src>
from functools import partial

import numpy as np
import jax
import jax.numpy as jnp
from jax.experimental import pallas as pl
from jax.experimental.pallas import tpu as pltpu


H1 = 512           # hidden width of the three hidden Linear layers
OUT_PAD = 128      # lane-dense padding of the 1-wide validity output
TK = 1152          # K-chunk for streaming w1 (multiple of 128; 4608 = 4 * 1152)


def _round_up(x, m):
    return (x + m - 1) // m * m


# ---------------------------------------------------------------------------
# Pallas kernel.
# grid = (in_pad // TK,): k streams the (x, w1) contraction dimension.
# Layer-1 partial products accumulate into an f32 VMEM scratch; layers 2-4
# (bias + LeakyReLU + matmuls) and the final store run on the last k step.
# ---------------------------------------------------------------------------
def _mlp_kernel(x_ref, w1_ref, b1_ref, w2_ref, b2_ref, w3_ref, b3_ref,
                w4_ref, b4_ref, o_ref, acc_ref):
    k = pl.program_id(0)

    @pl.when(k == 0)
    def _():
        acc_ref[...] = jnp.zeros_like(acc_ref)

    # bf16 x bf16 -> f32 accumulation on the MXU.
    acc_ref[...] += jnp.dot(x_ref[...], w1_ref[...],
                            preferred_element_type=jnp.float32)

    @pl.when(k == pl.num_programs(0) - 1)
    def _():
        def lrelu(v):
            return jnp.where(v > 0, v, 0.2 * v)

        h = lrelu(acc_ref[...] + b1_ref[...])
        # Dropout(0.4) -> identity (eval mode)
        h = lrelu(jnp.dot(h.astype(jnp.bfloat16), w2_ref[...],
                          preferred_element_type=jnp.float32) + b2_ref[...])
        # Dropout(0.4) -> identity (eval mode)
        h = lrelu(jnp.dot(h.astype(jnp.bfloat16), w3_ref[...],
                          preferred_element_type=jnp.float32) + b3_ref[...])
        o_ref[...] = (jnp.dot(h.astype(jnp.bfloat16), w4_ref[...],
                              preferred_element_type=jnp.float32) + b4_ref[...])


# ---------------------------------------------------------------------------
# One-time parameter preparation: pad + cast to bf16 so the per-call path does
# zero re-padding / re-casting of weights.
# ---------------------------------------------------------------------------
def prepare_params(params, img_shape=(3, 60, 25), n_classes=1):
    in_feat = n_classes + int(np.prod(img_shape))            # 4501
    in_pad = _round_up(in_feat, TK)                          # 4608
    w1 = jnp.zeros((in_pad, H1), jnp.bfloat16).at[:in_feat, :].set(
        params["w1"].astype(jnp.bfloat16))
    w4 = jnp.zeros((H1, OUT_PAD), jnp.bfloat16).at[:, :1].set(
        params["w4"].astype(jnp.bfloat16))
    b4 = jnp.zeros((1, OUT_PAD), jnp.float32).at[:, :1].set(
        params["b4"].reshape(1, 1).astype(jnp.float32))
    return {
        "emb": params["emb"],
        "w1": w1,
        "b1": params["b1"].reshape(1, H1).astype(jnp.float32),
        "w2": params["w2"].astype(jnp.bfloat16),
        "b2": params["b2"].reshape(1, H1).astype(jnp.float32),
        "w3": params["w3"].astype(jnp.bfloat16),
        "b3": params["b3"].reshape(1, H1).astype(jnp.float32),
        "w4": w4,
        "b4": b4,
    }


# ---------------------------------------------------------------------------
# Jitted forward wrapper (embedding lookup, concat, pad, pallas_call, slice).
# ---------------------------------------------------------------------------
@partial(jax.jit, static_argnames=("img_shape", "n_classes"))
def discriminator_cgan_forward(img, labels, prepared, *, img_shape=(3, 60, 25),
                               n_classes=1):
    """img: (B, C, H, W) f32 (NCHW); labels: (B,) int32; prepared: prepare_params()."""
    B = img.shape[0]
    in_feat = n_classes + int(np.prod(img_shape))            # 4501
    in_pad = _round_up(in_feat, TK)                          # 4608
    b_pad = _round_up(max(B, 1), 16)                         # bf16 sublane tile

    emb = jnp.take(prepared["emb"], labels, axis=0)          # (B, n_classes)
    d_in = jnp.concatenate([img.reshape(B, -1), emb], axis=-1)
    # Zero-padded cols multiply zero weight rows -> math unchanged.
    x = jnp.zeros((b_pad, in_pad), jnp.bfloat16).at[:B, :in_feat].set(
        d_in.astype(jnp.bfloat16))

    n_k = in_pad // TK
    grid_spec = pltpu.PrefetchScalarGridSpec(
        num_scalar_prefetch=0,
        grid=(n_k,),
        in_specs=[
            pl.BlockSpec((b_pad, TK), lambda k: (0, k)),     # x chunk (streamed)
            pl.BlockSpec((TK, H1), lambda k: (k, 0)),        # w1 chunk (streamed)
            pl.BlockSpec((1, H1), lambda k: (0, 0)),         # b1
            pl.BlockSpec((H1, H1), lambda k: (0, 0)),        # w2 (DMA'd once)
            pl.BlockSpec((1, H1), lambda k: (0, 0)),         # b2
            pl.BlockSpec((H1, H1), lambda k: (0, 0)),        # w3 (DMA'd once)
            pl.BlockSpec((1, H1), lambda k: (0, 0)),         # b3
            pl.BlockSpec((H1, OUT_PAD), lambda k: (0, 0)),   # w4 (padded, once)
            pl.BlockSpec((1, OUT_PAD), lambda k: (0, 0)),    # b4
        ],
        out_specs=pl.BlockSpec((b_pad, OUT_PAD), lambda k: (0, 0)),
        scratch_shapes=[pltpu.VMEM((b_pad, H1), jnp.float32)],   # layer-1 acc
    )
    out = pl.pallas_call(
        _mlp_kernel,
        out_shape=jax.ShapeDtypeStruct((b_pad, OUT_PAD), jnp.float32),
        grid_spec=grid_spec,
        compiler_params=pltpu.CompilerParams(
            dimension_semantics=("arbitrary",),        # K is a reduction axis
            vmem_limit_bytes=20 << 20,                 # ~5 MiB footprint + headroom
        ),
    )(x, prepared["w1"], prepared["b1"], prepared["w2"], prepared["b2"],
      prepared["w3"], prepared["b3"], prepared["w4"], prepared["b4"])

    return out[:B, :1]                                       # (B, 1) validity


# ---------------------------------------------------------------------------
# Deterministic parameter initialization (matches PyTorch layer shapes).
# Linear: U(-1/sqrt(fan_in), 1/sqrt(fan_in)); Embedding: N(0, 1).
# Weights stored as (in_features, out_features) for direct x @ W.
# ---------------------------------------------------------------------------
def init_params(key, img_shape=(3, 60, 25), n_classes=1):
    in_feat = n_classes + int(np.prod(img_shape))
    dims = [(in_feat, 512), (512, 512), (512, 512), (512, 1)]
    keys = jax.random.split(key, 2 * len(dims) + 1)
    params = {"emb": jax.random.normal(keys[0], (n_classes, n_classes),
                                       jnp.float32)}
    for i, (fi, fo) in enumerate(dims):
        bound = 1.0 / np.sqrt(fi)
        params[f"w{i+1}"] = jax.random.uniform(keys[1 + 2 * i], (fi, fo),
                                               jnp.float32, -bound, bound)
        params[f"b{i+1}"] = jax.random.uniform(keys[2 + 2 * i], (fo,),
                                               jnp.float32, -bound, bound)
    return params


# Pure-JAX references for correctness checks.
def _reference_f32(img, labels, params):
    B = img.shape[0]
    emb = jnp.take(params["emb"], labels, axis=0)
    h = jnp.concatenate([img.reshape(B, -1), emb], axis=-1)
    lrelu = lambda v: jnp.where(v > 0, v, 0.2 * v)
    h = lrelu(h @ params["w1"] + params["b1"])
    h = lrelu(h @ params["w2"] + params["b2"])
    h = lrelu(h @ params["w3"] + params["b3"])
    return h @ params["w4"] + params["b4"]


def _reference_bf16(img, labels, params):
    # Mirrors the kernel's precision: bf16 operands, f32 accumulation.
    B = img.shape[0]
    emb = jnp.take(params["emb"], labels, axis=0)
    h = jnp.concatenate([img.reshape(B, -1), emb], axis=-1)
    lrelu = lambda v: jnp.where(v > 0, v, 0.2 * v)
    dot = lambda a, w: jnp.dot(a.astype(jnp.bfloat16), w.astype(jnp.bfloat16),
                               preferred_element_type=jnp.float32)
    h = lrelu(dot(h, params["w1"]) + params["b1"])
    h = lrelu(dot(h, params["w2"]) + params["b2"])
    h = lrelu(dot(h, params["w3"]) + params["b3"])
    return dot(h, params["w4"]) + params["b4"]


if __name__ == "__main__":
    img_shape = (3, 60, 25)
    n_classes = 1
    B = 2

    key = jax.random.PRNGKey(0)
    k_img, k_par = jax.random.split(key)
    img = jax.random.normal(k_img, (B,) + img_shape, jnp.float32)
    labels = jnp.zeros((B,), jnp.int32)          # only class 0 exists (n_classes=1)
    params = init_params(k_par, img_shape, n_classes)
    prepared = prepare_params(params, img_shape, n_classes)   # one-time pad + bf16

    out = discriminator_cgan_forward(img, labels, prepared,
                                     img_shape=img_shape, n_classes=n_classes)
    out = jax.block_until_ready(out)
    assert out.shape == (B, 1), out.shape

    ref_bf16 = jax.block_until_ready(_reference_bf16(img, labels, params))
    ref_f32 = jax.block_until_ready(_reference_f32(img, labels, params))
    # Exact-structure check (same bf16 operands / f32 accumulation as kernel).
    np.testing.assert_allclose(np.asarray(out), np.asarray(ref_bf16),
                               rtol=1e-2, atol=1e-2)
    # Sanity check against the full-f32 PyTorch-equivalent math.
    np.testing.assert_allclose(np.asarray(out), np.asarray(ref_f32),
                               rtol=5e-2, atol=5e-2)
    print("KERNEL_OK")
</pallas_src>

<mosaic_0001>
module attributes {stable_mosaic.version = 11 : i64} {
  func.func @_mlp_kernel(%arg0: i32, %arg1: memref<16x1152xbf16, #tpu.memory_space<vmem>>, %arg2: memref<1152x512xbf16, #tpu.memory_space<vmem>>, %arg3: memref<1x512xf32, #tpu.memory_space<vmem>>, %arg4: memref<512x512xbf16, #tpu.memory_space<vmem>>, %arg5: memref<1x512xf32, #tpu.memory_space<vmem>>, %arg6: memref<512x512xbf16, #tpu.memory_space<vmem>>, %arg7: memref<1x512xf32, #tpu.memory_space<vmem>>, %arg8: memref<512x128xbf16, #tpu.memory_space<vmem>>, %arg9: memref<1x128xf32, #tpu.memory_space<vmem>>, %arg10: memref<16x128xf32, #tpu.memory_space<vmem>>, %arg11: memref<16x512xf32, #tpu.memory_space<vmem>>) attributes {dimension_semantics = [#tpu.dimension_semantics<arbitrary>], iteration_bounds = array<i64: 4>, scalar_prefetch = 0 : i64, scratch_operands = 1 : i64, tpu.core_type = #tpu.core_type<tc>, window_params = [{transform_indices = @transform_0, window_bounds = array<i64: 16, 1152>}, {transform_indices = @transform_1, window_bounds = array<i64: 1152, 512>}, {pipeline_mode = #tpu.pipeline_mode<synchronous>, transform_indices = @transform_2, window_bounds = array<i64: 1, 512>}, {pipeline_mode = #tpu.pipeline_mode<synchronous>, transform_indices = @transform_3, window_bounds = array<i64: 512, 512>}, {pipeline_mode = #tpu.pipeline_mode<synchronous>, transform_indices = @transform_4, window_bounds = array<i64: 1, 512>}, {pipeline_mode = #tpu.pipeline_mode<synchronous>, transform_indices = @transform_5, window_bounds = array<i64: 512, 512>}, {pipeline_mode = #tpu.pipeline_mode<synchronous>, transform_indices = @transform_6, window_bounds = array<i64: 1, 512>}, {pipeline_mode = #tpu.pipeline_mode<synchronous>, transform_indices = @transform_7, window_bounds = array<i64: 512, 128>}, {pipeline_mode = #tpu.pipeline_mode<synchronous>, transform_indices = @transform_8, window_bounds = array<i64: 1, 128>}, {pipeline_mode = #tpu.pipeline_mode<synchronous>, transform_indices = @transform_9, window_bounds = array<i64: 16, 128>}]} {
    %c0_i32 = arith.constant 0 : i32
    %0 = arith.cmpi eq, %arg0, %c0_i32 : i32
    %1 = arith.extui %0 : i1 to i32
    %c0_i32_0 = arith.constant 0 : i32
    %2 = arith.cmpi ne, %1, %c0_i32_0 : i32
    scf.if %2 {
      %cst_9 = arith.constant 0.000000e+00 : f32
      %12 = vector.broadcast %cst_9 : f32 to vector<16x512xf32>
      %c0_10 = arith.constant 0 : index
      %c0_11 = arith.constant 0 : index
      %13 = vector.load %arg11[%c0_10, %c0_11] : memref<16x512xf32, #tpu.memory_space<vmem>>, vector<16x512xf32>
      tpu.vector_store %arg11[%c0_10, %c0_11], %12 {strides = array<i32>} : memref<16x512xf32, #tpu.memory_space<vmem>>, vector<16x512xf32>,
    } else {
    }
    %c0 = arith.constant 0 : index
    %c0_1 = arith.constant 0 : index
    %3 = vector.load %arg11[%c0, %c0_1] : memref<16x512xf32, #tpu.memory_space<vmem>>, vector<16x512xf32>
    %c0_2 = arith.constant 0 : index
    %c0_3 = arith.constant 0 : index
    %4 = vector.load %arg1[%c0_2, %c0_3] : memref<16x1152xbf16, #tpu.memory_space<vmem>>, vector<16x1152xbf16>
    %c0_4 = arith.constant 0 : index
    %c0_5 = arith.constant 0 : index
    %5 = vector.load %arg2[%c0_4, %c0_5] : memref<1152x512xbf16, #tpu.memory_space<vmem>>, vector<1152x512xbf16>
    %cst = arith.constant dense<0.000000e+00> : vector<16x512xf32>
    %6 = tpu.matmul %4, %5, %cst {dimension_numbers = #tpu.dot_dimension_numbers<[1], [0], [0], [1], [0, 0, 1, 1], [], []>} : vector<16x1152xbf16>, vector<1152x512xbf16>, vector<16x512xf32> -> vector<16x512xf32>
    %7 = arith.addf %3, %6 : vector<16x512xf32>
    %c0_6 = arith.constant 0 : index
    %c0_7 = arith.constant 0 : index
    %8 = vector.load %arg11[%c0_6, %c0_7] : memref<16x512xf32, #tpu.memory_space<vmem>>, vector<16x512xf32>
    tpu.vector_store %arg11[%c0_6, %c0_7], %7 {strides = array<i32>} : memref<16x512xf32, #tpu.memory_space<vmem>>, vector<16x512xf32>,
    %c3_i32 = arith.constant 3 : i32
    %9 = arith.cmpi eq, %arg0, %c3_i32 : i32
    %10 = arith.extui %9 : i1 to i32
    %c0_i32_8 = arith.constant 0 : i32
    %11 = arith.cmpi ne, %10, %c0_i32_8 : i32
    scf.if %11 {
      %c0_9 = arith.constant 0 : index
      %c0_10 = arith.constant 0 : index
      %12 = vector.load %arg11[%c0_9, %c0_10] : memref<16x512xf32, #tpu.memory_space<vmem>>, vector<16x512xf32>
      %c0_11 = arith.constant 0 : index
      %c0_12 = arith.constant 0 : index
      %13 = vector.load %arg3[%c0_11, %c0_12] : memref<1x512xf32, #tpu.memory_space<vmem>>, vector<1x512xf32>
      %14 = vector.broadcast %13 : vector<1x512xf32> to vector<16x512xf32>
      %15 = arith.addf %12, %14 : vector<16x512xf32>
      %cst_13 = arith.constant 0.000000e+00 : f32
      %16 = vector.broadcast %cst_13 : f32 to vector<16x512xf32>
      %17 = arith.cmpf ogt, %15, %16 : vector<16x512xf32>
      %cst_14 = arith.constant 2.000000e-01 : f32
      %18 = vector.broadcast %cst_14 : f32 to vector<16x512xf32>
      %19 = arith.mulf %18, %15 : vector<16x512xf32>
      %20 = arith.select %17, %15, %19 : vector<16x512xi1>, vector<16x512xf32>
      %21 = arith.truncf %20 : vector<16x512xf32> to vector<16x512xbf16>
      %c0_15 = arith.constant 0 : index
      %c0_16 = arith.constant 0 : index
      %22 = vector.load %arg4[%c0_15, %c0_16] : memref<512x512xbf16, #tpu.memory_space<vmem>>, vector<512x512xbf16>
      %cst_17 = arith.constant dense<0.000000e+00> : vector<16x512xf32>
      %23 = tpu.matmul %21, %22, %cst_17 {dimension_numbers = #tpu.dot_dimension_numbers<[1], [0], [0], [1], [0, 0, 1, 1], [], []>} : vector<16x512xbf16>, vector<512x512xbf16>, vector<16x512xf32> -> vector<16x512xf32>
      %c0_18 = arith.constant 0 : index
      %c0_19 = arith.constant 0 : index
      %24 = vector.load %arg5[%c0_18, %c0_19] : memref<1x512xf32, #tpu.memory_space<vmem>>, vector<1x512xf32>
      %25 = vector.broadcast %24 : vector<1x512xf32> to vector<16x512xf32>
      %26 = arith.addf %23, %25 : vector<16x512xf32>
      %cst_20 = arith.constant 0.000000e+00 : f32
      %27 = vector.broadcast %cst_20 : f32 to vector<16x512xf32>
      %28 = arith.cmpf ogt, %26, %27 : vector<16x512xf32>
      %cst_21 = arith.constant 2.000000e-01 : f32
      %29 = vector.broadcast %cst_21 : f32 to vector<16x512xf32>
      %30 = arith.mulf %29, %26 : vector<16x512xf32>
      %31 = arith.select %28, %26, %30 : vector<16x512xi1>, vector<16x512xf32>
      %32 = arith.truncf %31 : vector<16x512xf32> to vector<16x512xbf16>
      %c0_22 = arith.constant 0 : index
      %c0_23 = arith.constant 0 : index
      %33 = vector.load %arg6[%c0_22, %c0_23] : memref<512x512xbf16, #tpu.memory_space<vmem>>, vector<512x512xbf16>
      %cst_24 = arith.constant dense<0.000000e+00> : vector<16x512xf32>
      %34 = tpu.matmul %32, %33, %cst_24 {dimension_numbers = #tpu.dot_dimension_numbers<[1], [0], [0], [1], [0, 0, 1, 1], [], []>} : vector<16x512xbf16>, vector<512x512xbf16>, vector<16x512xf32> -> vector<16x512xf32>
      %c0_25 = arith.constant 0 : index
      %c0_26 = arith.constant 0 : index
      %35 = vector.load %arg7[%c0_25, %c0_26] : memref<1x512xf32, #tpu.memory_space<vmem>>, vector<1x512xf32>
      %36 = vector.broadcast %35 : vector<1x512xf32> to vector<16x512xf32>
      %37 = arith.addf %34, %36 : vector<16x512xf32>
      %cst_27 = arith.constant 0.000000e+00 : f32
      %38 = vector.broadcast %cst_27 : f32 to vector<16x512xf32>
      %39 = arith.cmpf ogt, %37, %38 : vector<16x512xf32>
      %cst_28 = arith.constant 2.000000e-01 : f32
      %40 = vector.broadcast %cst_28 : f32 to vector<16x512xf32>
      %41 = arith.mulf %40, %37 : vector<16x512xf32>
      %42 = arith.select %39, %37, %41 : vector<16x512xi1>, vector<16x512xf32>
      %43 = arith.truncf %42 : vector<16x512xf32> to vector<16x512xbf16>
      %c0_29 = arith.constant 0 : index
      %c0_30 = arith.constant 0 : index
      %44 = vector.load %arg8[%c0_29, %c0_30] : memref<512x128xbf16, #tpu.memory_space<vmem>>, vector<512x128xbf16>
      %cst_31 = arith.constant dense<0.000000e+00> : vector<16x128xf32>
      %45 = tpu.matmul %43, %44, %cst_31 {dimension_numbers = #tpu.dot_dimension_numbers<[1], [0], [0], [1], [0, 0, 1, 1], [], []>} : vector<16x512xbf16>, vector<512x128xbf16>, vector<16x128xf32> -> vector<16x128xf32>
      %c0_32 = arith.constant 0 : index
      %c0_33 = arith.constant 0 : index
      %46 = vector.load %arg9[%c0_32, %c0_33] : memref<1x128xf32, #tpu.memory_space<vmem>>, vector<1x128xf32>
      %47 = vector.broadcast %46 : vector<1x128xf32> to vector<16x128xf32>
      %48 = arith.addf %45, %47 : vector<16x128xf32>
      %c0_34 = arith.constant 0 : index
      %c0_35 = arith.constant 0 : index
      %49 = vector.load %arg10[%c0_34, %c0_35] : memref<16x128xf32, #tpu.memory_space<vmem>>, vector<16x128xf32>
      tpu.vector_store %arg10[%c0_34, %c0_35], %48 {strides = array<i32>} : memref<16x128xf32, #tpu.memory_space<vmem>>, vector<16x128xf32>,
    } else {
    }
    return
  }
  func.func @transform_0(%arg0: i32) -> (i32, i32) {
    %c0_i32 = arith.constant 0 : i32
    %c0_i32_0 = arith.constant 0 : i32
    return %c0_i32, %arg0 : i32, i32
  }
  func.func @transform_1(%arg0: i32) -> (i32, i32) {
    %c0_i32 = arith.constant 0 : i32
    %c0_i32_0 = arith.constant 0 : i32
    return %arg0, %c0_i32 : i32, i32
  }
  func.func @transform_2(%arg0: i32) -> (i32, i32) {
    %c0_i32 = arith.constant 0 : i32
    %c0_i32_0 = arith.constant 0 : i32
    %c0_i32_1 = arith.constant 0 : i32
    return %c0_i32, %c0_i32_0 : i32, i32
  }
  func.func @transform_3(%arg0: i32) -> (i32, i32) {
    %c0_i32 = arith.constant 0 : i32
    %c0_i32_0 = arith.constant 0 : i32
    %c0_i32_1 = arith.constant 0 : i32
    return %c0_i32, %c0_i32_0 : i32, i32
  }
  func.func @transform_4(%arg0: i32) -> (i32, i32) {
    %c0_i32 = arith.constant 0 : i32
    %c0_i32_0 = arith.constant 0 : i32
    %c0_i32_1 = arith.constant 0 : i32
    return %c0_i32, %c0_i32_0 : i32, i32
  }
  func.func @transform_5(%arg0: i32) -> (i32, i32) {
    %c0_i32 = arith.constant 0 : i32
    %c0_i32_0 = arith.constant 0 : i32
    %c0_i32_1 = arith.constant 0 : i32
    return %c0_i32, %c0_i32_0 : i32, i32
  }
  func.func @transform_6(%arg0: i32) -> (i32, i32) {
    %c0_i32 = arith.constant 0 : i32
    %c0_i32_0 = arith.constant 0 : i32
    %c0_i32_1 = arith.constant 0 : i32
    return %c0_i32, %c0_i32_0 : i32, i32
  }
  func.func @transform_7(%arg0: i32) -> (i32, i32) {
    %c0_i32 = arith.constant 0 : i32
    %c0_i32_0 = arith.constant 0 : i32
    %c0_i32_1 = arith.constant 0 : i32
    return %c0_i32, %c0_i32_0 : i32, i32
  }
  func.func @transform_8(%arg0: i32) -> (i32, i32) {
    %c0_i32 = arith.constant 0 : i32
    %c0_i32_0 = arith.constant 0 : i32
    %c0_i32_1 = arith.constant 0 : i32
    return %c0_i32, %c0_i32_0 : i32, i32
  }
  func.func @transform_9(%arg0: i32) -> (i32, i32) {
    %c0_i32 = arith.constant 0 : i32
    %c0_i32_0 = arith.constant 0 : i32
    %c0_i32_1 = arith.constant 0 : i32
    return %c0_i32, %c0_i32_0 : i32, i32
  }
}

</mosaic_0001>

<bundles_post_ra>
// kernel: discriminator_cgan_forward.1
= control target key start
LH: loop header
LB: loop body
LE: loop exit
PB: predicated region body
PF: predicated region fallthrough
CT: control target
= control target key end

     0   :  { %s7836_s0 = inlined_call_operand.vmem [shape: bf16[16,4608], index: 0, kind: input, shape index: {}]   ;;  %s7837_s1 = inlined_call_operand.hbm [shape: bf16[4608,512], index: 1, kind: input, shape index: {}]   ;;  %s7838_s2 = inlined_call_operand.hbm [shape: f32[1,512], index: 2, kind: input, shape index: {}]   ;;  %s7839_s3 = inlined_call_operand.hbm [shape: bf16[512,512], index: 3, kind: input, shape index: {}]   ;;  %s7840_s4 = inlined_call_operand.hbm [shape: f32[1,512], index: 4, kind: input, shape index: {}]   ;;  %s7841_s5 = inlined_call_operand.hbm [shape: bf16[512,512], index: 5, kind: input, shape index: {}]   ;;  %s7842_s6 = inlined_call_operand.hbm [shape: f32[1,512], index: 6, kind: input, shape index: {}]   ;;  %s7843_s7 = inlined_call_operand.hbm [shape: bf16[512,128], index: 7, kind: input, shape index: {}]   ;;  %s7844_s8 = inlined_call_operand.hbm [shape: f32[1,128], index: 8, kind: input, shape index: {}]   ;;  %s7845_s9 = inlined_call_operand.vmem [shape: f32[16,128], index: 9, kind: output, shape index: {}]  }
   0x1   :  { %7850 = sst [smem:[#allocation22_spill]] %s7838_s2 }
   0x2   :  { %14 = vsyncpa [#allocation5], 0 }
   0x3   :  { %16 = vsyncpa [#allocation5 + $0x1], 0 }
   0x4   :  { %17 = vsyncpa [#allocation7], 0 }
   0x5   :  { %18 = vsyncpa [#allocation10], 0 }
   0x6   :  { %19 = vsyncpa [#allocation13], 0 }
   0x7   :  { %20 = vsyncpa [#allocation16], 0  ;;  %s7247_s30 = smov 0   ;;  %s7249_s10 = smov 0  }
   0x8   :  { %s7251_s11 = smov 0   ;;  %s7253_s12 = smov 0  }
   0x9 LB: > { %s7266_s13 = sadd.s32 4294967295, %s7179_s12   ;;  %s7269_s14 = sadd.s32 1, %s7179_s12   ;;  %s7179_s12 = sphi %s7253_s12, %s7873_s12   ;;  %s7175_s11 = sphi %s7251_s11, %s7872_s11   ;;  %s7171_s10 = sphi %s7249_s10, %s7871_s10   ;;  %s7167_s30 = sphi %s7247_s30, %s7870_s30  }
   0xa   : > { %s30_s15 = ssub.s32 %s7179_s12, %s7269_s14  ;;  %s33_s16 = sadd.s32 1, %s7175_s11 }
   0xb   : > { %p31_p0 = scmp.eq.s32.totalorder %s30_s15, 0  ;;  %p40_p1 = scmp.ne.s32.totalorder %s7175_s11, %s7171_s10 }
   0xc   : > { %p41_p2 = scmp.eq.s32.totalorder %s7179_s12, 0  ;;  %p72_p3 = scmp.ne.s32.totalorder %s7171_s10, %s7167_s30 }
   0xd   : > { %s7279_s17 = scalar_select %p31_p0, %s7175_s11, %s33_s16  }
   0xe   : > { %p7281_p4 = por %p41_p2, %p40_p1  ;;  %p7846_p5 = scmp.eq.s32.totalorder %s7266_s13, 0 }
   0xf   : > { %p5280_p6 = scmp.ge.s32.totalorder %s7179_s12, 1  ;;  %p251_p7 = scmp.lt.s32.totalorder %s7179_s12, 5 }
  0x10   : > { %s7851_s18 = scalar_select %p7281_p4, 1, 0 }
  0x11   : > { %p7290_p8 = por %p7846_p5, %p72_p3  ;;  %p7295_p10 = pnand %p5280_p6, %p251_p7 }
  0x12   : > { %s7181_s21 = smov [#allocation6]   ;;  %s7182_s23 = smov [#allocation9]  }
  0x13   : > { %s7852_s19 = scalar_select %p7290_p8, 1, 0 }
  0x14   : > { %s7853_s20 = scalar_select %p7295_p10, 1, 0 }
  0x15   : > { %s264_s22 = sshll.u32 %s7181_s21, 4  ;;  %p5976_p11 = pneg %p7295_p10  ;;  %s265_s22 = int_to_ptr.vmem [resolvable:$true] %s264_s22 }
  0x16   : > { %s288_s24 = sshll.u32 %s7182_s23, 4  ;;  %s7183_s26 = smov [#allocation12]   ;;  %s289_s24 = int_to_ptr.vmem [resolvable:$true] %s288_s24 }
  0x17   : > { %p7303_p12 = pnand %p5976_p11, %p7846_p5  ;;  %s312_s27 = sshll.u32 %s7183_s26, 4  ;;  %s7307_s27 = int_to_ptr.vmem [resolvable:$true] %s312_s27 }
  0x18   : > { %s6932_s29 = scalar_lea.vmem %s265_s22, 64  ;;  %p6940_p3 = scmp.lt.s32.totalorder %s265_s22, %s265_s22 }
  0x19   : > { %p7311_p13 = pneg %p7303_p12  ;;  %p6933_p0 = scmp.ne.s32.totalorder %s265_s22, %s6932_s29 }
  0x1a   : > { %p6941_p6 = scmp.lt.s32.totalorder %s6932_s29, %s6932_s29 }
  0x1b   : > { %p6935_p1 = pnand %p6933_p0, %p7311_p13 }
  0x1c   : > { %p6942_p7 = por %p6941_p6, %p6940_p3 }
  0x1d   : > { %p6936_p2 = pneg %p6935_p1 }
  0x1f   : > { %p6943_p11 = pnand %p6942_p7, %p6936_p2 }
  0x21   : > { %6946 = shalt.err (!%p6943_p11)
}
  0x22   : > { %s7856_s2 = sld [smem:[#allocation22_spill]]  ;;  %s6958_s16 = scalar_lea.vmem %s289_s24, 64 }
  0x23   : > { %p6959_p9 = scmp.ne.s32.totalorder %s289_s24, %s6958_s16  ;;  %p6966_p10 = scmp.lt.s32.totalorder %s289_s24, %s289_s24 }
  0x24   : > { %p6967_p0 = scmp.lt.s32.totalorder %s6958_s16, %s6958_s16 }
  0x25   : > { %p6961_p5 = pnand %p6959_p9, %p7311_p13 }
  0x26   : > { %p6968_p1 = por %p6967_p0, %p6966_p10 }
  0x27   : > { %p6962_p8 = pneg %p6961_p5 }
  0x28   : > { %5979 = dma.hbm_to_vmem [thread:$0]  (!%p7303_p12), %s7856_s2, 64, %s265_s22, [#allocation7]  }
  0x29   : > { %p6969_p4 = pnand %p6968_p1, %p6962_p8 }
  0x2b   : > { %6972 = shalt.err (!%p6969_p4)
}
  0x2c   : > { %5985 = dma.hbm_to_vmem [thread:$0]  (!%p7303_p12), %s7840_s4, 64, %s289_s24, [#allocation10]  }
  0x2d   : > { %s6984_s22 = scalar_lea.vmem %s7307_s27, 64  ;;  %p6992_p3 = scmp.lt.s32.totalorder %s7307_s27, %s7307_s27 }
  0x2e   : > { %p6985_p2 = scmp.ne.s32.totalorder %s7307_s27, %s6984_s22  ;;  %p6993_p10 = scmp.lt.s32.totalorder %s6984_s22, %s6984_s22 }
  0x30   : > { %p6987_p9 = pnand %p6985_p2, %p7311_p13  ;;  %p6994_p8 = por %p6993_p10, %p6992_p3 }
  0x32   : > { %p6988_p5 = pneg %p6987_p9 }
  0x34   : > { %p6995_p4 = pnand %p6994_p8, %p6988_p5 }
  0x36   : > { %6998 = shalt.err (!%p6995_p4)
}
  0x37   : > { %5991 = dma.hbm_to_vmem [thread:$0]  (!%p7303_p12), %s7842_s6, 64, %s7307_s27, [#allocation13]  }
  0x38   : > { %s7184_s24 = smov [#allocation8]  }
  0x39   : > { %s274_s30 = sshll.u32 %s7184_s24, 4  ;;  %s275_s30 = int_to_ptr.vmem [resolvable:$true] %s274_s30 }
  0x3a   : > { %s7010_s15 = scalar_lea.vmem %s275_s30, 16384  ;;  %p7018_p0 = scmp.lt.s32.totalorder %s275_s30, %s275_s30 }
  0x3b   : > { %p7011_p6 = scmp.ne.s32.totalorder %s275_s30, %s7010_s15  ;;  %p7019_p1 = scmp.lt.s32.totalorder %s7010_s15, %s7010_s15 }
  0x3d   : > { %p7013_p7 = pnand %p7011_p6, %p7311_p13  ;;  %p7020_p2 = por %p7019_p1, %p7018_p0 }
  0x3f   : > { %p7014_p11 = pneg %p7013_p7 }
  0x41   : > { %p7021_p9 = pnand %p7020_p2, %p7014_p11 }
  0x43   : > { %7024 = shalt.err (!%p7021_p9)
}
  0x44   : > { %s7185_s16 = smov 256   ;;  %s7186_s21 = smov 16  }
  0x45   : > { %5982 = dma.hbm_to_vmem [thread:$0]  (!%p7303_p12), %s7839_s3, 16384, %s275_s30, [#allocation7], %s7185_s16, %s7185_s16, %s7186_s21  }
  0x46   : > { %s7187_s22 = smov [#allocation11]   ;;  %s7188_s29 = smov [#allocation14]  }
  0x47   : > { %s298_s26 = sshll.u32 %s7187_s22, 4  ;;  %s322_s24 = sshll.u32 %s7188_s29, 4  ;;  %s299_s26 = int_to_ptr.vmem [resolvable:$true] %s298_s26  ;;  %s323_s24 = int_to_ptr.vmem [resolvable:$true] %s322_s24 }
  0x48   : > { %s7036_s2 = scalar_lea.vmem %s299_s26, 16384  ;;  %p7044_p8 = scmp.lt.s32.totalorder %s299_s26, %s299_s26 }
  0x49   : > { %p7037_p5 = scmp.ne.s32.totalorder %s299_s26, %s7036_s2  ;;  %p7045_p4 = scmp.lt.s32.totalorder %s7036_s2, %s7036_s2 }
  0x4b   : > { %p7039_p3 = pnand %p7037_p5, %p7311_p13  ;;  %p7046_p6 = por %p7045_p4, %p7044_p8 }
  0x4d   : > { %p7040_p10 = pneg %p7039_p3 }
  0x4f   : > { %p7047_p7 = pnand %p7046_p6, %p7040_p10 }
  0x51   : > { %7050 = shalt.err (!%p7047_p7)
}
  0x52   : > { %5988 = dma.hbm_to_vmem [thread:$0]  (!%p7303_p12), %s7841_s5, 16384, %s299_s26, [#allocation10], %s7185_s16, %s7185_s16, %s7186_s21  }
  0x53   : > { %s7062_s23 = scalar_lea.vmem %s323_s24, 4096  ;;  %p7070_p2 = scmp.lt.s32.totalorder %s323_s24, %s323_s24 }
  0x54   : > { %p7063_p11 = scmp.ne.s32.totalorder %s323_s24, %s7062_s23  ;;  %p7071_p9 = scmp.lt.s32.totalorder %s7062_s23, %s7062_s23 }
  0x56   : > { %p7065_p0 = pnand %p7063_p11, %p7311_p13  ;;  %p7072_p5 = por %p7071_p9, %p7070_p2 }
  0x58   : > { %p7066_p1 = pneg %p7065_p0 }
  0x5a   : > { %p7073_p3 = pnand %p7072_p5, %p7066_p1 }
  0x5c   : > { %7076 = shalt.err (!%p7073_p3)
}
  0x5d   : > { %s7189_s2 = smov 64   ;;  %s7190_s27 = smov 4  }
  0x5e   : > { %5994 = dma.hbm_to_vmem [thread:$0]  (!%p7303_p12), %s7843_s7, 4096, %s323_s24, [#allocation13], %s7189_s2, %s7189_s2, %s7190_s27  }
  0x5f   : > { %s7191_s16 = smov [#allocation15]  }
  0x60   : > { %s336_s21 = sshll.u32 %s7191_s16, 4  ;;  %s337_s21 = int_to_ptr.vmem [resolvable:$true] %s336_s21 }
  0x61   : > { %s7088_s26 = scalar_lea.vmem %s337_s21, 16  ;;  %s7095_s15 = scalar_lea.vmem %s337_s21, 32 }
  0x62   : > { %p7089_p10 = scmp.ne.s32.totalorder %s337_s21, %s7088_s26  ;;  %p7096_p6 = scmp.lt.s32.totalorder %s337_s21, %s337_s21 }
  0x63   : > { %p7097_p7 = scmp.lt.s32.totalorder %s7095_s15, %s7088_s26 }
  0x64   : > { %p7091_p8 = pnand %p7089_p10, %p7311_p13 }
  0x65   : > { %p7098_p11 = por %p7097_p7, %p7096_p6 }
  0x66   : > { %p7092_p4 = pneg %p7091_p8 }
  0x68   : > { %p7099_p0 = pnand %p7098_p11, %p7092_p4 }
  0x6a   : > { %7102 = shalt.err (!%p7099_p0)
}
  0x6b   : > { %5997 = dma.hbm_to_vmem [thread:$0]  (!%p7303_p12), %s7844_s8, 16, %s337_s21, [#allocation16]  }
  0x6c   : > { %p5288_p1 = scmp.ge.s32.totalorder %s7179_s12, 4 }
  0x6d   : > { %p7857_p2 = scmp.ne.s32.totalorder (!%p5288_p1), %s7851_s18, 0 }
  0x6e   : > { %343 = sbr.rel (%p5288_p1) target bundleno = 150 (0x96), region = 44 }
  0x73   : > { %346 = sbr.rel (!%p7857_p2) target bundleno = 125 (0x7d), region = 48  ;;  %s348_s28 = sand.u32 (%p7857_p2), 1, %s7175_s11  }
  0x74   : > { %s5894_s24 = smul.u32 (%p7857_p2), 36, %s7179_s12 }
  0x75   : > { %s5942_s2 = smul.u32 (%p7857_p2), 72, %s348_s28 }
  0x76   : > { %s353_s29 = scalar_lea.vmem (%p7857_p2), %s7836_s0, %s5894_s24 }
  0x77   : > { %v368_v0 = vld [vmem:[%s353_s29] sm:$0xff] (%p7857_p2)  ;;  %v370_v1 = vld [vmem:[%s353_s29 + $0x8] sm:$0xff] (%p7857_p2)  ;;  %v372_v2 = vld [vmem:[%s353_s29 + $0x10] sm:$0xff] (%p7857_p2)  ;;  %s350_s25 = scalar_lea.vmem (%p7857_p2), [#allocation3], %s5942_s2 }
  0x78   : > { %369 = vst [vmem:[%s350_s25] sm:$0xff] %v368_v0  ;;  %371 = vst [vmem:[%s350_s25 + $0x8] sm:$0xff] %v370_v1  ;;  %v374_v3 = vld [vmem:[%s353_s29 + $0x18] sm:$0xff]  ;;  %v376_v4 = vld [vmem:[%s353_s29 + $0x90] sm:$0xff] }
  0x79   : > { %373 = vst [vmem:[%s350_s25 + $0x10] sm:$0xff] %v372_v2  ;;  %v378_v5 = vld [vmem:[%s353_s29 + $0x98] sm:$0xff]  ;;  %375 = vst [vmem:[%s350_s25 + $0x18] sm:$0xff] %v374_v3  ;;  %v380_v6 = vld [vmem:[%s353_s29 + $0xa0] sm:$0xff] }
  0x7a   : > { %377 = vst [vmem:[%s350_s25 + $0x24] sm:$0xff] %v376_v4  ;;  %379 = vst [vmem:[%s350_s25 + $0x2c] sm:$0xff] %v378_v5  ;;  %v382_v7 = vld [vmem:[%s353_s29 + $0xa8] sm:$0xff]  ;;  %v5290_v8 = vld [vmem:[%s353_s29 + $0x20] sm:$0xf] }
  0x7b   : > { %381 = vst [vmem:[%s350_s25 + $0x34] sm:$0xff] %v380_v6  ;;  %383 = vst [vmem:[%s350_s25 + $0x3c] sm:$0xff] %v382_v7  ;;  %v5292_v9 = vld [vmem:[%s353_s29 + $0xb0] sm:$0xf] }
  0x7c   : > { %5291 = vst [vmem:[%s350_s25 + $0x20] sm:$0xf] %v5290_v8  ;;  %5293 = vst [vmem:[%s350_s25 + $0x44] sm:$0xf] %v5292_v9 }
  0x7d PF: > { %s402_s16 = sand.u32 1, %s7175_s11   ;;  %s5897_s21 = smul.u32 36864, %s7179_s12 }
  0x7e   : > { %s5943_s26 = smul.u32 2304, %s402_s16  ;;  %s7386_s2 = scalar_lea.sflag [#allocation5], %s402_s16 }
  0x7f   : > { %s7382_s23 = scalar_lea.hbm %s7837_s1, %s5897_s21  ;;  %p7858_p13 = scmp.ne.s32.totalorder %s7851_s18, 0 }
  0x80   : > { %s406_s28 = scalar_lea.vmem [#allocation4], %s5943_s26  ;;  %s7103_s27 = scalar_lea.hbm %s7382_s23, 36864 }
  0x81   : > { %s414_s24 = sshll.u32 %s406_s28, 4  ;;  %p7104_p12 = scmp.ne.s32.totalorder %s7382_s23, %s7103_s27  ;;  %s7384_s24 = int_to_ptr.vmem [resolvable:$true] %s414_s24 }
  0x82   : > { %s7107_s29 = scalar_lea.hbm %s7837_s1, 147456  ;;  %p7108_p3 = scmp.lt.s32.totalorder %s7382_s23, %s7837_s1 }
  0x83   : > { %p7105_p9 = pnand %p7104_p12, %p7858_p13  ;;  %p7109_p10 = scmp.lt.s32.totalorder %s7107_s29, %s7103_s27 }
  0x85   : > { %p7106_p5 = pneg %p7105_p9  ;;  %p7110_p8 = por %p7109_p10, %p7108_p3 }
  0x87   : > { %p7111_p4 = pnand %p7110_p8, %p7106_p5 }
  0x89   : > { %7114 = shalt.err (!%p7111_p4)
}
  0x8a   : > { %s7115_s16 = scalar_lea.vmem %s7384_s24, 36864  ;;  %s7192_s26 = smov [#allocation4]  }
  0x8b   : > { %p7116_p6 = scmp.ne.s32.totalorder %s7384_s24, %s7115_s16  ;;  %s7119_s15 = sshll.u32 %s7192_s26, 4  ;;  %s7120_s15 = int_to_ptr.vmem [resolvable:$false] %s7119_s15 }
  0x8c   : > { %s7121_s30 = scalar_lea.vmem %s7120_s15, 73728  ;;  %p7122_p0 = scmp.lt.s32.totalorder %s7384_s24, %s7120_s15 }
  0x8d   : > { %p7117_p7 = pnand %p7116_p6, %p7858_p13  ;;  %p7123_p1 = scmp.lt.s32.totalorder %s7121_s30, %s7115_s16 }
  0x8f   : > { %p7118_p11 = pneg %p7117_p7  ;;  %p7124_p2 = por %p7123_p1, %p7122_p0 }
  0x91   : > { %p7125_p12 = pnand %p7124_p2, %p7118_p11 }
  0x93   : > { %7128 = shalt.err (!%p7125_p12)
}
  0x94   : > { %s7193_s28 = smov 256   ;;  %s7194_s27 = smov 16  }
  0x95   : > { %5960 = dma.hbm_to_vmem [thread:$0]  (%p7858_p13), %s7382_s23, 36864, %s7384_s24, %s7386_s2, %s7193_s28, %s7193_s28, %s7194_s27  }
  0x96 PF: > { %p7859_p9 = scmp.ne.s32.totalorder %s7853_s20, 0 }
  0x97   : > { %s429_s12 = sand.u32 (!%p7859_p9), 1, %s7171_s10   ;;  %p7860_p5 = scmp.ne.s32.totalorder (!%p7859_p9), %s7852_s19, 0 }
  0x98   : > { %426 = sbr.rel (%p7859_p9) target bundleno = 1491 (0x5d3), region = 78  ;;  %s436_s21 = scalar_lea.sflag (!%p7859_p9), [#allocation5], %s429_s12 }
  0x99   : > { %s5944_s22 = smul.u32 (!%p7859_p9), 72, %s429_s12 }
  0x9a   : > { %s5945_s29 = smul.u32 (!%p7859_p9), 2304, %s429_s12 }
  0x9b   : > { %s7412_s25 = scalar_lea.vmem (!%p7859_p9), [#allocation3], %s5944_s22 }
  0x9c   : > { %s7414_s16 = scalar_lea.vmem (!%p7859_p9), [#allocation4], %s5945_s29 }
  0x9d   : > { %7146 = dma.done.wait (%p7860_p5), %s436_s21, 36864  }
  0x9e   : > { %7148 = vsyncadd (%p7860_p5), %s436_s21, 4294930432  ;;  %p7861_p13 = scmp.eq.s32.totalorder %s7266_s13, 0 }
  0xa0   : > { %7150 = dma.done.wait (%p7861_p13), [#allocation7], 16448   ;;  %p7862_p3 = pmov %p7861_p13 }
  0xa2   : > { %7152 = vsyncadd (%p7862_p3), [#allocation7], 4294950848  ;;  %p7863_p10 = pmov %p7862_p3 }
  0xa3   : > { %p7864_p8 = pmov %p7862_p3 }
  0xa4   : > { %7154 = dma.done.wait (%p7863_p10), [#allocation10], 16448  }
  0xa5   : > { %7156 = vsyncadd (%p7864_p8), [#allocation10], 4294950848  ;;  %p7865_p4 = pmov %p7862_p3 }
  0xa6   : > { %p7866_p6 = pmov %p7862_p3 }
  0xa7   : > { %7158 = dma.done.wait (%p7865_p4), [#allocation13], 4160  }
  0xa8   : > { %7160 = vsyncadd (%p7866_p6), [#allocation13], 4294963136  ;;  %p7867_p7 = pmov %p7862_p3 }
  0xa9   : > { %p7868_p11 = pmov %p7862_p3 }
  0xaa   : > { %7162 = dma.done.wait (%p7867_p7), [#allocation16], 16  }
  0xab   : > { %7164 = vsyncadd (%p7868_p11), [#allocation16], 4294967280  ;;  %p7869_p0 = scmp.ne.s32.totalorder %s7266_s13, 0 }
  0xad   : > { %507 = sbr.rel (%p7869_p0) target bundleno = 183 (0xb7), region = 118 }
  0xb2   : > { %v7195_v10 = vmov 0.0  }
  0xb3   : > { %508 = vst [vmem:[#allocation2 + $0x30] sm:$0xff] %v7195_v10  ;;  %509 = vst [vmem:[#allocation2] sm:$0xff] %v7195_v10 }
  0xb4   : > { %510 = vst [vmem:[#allocation2 + $0x18] sm:$0xff] %v7195_v10  ;;  %511 = vst [vmem:[#allocation2 + $0x10] sm:$0xff] %v7195_v10 }
  0xb5   : > { %512 = vst [vmem:[#allocation2 + $0x8] sm:$0xff] %v7195_v10  ;;  %513 = vst [vmem:[#allocation2 + $0x20] sm:$0xff] %v7195_v10 }
  0xb6   : > { %514 = vst [vmem:[#allocation2 + $0x28] sm:$0xff] %v7195_v10  ;;  %515 = vst [vmem:[#allocation2 + $0x38] sm:$0xff] %v7195_v10 }
  0xb7 PF: > { %v6059_v11 = vld [vmem:[%s7414_s16 + $0xe4] ss:$16 sps:$4 sm:$0xff]   ;;  %v6063_v13 = vld [vmem:[%s7414_s16 + $0xe0] ss:$16 sps:$4 sm:$0xff]   ;;  %p5602_p1 = scmp.ne.s32.totalorder %s7266_s13, 3 }
  0xb8   : > { %v6061_v12 = vld [vmem:[%s7414_s16 + $0x2e4] ss:$16 sps:$4 sm:$0xff]   ;;  %2308 = vmatprep.subr.bf16.mxu0 %v6059_v11  ;;  %v6064_v14 = vld [vmem:[%s7414_s16 + $0x2e0] ss:$16 sps:$4 sm:$0xff]  }
  0xb9   : > { %2351 = vmatprep.subr.bf16.mxu1 %v6061_v12  ;;  %v6065_v15 = vld [vmem:[%s7414_s16 + $0xc4] ss:$16 sps:$4 sm:$0xff]   ;;  %2309 = vmatpush1.bf16.msra.mxu0 %v6063_v13  ;;  %v6069_v17 = vld [vmem:[%s7414_s16 + $0xc0] ss:$16 sps:$4 sm:$0xff]  }
  0xba   : > { %2352 = vmatpush1.bf16.msra.mxu1 %v6064_v14  ;;  %v6067_v16 = vld [vmem:[%s7414_s16 + $0x2c4] ss:$16 sps:$4 sm:$0xff]   ;;  %2310 = vmatprep.subr.bf16.mxu0 %v6065_v15  ;;  %v6070_v18 = vld [vmem:[%s7414_s16 + $0x2c0] ss:$16 sps:$4 sm:$0xff]  }
  0xbb   : > { %2353 = vmatprep.subr.bf16.mxu1 %v6067_v16  ;;  %v6071_v19 = vld [vmem:[%s7414_s16 + $0xa4] ss:$16 sps:$4 sm:$0xff]   ;;  %v6075_v21 = vld [vmem:[%s7414_s16 + $0xa0] ss:$16 sps:$4 sm:$0xff]  }
  0xbc   : > { %v6073_v20 = vld [vmem:[%s7414_s16 + $0x2a4] ss:$16 sps:$4 sm:$0xff]   ;;  %v6076_v22 = vld [vmem:[%s7414_s16 + $0x2a0] ss:$16 sps:$4 sm:$0xff]  }
  0xbd   : > { %2311 = vmatpush1.bf16.msra.mxu0 %v6069_v17  ;;  %v6077_v23 = vld [vmem:[%s7414_s16 + $0x84] ss:$16 sps:$4 sm:$0xff]   ;;  %v6081_v25 = vld [vmem:[%s7414_s16 + $0x80] ss:$16 sps:$4 sm:$0xff]  }
  0xbe   : > { %2354 = vmatpush1.bf16.msra.mxu1 %v6070_v18  ;;  %2312 = vmatprep.subr.bf16.mxu0 %v6071_v19  ;;  %v6079_v24 = vld [vmem:[%s7414_s16 + $0x284] ss:$16 sps:$4 sm:$0xff]   ;;  %v6082_v26 = vld [vmem:[%s7414_s16 + $0x280] ss:$16 sps:$4 sm:$0xff]  }
  0xbf   : > { %2355 = vmatprep.subr.bf16.mxu1 %v6073_v20  ;;  %v6083_v27 = vld [vmem:[%s7414_s16 + $0x64] ss:$16 sps:$4 sm:$0xff]   ;;  %v6087_v29 = vld [vmem:[%s7414_s16 + $0x60] ss:$16 sps:$4 sm:$0xff]  }
  0xc0   : > { %v6085_v28 = vld [vmem:[%s7414_s16 + $0x264] ss:$16 sps:$4 sm:$0xff]   ;;  %v6088_v30 = vld [vmem:[%s7414_s16 + $0x260] ss:$16 sps:$4 sm:$0xff]  }
  0xc1   : > { %2313 = vmatpush1.bf16.msra.mxu0 %v6075_v21  ;;  %v6089_v31 = vld [vmem:[%s7414_s16 + $0x44] ss:$16 sps:$4 sm:$0xff]   ;;  %v6093_v33 = vld [vmem:[%s7414_s16 + $0x40] ss:$16 sps:$4 sm:$0xff]  }
  0xc2   : > { %2356 = vmatpush1.bf16.msra.mxu1 %v6076_v22  ;;  %2314 = vmatprep.subr.bf16.mxu0 %v6077_v23  ;;  %v6091_v32 = vld [vmem:[%s7414_s16 + $0x244] ss:$16 sps:$4 sm:$0xff]   ;;  %v6094_v34 = vld [vmem:[%s7414_s16 + $0x240] ss:$16 sps:$4 sm:$0xff]  }
  0xc3   : > { %2357 = vmatprep.subr.bf16.mxu1 %v6079_v24  ;;  %v6095_v35 = vld [vmem:[%s7414_s16 + $0x24] ss:$16 sps:$4 sm:$0xff]   ;;  %v6099_v37 = vld [vmem:[%s7414_s16 + $0x20] ss:$16 sps:$4 sm:$0xff]  }
  0xc4   : > { %v6097_v36 = vld [vmem:[%s7414_s16 + $0x224] ss:$16 sps:$4 sm:$0xff]   ;;  %v6100_v38 = vld [vmem:[%s7414_s16 + $0x220] ss:$16 sps:$4 sm:$0xff]  }
  0xc5   : > { %2315 = vmatpush1.bf16.msra.mxu0 %v6081_v25  ;;  %v6101_v39 = vld [vmem:[%s7414_s16 + $0x4] ss:$16 sps:$4 sm:$0xff]   ;;  %v6105_v41 = vld [vmem:[%s7414_s16] ss:$16 sps:$4 sm:$0xff]  }
  0xc6   : > { %2358 = vmatpush1.bf16.msra.mxu1 %v6082_v26  ;;  %2316 = vmatprep.subr.bf16.mxu0 %v6083_v27  ;;  %v6103_v40 = vld [vmem:[%s7414_s16 + $0x204] ss:$16 sps:$4 sm:$0xff]   ;;  %v6106_v42 = vld [vmem:[%s7414_s16 + $0x200] ss:$16 sps:$4 sm:$0xff]  }
  0xc7   : > { %2359 = vmatprep.subr.bf16.mxu1 %v6085_v28  ;;  %v6107_v43 = vld [vmem:[%s7414_s16 + $0x1e4] ss:$16 sps:$4 sm:$0xff]   ;;  %v6111_v45 = vld [vmem:[%s7414_s16 + $0x1e0] ss:$16 sps:$4 sm:$0xff]  }
  0xc8   : > { %v6109_v44 = vld [vmem:[%s7414_s16 + $0x3e4] ss:$16 sps:$4 sm:$0xff]   ;;  %v6112_v46 = vld [vmem:[%s7414_s16 + $0x3e0] ss:$16 sps:$4 sm:$0xff]  }
  0xc9   : > { %2317 = vmatpush1.bf16.msra.mxu0 %v6087_v29  ;;  %v6113_v47 = vld [vmem:[%s7414_s16 + $0x1c4] ss:$16 sps:$4 sm:$0xff]   ;;  %v6117_v49 = vld [vmem:[%s7414_s16 + $0x1c0] ss:$16 sps:$4 sm:$0xff]  }
  0xca   : > { %2360 = vmatpush1.bf16.msra.mxu1 %v6088_v30  ;;  %2318 = vmatprep.subr.bf16.mxu0 %v6089_v31  ;;  %v6115_v48 = vld [vmem:[%s7414_s16 + $0x3c4] ss:$16 sps:$4 sm:$0xff]   ;;  %v6118_v50 = vld [vmem:[%s7414_s16 + $0x3c0] ss:$16 sps:$4 sm:$0xff]  }
  0xcb   : > { %2361 = vmatprep.subr.bf16.mxu1 %v6091_v32  ;;  %v6119_v51 = vld [vmem:[%s7414_s16 + $0x1a4] ss:$16 sps:$4 sm:$0xff]   ;;  %v6123_v53 = vld [vmem:[%s7414_s16 + $0x1a0] ss:$16 sps:$4 sm:$0xff]  }
  0xcc   : > { %v6121_v52 = vld [vmem:[%s7414_s16 + $0x3a4] ss:$16 sps:$4 sm:$0xff]   ;;  %v6124_v54 = vld [vmem:[%s7414_s16 + $0x3a0] ss:$16 sps:$4 sm:$0xff]  }
  0xcd   : > { %2319 = vmatpush1.bf16.msra.mxu0 %v6093_v33  ;;  %v6125_v55 = vld [vmem:[%s7414_s16 + $0x184] ss:$16 sps:$4 sm:$0xff]   ;;  %v6129_v57 = vld [vmem:[%s7414_s16 + $0x180] ss:$16 sps:$4 sm:$0xff]  }
  0xce   : > { %2362 = vmatpush1.bf16.msra.mxu1 %v6094_v34  ;;  %2320 = vmatprep.subr.bf16.mxu0 %v6095_v35  ;;  %v6127_v56 = vld [vmem:[%s7414_s16 + $0x384] ss:$16 sps:$4 sm:$0xff]   ;;  %v6130_v58 = vld [vmem:[%s7414_s16 + $0x380] ss:$16 sps:$4 sm:$0xff]  }
  0xcf   : > { %2363 = vmatprep.subr.bf16.mxu1 %v6097_v36  ;;  %v6131_v59 = vld [vmem:[%s7414_s16 + $0x164] ss:$16 sps:$4 sm:$0xff]   ;;  %v6135_v63 = vld [vmem:[%s7414_s16 + $0x160] ss:$16 sps:$4 sm:$0xff]  }
  0xd0   : > { %v7488_v60 = vld [vmem:[%s7412_s25 + $0x4] ss:$36 sps:$4 sm:$0xff]   ;;  %v7492_v62 = vld [vmem:[%s7412_s25 + $0xc] ss:$36 sps:$4 sm:$0xff]  }
  0xd1   : > { %2321 = vmatpush1.bf16.msra.mxu0 %v6099_v37  ;;  %v6133_v61 = vld [vmem:[%s7414_s16 + $0x364] ss:$16 sps:$4 sm:$0xff]   ;;  %2340 = vmatprep.mubr.bf16.mxu0 %v7488_v60  ;;  %v6136_v0 = vld [vmem:[%s7414_s16 + $0x360] ss:$16 sps:$4 sm:$0xff]  }
  0xd2   : > { %2364 = vmatpush1.bf16.msra.mxu1 %v6100_v38  ;;  %2322 = vmatprep.subr.bf16.mxu0 %v6101_v39  ;;  %v6137_v1 = vld [vmem:[%s7414_s16 + $0x144] ss:$16 sps:$4 sm:$0xff]   ;;  %v6141_v3 = vld [vmem:[%s7414_s16 + $0x140] ss:$16 sps:$4 sm:$0xff]  }
  0xd3   : > { %2365 = vmatprep.subr.bf16.mxu1 %v6103_v40  ;;  %2383 = vmatprep.mubr.bf16.mxu1 %v7492_v62  ;;  %v6139_v2 = vld [vmem:[%s7414_s16 + $0x344] ss:$16 sps:$4 sm:$0xff]   ;;  %v6142_v4 = vld [vmem:[%s7414_s16 + $0x340] ss:$16 sps:$4 sm:$0xff]  }
  0xd4   : > { %v6143_v5 = vld [vmem:[%s7414_s16 + $0x124] ss:$16 sps:$4 sm:$0xff]   ;;  %v6147_v7 = vld [vmem:[%s7414_s16 + $0x120] ss:$16 sps:$4 sm:$0xff]  }
  0xd5   : > { %2323 = vmatpush1.bf16.msra.mxu0 %v6105_v41  ;;  %v6145_v6 = vld [vmem:[%s7414_s16 + $0x324] ss:$16 sps:$4 sm:$0xff]   ;;  %v6148_v8 = vld [vmem:[%s7414_s16 + $0x320] ss:$16 sps:$4 sm:$0xff]  }
  0xd6   : > { %2366 = vmatpush1.bf16.msra.mxu1 %v6106_v42  ;;  %2324 = vmatprep.subr.bf16.mxu0 %v6107_v43  ;;  %v6149_v9 = vld [vmem:[%s7414_s16 + $0x104] ss:$16 sps:$4 sm:$0xff]   ;;  %v6153_v11 = vld [vmem:[%s7414_s16 + $0x100] ss:$16 sps:$4 sm:$0xff]  }
  0xd7   : > { %2367 = vmatprep.subr.bf16.mxu1 %v6109_v44  ;;  %v6151_v10 = vld [vmem:[%s7414_s16 + $0x304] ss:$16 sps:$4 sm:$0xff]   ;;  %v6154_v12 = vld [vmem:[%s7414_s16 + $0x300] ss:$16 sps:$4 sm:$0xff]  }
  0xd8   : > { %v6163_v13 = vld [vmem:[%s7414_s16 + $0x4e4] ss:$16 sps:$4 sm:$0xff]   ;;  %v6161_v17 = vld [vmem:[%s7414_s16 + $0x4e0] ss:$16 sps:$4 sm:$0xff]  }
  0xd9   : > { %2325 = vmatpush2.bf16.msra.mxu0 %v6111_v45  ;;  %v6166_v14 = vld [vmem:[%s7414_s16 + $0x6e4] ss:$16 sps:$4 sm:$0xff]   ;;  %v6164_v18 = vld [vmem:[%s7414_s16 + $0x6e0] ss:$16 sps:$4 sm:$0xff]  }
  0xda   : > { %2368 = vmatpush2.bf16.msra.mxu1 %v6112_v46  ;;  %2326 = vmatprep.subr.bf16.mxu0 %v6113_v47  ;;  %v7513_v15 = vld [vmem:[%s7412_s25] ss:$36 sps:$4 sm:$0xff]   ;;  %v6158_v16 = vld [vmem:[%s7412_s25 + $0x8] ss:$36 sps:$4 sm:$0xff]   ;;  %v7546_v45 = vld [vmem:[%s7412_s25 + $0x14] ss:$36 sps:$4 sm:$0xff]  }
  0xdb   : > { %2369 = vmatprep.subr.bf16.mxu1 %v6115_v48  ;;  %v6169_v19 = vld [vmem:[%s7414_s16 + $0x4c4] ss:$16 sps:$4 sm:$0xff]   ;;  %v6167_v21 = vld [vmem:[%s7414_s16 + $0x4c0] ss:$16 sps:$4 sm:$0xff]  }
  0xdc   : > { %v6172_v20 = vld [vmem:[%s7414_s16 + $0x6c4] ss:$16 sps:$4 sm:$0xff]   ;;  %v6170_v22 = vld [vmem:[%s7414_s16 + $0x6c0] ss:$16 sps:$4 sm:$0xff]  }
  0xdd   : > { %2327 = vmatpush2.bf16.msra.mxu0 %v6117_v49  ;;  %v6175_v23 = vld [vmem:[%s7414_s16 + $0x4a4] ss:$16 sps:$4 sm:$0xff]   ;;  %v6173_v25 = vld [vmem:[%s7414_s16 + $0x4a0] ss:$16 sps:$4 sm:$0xff]  }
  0xde   : > { %2370 = vmatpush2.bf16.msra.mxu1 %v6118_v50  ;;  %2328 = vmatprep.subr.bf16.mxu0 %v6119_v51  ;;  %v6178_v24 = vld [vmem:[%s7414_s16 + $0x6a4] ss:$16 sps:$4 sm:$0xff]   ;;  %v6176_v26 = vld [vmem:[%s7414_s16 + $0x6a0] ss:$16 sps:$4 sm:$0xff]  }
  0xdf   : > { %2371 = vmatprep.subr.bf16.mxu1 %v6121_v52  ;;  %v6181_v27 = vld [vmem:[%s7414_s16 + $0x484] ss:$16 sps:$4 sm:$0xff]   ;;  %v6179_v29 = vld [vmem:[%s7414_s16 + $0x480] ss:$16 sps:$4 sm:$0xff]  }
  0xe0   : > { %v6184_v28 = vld [vmem:[%s7414_s16 + $0x684] ss:$16 sps:$4 sm:$0xff]   ;;  %v6182_v30 = vld [vmem:[%s7414_s16 + $0x680] ss:$16 sps:$4 sm:$0xff]  }
  0xe1   : > { %2329 = vmatpush2.bf16.msra.mxu0 %v6123_v53  ;;  %v6187_v31 = vld [vmem:[%s7414_s16 + $0x464] ss:$16 sps:$4 sm:$0xff]   ;;  %v6185_v33 = vld [vmem:[%s7414_s16 + $0x460] ss:$16 sps:$4 sm:$0xff]  }
  0xe2   : > { %2372 = vmatpush2.bf16.msra.mxu1 %v6124_v54  ;;  %2330 = vmatprep.subr.bf16.mxu0 %v6125_v55  ;;  %v6190_v32 = vld [vmem:[%s7414_s16 + $0x664] ss:$16 sps:$4 sm:$0xff]   ;;  %v6188_v34 = vld [vmem:[%s7414_s16 + $0x660] ss:$16 sps:$4 sm:$0xff]  }
  0xe3   : > { %2373 = vmatprep.subr.bf16.mxu1 %v6127_v56  ;;  %v6193_v35 = vld [vmem:[%s7414_s16 + $0x444] ss:$16 sps:$4 sm:$0xff]   ;;  %v6191_v37 = vld [vmem:[%s7414_s16 + $0x440] ss:$16 sps:$4 sm:$0xff]  }
  0xe4   : > { %v6196_v36 = vld [vmem:[%s7414_s16 + $0x644] ss:$16 sps:$4 sm:$0xff]   ;;  %v6194_v38 = vld [vmem:[%s7414_s16 + $0x640] ss:$16 sps:$4 sm:$0xff]  }
  0xe5   : > { %2331 = vmatpush2.bf16.msra.mxu0 %v6129_v57  ;;  %v6199_v39 = vld [vmem:[%s7414_s16 + $0x424] ss:$16 sps:$4 sm:$0xff]   ;;  %v6197_v41 = vld [vmem:[%s7414_s16 + $0x420] ss:$16 sps:$4 sm:$0xff]  }
  0xe6   : > { %2374 = vmatpush2.bf16.msra.mxu1 %v6130_v58  ;;  %2332 = vmatprep.subr.bf16.mxu0 %v6131_v59  ;;  %v6202_v40 = vld [vmem:[%s7414_s16 + $0x624] ss:$16 sps:$4 sm:$0xff]   ;;  %v6200_v42 = vld [vmem:[%s7414_s16 + $0x620] ss:$16 sps:$4 sm:$0xff]  }
  0xe7   : > { %2375 = vmatprep.subr.bf16.mxu1 %v6133_v61  ;;  %v6205_v43 = vld [vmem:[%s7414_s16 + $0x404] ss:$16 sps:$4 sm:$0xff]   ;;  %v6203_v47 = vld [vmem:[%s7414_s16 + $0x400] ss:$16 sps:$4 sm:$0xff]  }
  0xe8   : > { %v6208_v44 = vld [vmem:[%s7414_s16 + $0x604] ss:$16 sps:$4 sm:$0xff]   ;;  %v6206_v48 = vld [vmem:[%s7414_s16 + $0x600] ss:$16 sps:$4 sm:$0xff]  }
  0xe9   : > { %2333 = vmatpush2.bf16.msra.mxu0 %v6135_v63  ;;  %v7549_v46 = vld [vmem:[%s7412_s25 + $0x1c] ss:$36 sps:$4 sm:$0xff]  }
  0xea   : > { %2376 = vmatpush2.bf16.msra.mxu1 %v6136_v0  ;;  %2334 = vmatprep.subr.bf16.mxu0 %v6137_v1  ;;  %v6211_v49 = vld [vmem:[%s7414_s16 + $0x5e4] ss:$16 sps:$4 sm:$0xff]   ;;  %v6209_v51 = vld [vmem:[%s7414_s16 + $0x5e0] ss:$16 sps:$4 sm:$0xff]  }
  0xeb   : > { %2377 = vmatprep.subr.bf16.mxu1 %v6139_v2  ;;  %v6214_v50 = vld [vmem:[%s7414_s16 + $0x7e4] ss:$16 sps:$4 sm:$0xff]   ;;  %v6212_v52 = vld [vmem:[%s7414_s16 + $0x7e0] ss:$16 sps:$4 sm:$0xff]  }
  0xec   : > { %v6217_v53 = vld [vmem:[%s7414_s16 + $0x5c4] ss:$16 sps:$4 sm:$0xff]   ;;  %v6215_v55 = vld [vmem:[%s7414_s16 + $0x5c0] ss:$16 sps:$4 sm:$0xff]  }
  0xed   : > { %2335 = vmatpush2.bf16.msra.mxu0 %v6141_v3  ;;  %v6220_v54 = vld [vmem:[%s7414_s16 + $0x7c4] ss:$16 sps:$4 sm:$0xff]   ;;  %v6218_v56 = vld [vmem:[%s7414_s16 + $0x7c0] ss:$16 sps:$4 sm:$0xff]  }
  0xee   : > { %2378 = vmatpush2.bf16.msra.mxu1 %v6142_v4  ;;  %2336 = vmatprep.subr.bf16.mxu0 %v6143_v5  ;;  %v6223_v57 = vld [vmem:[%s7414_s16 + $0x5a4] ss:$16 sps:$4 sm:$0xff]   ;;  %v6221_v59 = vld [vmem:[%s7414_s16 + $0x5a0] ss:$16 sps:$4 sm:$0xff]  }
  0xef   : > { %2379 = vmatprep.subr.bf16.mxu1 %v6145_v6  ;;  %v6226_v58 = vld [vmem:[%s7414_s16 + $0x7a4] ss:$16 sps:$4 sm:$0xff]   ;;  %v6224_v61 = vld [vmem:[%s7414_s16 + $0x7a0] ss:$16 sps:$4 sm:$0xff]  }
  0xf0   : > { %v6229_v63 = vld [vmem:[%s7414_s16 + $0x584] ss:$16 sps:$4 sm:$0xff]   ;;  %v6227_v1 = vld [vmem:[%s7414_s16 + $0x580] ss:$16 sps:$4 sm:$0xff]  }
  0xf1   : > { %2337 = vmatpush2.bf16.msra.mxu0 %v6147_v7  ;;  %v6232_v0 = vld [vmem:[%s7414_s16 + $0x784] ss:$16 sps:$4 sm:$0xff]   ;;  %v6230_v2 = vld [vmem:[%s7414_s16 + $0x780] ss:$16 sps:$4 sm:$0xff]  }
  0xf2   : > { %2380 = vmatpush2.bf16.msra.mxu1 %v6148_v8  ;;  %2338 = vmatprep.subr.bf16.mxu0 %v6149_v9  ;;  %v6235_v3 = vld [vmem:[%s7414_s16 + $0x564] ss:$16 sps:$4 sm:$0xff]   ;;  %v6233_v5 = vld [vmem:[%s7414_s16 + $0x560] ss:$16 sps:$4 sm:$0xff]  }
  0xf3   : > { %2381 = vmatprep.subr.bf16.mxu1 %v6151_v10  ;;  %v6238_v4 = vld [vmem:[%s7414_s16 + $0x764] ss:$16 sps:$4 sm:$0xff]   ;;  %v6236_v6 = vld [vmem:[%s7414_s16 + $0x760] ss:$16 sps:$4 sm:$0xff]  }
  0xf4   : > { %v6241_v7 = vld [vmem:[%s7414_s16 + $0x544] ss:$16 sps:$4 sm:$0xff]   ;;  %v6239_v9 = vld [vmem:[%s7414_s16 + $0x540] ss:$16 sps:$4 sm:$0xff]  }
  0xf5   : > { %2339 = vmatpush2.bf16.msra.mxu0 %v6153_v11  ;;  %v6244_v8 = vld [vmem:[%s7414_s16 + $0x744] ss:$16 sps:$4 sm:$0xff]   ;;  %v6242_v10 = vld [vmem:[%s7414_s16 + $0x740] ss:$16 sps:$4 sm:$0xff]  }
  0xf6   : > { %2382 = vmatpush2.bf16.msra.mxu1 %v6154_v12  ;;  %2394 = vmatprep.subr.bf16.mxu0 %v6163_v13  ;;  %v6247_v11 = vld [vmem:[%s7414_s16 + $0x524] ss:$16 sps:$4 sm:$0xff]   ;;  %v6245_v13 = vld [vmem:[%s7414_s16 + $0x520] ss:$16 sps:$4 sm:$0xff]  }
  0xf7   : > { %2437 = vmatprep.subr.bf16.mxu1 %v6166_v14  ;;  %v6250_v12 = vld [vmem:[%s7414_s16 + $0x724] ss:$16 sps:$4 sm:$0xff]   ;;  %v6248_v14 = vld [vmem:[%s7414_s16 + $0x720] ss:$16 sps:$4 sm:$0xff]  }
  0xf8   : > { %2341 = vmatmul.mubr.bf16.vlgmr.msra.gmra.mxu0 %v7513_v15 }
  0xf9   : > { %2384 = vmatmul.mubr.bf16.vlgmr.msra.gmra.mxu1 %v6158_v16  ;;  %2395 = vmatpush1.bf16.msra.mxu0 %v6161_v17  ;;  %v6253_v16 = vld [vmem:[%s7414_s16 + $0x504] ss:$16 sps:$4 sm:$0xff]  }
  0xfa   : > { %2438 = vmatpush1.bf16.msra.mxu1 %v6164_v18  ;;  %2396 = vmatprep.subr.bf16.mxu0 %v6169_v19  ;;  %v6256_v17 = vld [vmem:[%s7414_s16 + $0x704] ss:$16 sps:$4 sm:$0xff]   ;;  %v6251_v18 = vld [vmem:[%s7414_s16 + $0x500] ss:$16 sps:$4 sm:$0xff]  }
  0xfb   : > { %2439 = vmatprep.subr.bf16.mxu1 %v6172_v20  ;;  %2426 = vmatprep.mubr.bf16.mxu0 %v7546_v45  ;;  %v6254_v19 = vld [vmem:[%s7414_s16 + $0x700] ss:$16 sps:$4 sm:$0xff]   ;;  %v6265_v20 = vld [vmem:[%s7414_s16 + $0x8e4] ss:$16 sps:$4 sm:$0xff]  }
  0xfc   : > { %2469 = vmatprep.mubr.bf16.mxu1 %v7549_v46 }
  0xfd   : > { %2397 = vmatpush1.bf16.msra.mxu0 %v6167_v21  ;;  %v6268_v21 = vld [vmem:[%s7414_s16 + $0xec] ss:$16 sps:$4 sm:$0xff]  }
  0xfe   : > { %2440 = vmatpush1.bf16.msra.mxu1 %v6170_v22  ;;  %2398 = vmatprep.subr.bf16.mxu0 %v6175_v23  ;;  %v7590_v22 = vld [vmem:[%s7412_s25 + $0x10] ss:$36 sps:$4 sm:$0xff]   ;;  %v7593_v23 = vld [vmem:[%s7412_s25 + $0x18] ss:$36 sps:$4 sm:$0xff]  }
  0xff   : > { %2441 = vmatprep.subr.bf16.mxu1 %v6178_v24  ;;  %v6263_v24 = vld [vmem:[%s7414_s16 + $0x8e0] ss:$16 sps:$4 sm:$0xff]  }
 0x101   : > { %2399 = vmatpush1.bf16.msra.mxu0 %v6173_v25  ;;  %v6266_v25 = vld [vmem:[%s7414_s16 + $0xe8] ss:$16 sps:$4 sm:$0xff]  }
 0x102   : > { %2442 = vmatpush1.bf16.msra.mxu1 %v6176_v26  ;;  %2400 = vmatprep.subr.bf16.mxu0 %v6181_v27  ;;  %v6271_v26 = vld [vmem:[%s7414_s16 + $0x8c4] ss:$16 sps:$4 sm:$0xff]   ;;  %v6274_v27 = vld [vmem:[%s7414_s16 + $0xcc] ss:$16 sps:$4 sm:$0xff]  }
 0x103   : > { %2443 = vmatprep.subr.bf16.mxu1 %v6184_v28  ;;  %v6269_v28 = vld [vmem:[%s7414_s16 + $0x8c0] ss:$16 sps:$4 sm:$0xff]  }
 0x105   : > { %2401 = vmatpush1.bf16.msra.mxu0 %v6179_v29  ;;  %v6272_v29 = vld [vmem:[%s7414_s16 + $0xc8] ss:$16 sps:$4 sm:$0xff]  }
 0x106   : > { %2444 = vmatpush1.bf16.msra.mxu1 %v6182_v30  ;;  %2402 = vmatprep.subr.bf16.mxu0 %v6187_v31  ;;  %v6277_v30 = vld [vmem:[%s7414_s16 + $0x8a4] ss:$16 sps:$4 sm:$0xff]   ;;  %v6280_v31 = vld [vmem:[%s7414_s16 + $0xac] ss:$16 sps:$4 sm:$0xff]  }
 0x107   : > { %2445 = vmatprep.subr.bf16.mxu1 %v6190_v32  ;;  %v7196_v32 = vmov 0  }
 0x109   : > { %2403 = vmatpush1.bf16.msra.mxu0 %v6185_v33  ;;  %v6275_v33 = vld [vmem:[%s7414_s16 + $0x8a0] ss:$16 sps:$4 sm:$0xff]  }
 0x10a   : > { %2446 = vmatpush1.bf16.msra.mxu1 %v6188_v34  ;;  %2404 = vmatprep.subr.bf16.mxu0 %v6193_v35  ;;  %v6278_v34 = vld [vmem:[%s7414_s16 + $0xa8] ss:$16 sps:$4 sm:$0xff]   ;;  %v6283_v35 = vld [vmem:[%s7414_s16 + $0x884] ss:$16 sps:$4 sm:$0xff]  }
 0x10b   : > { %2447 = vmatprep.subr.bf16.mxu1 %v6196_v36  ;;  %v6286_v36 = vld [vmem:[%s7414_s16 + $0x8c] ss:$16 sps:$4 sm:$0xff]  }
 0x10d   : > { %2405 = vmatpush1.bf16.msra.mxu0 %v6191_v37  ;;  %v6281_v37 = vld [vmem:[%s7414_s16 + $0x880] ss:$16 sps:$4 sm:$0xff]  }
 0x10e   : > { %2448 = vmatpush1.bf16.msra.mxu1 %v6194_v38  ;;  %2406 = vmatprep.subr.bf16.mxu0 %v6199_v39  ;;  %v6284_v38 = vld [vmem:[%s7414_s16 + $0x88] ss:$16 sps:$4 sm:$0xff]   ;;  %v6292_v39 = vld [vmem:[%s7414_s16 + $0x6c] ss:$16 sps:$4 sm:$0xff]  }
 0x10f   : > { %2449 = vmatprep.subr.bf16.mxu1 %v6202_v40  ;;  %v6287_v40 = vld [vmem:[%s7414_s16 + $0x860] ss:$16 sps:$4 sm:$0xff]  }
 0x111   : > { %2407 = vmatpush1.bf16.msra.mxu0 %v6197_v41  ;;  %v6290_v41 = vld [vmem:[%s7414_s16 + $0x68] ss:$16 sps:$4 sm:$0xff]  }
 0x112   : > { %2450 = vmatpush1.bf16.msra.mxu1 %v6200_v42  ;;  %2408 = vmatprep.subr.bf16.mxu0 %v6205_v43  ;;  %v6295_v42 = vld [vmem:[%s7414_s16 + $0x844] ss:$16 sps:$4 sm:$0xff]   ;;  %v6298_v43 = vld [vmem:[%s7414_s16 + $0x4c] ss:$16 sps:$4 sm:$0xff]  }
 0x113   : > { %2451 = vmatprep.subr.bf16.mxu1 %v6208_v44  ;;  %v6293_v44 = vld [vmem:[%s7414_s16 + $0x840] ss:$16 sps:$4 sm:$0xff]  }
 0x115   : > { %2409 = vmatpush1.bf16.msra.mxu0 %v6203_v47  ;;  %v6296_v47 = vld [vmem:[%s7414_s16 + $0x48] ss:$16 sps:$4 sm:$0xff]  }
 0x116   : > { %2452 = vmatpush1.bf16.msra.mxu1 %v6206_v48  ;;  %2410 = vmatprep.subr.bf16.mxu0 %v6211_v49  ;;  %v6301_v48 = vld [vmem:[%s7414_s16 + $0x824] ss:$16 sps:$4 sm:$0xff]   ;;  %v6304_v49 = vld [vmem:[%s7414_s16 + $0x2c] ss:$16 sps:$4 sm:$0xff]  }
 0x117   : > { %2453 = vmatprep.subr.bf16.mxu1 %v6214_v50  ;;  %v6299_v50 = vld [vmem:[%s7414_s16 + $0x820] ss:$16 sps:$4 sm:$0xff]  }
 0x119   : > { %2411 = vmatpush2.bf16.msra.mxu0 %v6209_v51  ;;  %v6302_v51 = vld [vmem:[%s7414_s16 + $0x28] ss:$16 sps:$4 sm:$0xff]  }
 0x11a   : > { %2454 = vmatpush2.bf16.msra.mxu1 %v6212_v52  ;;  %2412 = vmatprep.subr.bf16.mxu0 %v6217_v53  ;;  %v6307_v52 = vld [vmem:[%s7414_s16 + $0x804] ss:$16 sps:$4 sm:$0xff]   ;;  %v6310_v53 = vld [vmem:[%s7414_s16 + $0xc] ss:$16 sps:$4 sm:$0xff]  }
 0x11b   : > { %2455 = vmatprep.subr.bf16.mxu1 %v6220_v54  ;;  %v6305_v54 = vld [vmem:[%s7414_s16 + $0x800] ss:$16 sps:$4 sm:$0xff]  }
 0x11d   : > { %2413 = vmatpush2.bf16.msra.mxu0 %v6215_v55  ;;  %v6308_v55 = vld [vmem:[%s7414_s16 + $0x8] ss:$16 sps:$4 sm:$0xff]  }
 0x11e   : > { %2456 = vmatpush2.bf16.msra.mxu1 %v6218_v56  ;;  %2414 = vmatprep.subr.bf16.mxu0 %v6223_v57  ;;  %v6314_v56 = vld [vmem:[%s7414_s16 + $0x1ec] ss:$16 sps:$4 sm:$0xff]  }
 0x11f   : > { %2457 = vmatprep.subr.bf16.mxu1 %v6226_v58  ;;  %v6317_v57 = vld [vmem:[%s7414_s16 + $0x2ec] ss:$16 sps:$4 sm:$0xff]  }
 0x120   : > { %v7632_v58 = vld [vmem:[%s7412_s25 + $0x20] ss:$36 sps:$4 sm:$0xff]  }
 0x121   : > { %2415 = vmatpush2.bf16.msra.mxu0 %v6221_v59  ;;  %v6312_v59 = vld [vmem:[%s7414_s16 + $0x1e8] ss:$16 sps:$4 sm:$0xff]  }
 0x122   : > { %2458 = vmatpush2.bf16.msra.mxu1 %v6224_v61  ;;  %2416 = vmatprep.subr.bf16.mxu0 %v6229_v63  ;;  %v6315_v61 = vld [vmem:[%s7414_s16 + $0x2e8] ss:$16 sps:$4 sm:$0xff]   ;;  %v6320_v63 = vld [vmem:[%s7414_s16 + $0x1cc] ss:$16 sps:$4 sm:$0xff]  }
 0x123   : > { %2459 = vmatprep.subr.bf16.mxu1 %v6232_v0  ;;  %v6323_v0 = vld [vmem:[%s7414_s16 + $0x2cc] ss:$16 sps:$4 sm:$0xff]  }
 0x125   : > { %2417 = vmatpush2.bf16.msra.mxu0 %v6227_v1  ;;  %v6318_v1 = vld [vmem:[%s7414_s16 + $0x1c8] ss:$16 sps:$4 sm:$0xff]  }
 0x126   : > { %2460 = vmatpush2.bf16.msra.mxu1 %v6230_v2  ;;  %2418 = vmatprep.subr.bf16.mxu0 %v6235_v3  ;;  %v6321_v2 = vld [vmem:[%s7414_s16 + $0x2c8] ss:$16 sps:$4 sm:$0xff]   ;;  %v6326_v3 = vld [vmem:[%s7414_s16 + $0x1ac] ss:$16 sps:$4 sm:$0xff]  }
 0x127   : > { %2461 = vmatprep.subr.bf16.mxu1 %v6238_v4  ;;  %v6329_v4 = vld [vmem:[%s7414_s16 + $0x2ac] ss:$16 sps:$4 sm:$0xff]  }
 0x129   : > { %2419 = vmatpush2.bf16.msra.mxu0 %v6233_v5  ;;  %v6324_v5 = vld [vmem:[%s7414_s16 + $0x1a8] ss:$16 sps:$4 sm:$0xff]  }
 0x12a   : > { %2462 = vmatpush2.bf16.msra.mxu1 %v6236_v6  ;;  %2420 = vmatprep.subr.bf16.mxu0 %v6241_v7  ;;  %v6327_v6 = vld [vmem:[%s7414_s16 + $0x2a8] ss:$16 sps:$4 sm:$0xff]   ;;  %v6332_v7 = vld [vmem:[%s7414_s16 + $0x18c] ss:$16 sps:$4 sm:$0xff]  }
 0x12b   : > { %2463 = vmatprep.subr.bf16.mxu1 %v6244_v8  ;;  %v6335_v8 = vld [vmem:[%s7414_s16 + $0x28c] ss:$16 sps:$4 sm:$0xff]  }
 0x12d   : > { %2421 = vmatpush2.bf16.msra.mxu0 %v6239_v9  ;;  %v6330_v9 = vld [vmem:[%s7414_s16 + $0x188] ss:$16 sps:$4 sm:$0xff]  }
 0x12e   : > { %2464 = vmatpush2.bf16.msra.mxu1 %v6242_v10  ;;  %2422 = vmatprep.subr.bf16.mxu0 %v6247_v11  ;;  %v6333_v10 = vld [vmem:[%s7414_s16 + $0x288] ss:$16 sps:$4 sm:$0xff]   ;;  %v6341_v11 = vld [vmem:[%s7414_s16 + $0x26c] ss:$16 sps:$4 sm:$0xff]  }
 0x12f   : > { %2465 = vmatprep.subr.bf16.mxu1 %v6250_v12  ;;  %v6336_v12 = vld [vmem:[%s7414_s16 + $0x168] ss:$16 sps:$4 sm:$0xff]  }
 0x131   : > { %2423 = vmatpush2.bf16.msra.mxu0 %v6245_v13  ;;  %v6339_v13 = vld [vmem:[%s7414_s16 + $0x268] ss:$16 sps:$4 sm:$0xff]  }
 0x132   : > { %2466 = vmatpush2.bf16.msra.mxu1 %v6248_v14  ;;  %2424 = vmatprep.subr.bf16.mxu0 %v6253_v16  ;;  %v6344_v14 = vld [vmem:[%s7414_s16 + $0x14c] ss:$16 sps:$4 sm:$0xff]  }
 0x133   : > { %2467 = vmatprep.subr.bf16.mxu1 %v6256_v17  ;;  %v6347_v16 = vld [vmem:[%s7414_s16 + $0x24c] ss:$16 sps:$4 sm:$0xff]   ;;  %v6342_v17 = vld [vmem:[%s7414_s16 + $0x148] ss:$16 sps:$4 sm:$0xff]  }
 0x135   : > { %2425 = vmatpush2.bf16.msra.mxu0 %v6251_v18  ;;  %v6345_v18 = vld [vmem:[%s7414_s16 + $0x248] ss:$16 sps:$4 sm:$0xff]  }
 0x136   : > { %2468 = vmatpush2.bf16.msra.mxu1 %v6254_v19  ;;  %2480 = vmatprep.subr.bf16.mxu0 %v6265_v20  ;;  %v6350_v19 = vld [vmem:[%s7414_s16 + $0x12c] ss:$16 sps:$4 sm:$0xff]  }
 0x137   : > { %2523 = vmatprep.subr.bf16.mxu1 %v6268_v21  ;;  %v6353_v20 = vld [vmem:[%s7414_s16 + $0x22c] ss:$16 sps:$4 sm:$0xff]   ;;  %v6348_v21 = vld [vmem:[%s7414_s16 + $0x128] ss:$16 sps:$4 sm:$0xff]  }
 0x138   : > { %2427 = vmatmul.mubr.bf16.vlgmr.msra.gmra.mxu0 %v7590_v22 }
 0x139   : > { %2470 = vmatmul.mubr.bf16.vlgmr.msra.gmra.mxu1 %v7593_v23  ;;  %2481 = vmatpush1.bf16.msra.mxu0 %v6263_v24  ;;  %v6351_v24 = vld [vmem:[%s7414_s16 + $0x228] ss:$16 sps:$4 sm:$0xff]  }
 0x13a   : > { %2524 = vmatpush1.bf16.msra.mxu1 %v6266_v25  ;;  %2482 = vmatprep.subr.bf16.mxu0 %v6271_v26  ;;  %v6356_v25 = vld [vmem:[%s7414_s16 + $0x10c] ss:$16 sps:$4 sm:$0xff]  }
 0x13b   : > { %2525 = vmatprep.subr.bf16.mxu1 %v6274_v27  ;;  %2512 = vmatprep.mubr.bf16.mxu0 %v7196_v32  ;;  %v6359_v26 = vld [vmem:[%s7414_s16 + $0x20c] ss:$16 sps:$4 sm:$0xff]   ;;  %v6354_v27 = vld [vmem:[%s7414_s16 + $0x108] ss:$16 sps:$4 sm:$0xff]  }
 0x13c   : > { %2555 = vmatprep.mubr.bf16.mxu1 %v7488_v60  ;;  %v6289_v60 = vld [vmem:[%s7414_s16 + $0x864] ss:$16 sps:$4 sm:$0xff]  }
 0x13d   : > { %2483 = vmatpush1.bf16.msra.mxu0 %v6269_v28  ;;  %v6357_v28 = vld [vmem:[%s7414_s16 + $0x208] ss:$16 sps:$4 sm:$0xff]  }
 0x13e   : > { %2526 = vmatpush1.bf16.msra.mxu1 %v6272_v29  ;;  %2484 = vmatprep.subr.bf16.mxu0 %v6277_v30  ;;  %v6362_v29 = vld [vmem:[%s7414_s16 + $0x3ec] ss:$16 sps:$4 sm:$0xff]  }
 0x13f   : > { %2527 = vmatprep.subr.bf16.mxu1 %v6280_v31  ;;  %v6365_v30 = vld [vmem:[%s7414_s16 + $0x4ec] ss:$16 sps:$4 sm:$0xff]   ;;  %v6360_v31 = vld [vmem:[%s7414_s16 + $0x3e8] ss:$16 sps:$4 sm:$0xff]  }
 0x141   : > { %2485 = vmatpush1.bf16.msra.mxu0 %v6275_v33  ;;  %v6363_v33 = vld [vmem:[%s7414_s16 + $0x4e8] ss:$16 sps:$4 sm:$0xff]  }
 0x142   : > { %2528 = vmatpush1.bf16.msra.mxu1 %v6278_v34  ;;  %2486 = vmatprep.subr.bf16.mxu0 %v6283_v35  ;;  %v6368_v34 = vld [vmem:[%s7414_s16 + $0x3cc] ss:$16 sps:$4 sm:$0xff]  }
 0x143   : > { %2529 = vmatprep.subr.bf16.mxu1 %v6286_v36  ;;  %v6371_v35 = vld [vmem:[%s7414_s16 + $0x4cc] ss:$16 sps:$4 sm:$0xff]   ;;  %v6366_v36 = vld [vmem:[%s7414_s16 + $0x3c8] ss:$16 sps:$4 sm:$0xff]  }
 0x145   : > { %2487 = vmatpush1.bf16.msra.mxu0 %v6281_v37  ;;  %v6369_v37 = vld [vmem:[%s7414_s16 + $0x4c8] ss:$16 sps:$4 sm:$0xff]  }
 0x146   : > { %2530 = vmatpush1.bf16.msra.mxu1 %v6284_v38  ;;  %2488 = vmatprep.subr.bf16.mxu0 %v6289_v60  ;;  %v6374_v38 = vld [vmem:[%s7414_s16 + $0x3ac] ss:$16 sps:$4 sm:$0xff]  }
 0x147   : > { %2531 = vmatprep.subr.bf16.mxu1 %v6292_v39  ;;  %v6377_v60 = vld [vmem:[%s7414_s16 + $0x4ac] ss:$16 sps:$4 sm:$0xff]   ;;  %v6372_v39 = vld [vmem:[%s7414_s16 + $0x3a8] ss:$16 sps:$4 sm:$0xff]  }
 0x149   : > { %2489 = vmatpush1.bf16.msra.mxu0 %v6287_v40  ;;  %v6380_v40 = vld [vmem:[%s7414_s16 + $0x38c] ss:$16 sps:$4 sm:$0xff]  }
 0x14a   : > { %2532 = vmatpush1.bf16.msra.mxu1 %v6290_v41  ;;  %2490 = vmatprep.subr.bf16.mxu0 %v6295_v42  ;;  %v6383_v41 = vld [vmem:[%s7414_s16 + $0x48c] ss:$16 sps:$4 sm:$0xff]   ;;  %v6378_v42 = vld [vmem:[%s7414_s16 + $0x388] ss:$16 sps:$4 sm:$0xff]  }
 0x14b   : > { %2533 = vmatprep.subr.bf16.mxu1 %v6298_v43  ;;  %v6381_v43 = vld [vmem:[%s7414_s16 + $0x488] ss:$16 sps:$4 sm:$0xff]  }
 0x14d   : > { %2491 = vmatpush1.bf16.msra.mxu0 %v6293_v44  ;;  %v6389_v44 = vld [vmem:[%s7414_s16 + $0x46c] ss:$16 sps:$4 sm:$0xff]  }
 0x14e   : > { %2534 = vmatpush1.bf16.msra.mxu1 %v6296_v47  ;;  %2492 = vmatprep.subr.bf16.mxu0 %v6301_v48  ;;  %v6384_v47 = vld [vmem:[%s7414_s16 + $0x368] ss:$16 sps:$4 sm:$0xff]  }
 0x14f   : > { %2535 = vmatprep.subr.bf16.mxu1 %v6304_v49  ;;  %v6387_v48 = vld [vmem:[%s7414_s16 + $0x468] ss:$16 sps:$4 sm:$0xff]   ;;  %v6392_v49 = vld [vmem:[%s7414_s16 + $0x34c] ss:$16 sps:$4 sm:$0xff]  }
 0x151   : > { %2493 = vmatpush1.bf16.msra.mxu0 %v6299_v50  ;;  %v6395_v50 = vld [vmem:[%s7414_s16 + $0x44c] ss:$16 sps:$4 sm:$0xff]  }
 0x152   : > { %2536 = vmatpush1.bf16.msra.mxu1 %v6302_v51  ;;  %2494 = vmatprep.subr.bf16.mxu0 %v6307_v52  ;;  %v6390_v51 = vld [vmem:[%s7414_s16 + $0x348] ss:$16 sps:$4 sm:$0xff]  }
 0x153   : > { %2537 = vmatprep.subr.bf16.mxu1 %v6310_v53  ;;  %v6393_v52 = vld [vmem:[%s7414_s16 + $0x448] ss:$16 sps:$4 sm:$0xff]   ;;  %v6398_v53 = vld [vmem:[%s7414_s16 + $0x32c] ss:$16 sps:$4 sm:$0xff]  }
 0x155   : > { %2495 = vmatpush1.bf16.msra.mxu0 %v6305_v54  ;;  %v6401_v54 = vld [vmem:[%s7414_s16 + $0x42c] ss:$16 sps:$4 sm:$0xff]  }
 0x156   : > { %2538 = vmatpush1.bf16.msra.mxu1 %v6308_v55  ;;  %2566 = vmatprep.subr.bf16.mxu0 %v6317_v57  ;;  %v6396_v55 = vld [vmem:[%s7414_s16 + $0x328] ss:$16 sps:$4 sm:$0xff]   ;;  %v6404_v57 = vld [vmem:[%s7414_s16 + $0x30c] ss:$16 sps:$4 sm:$0xff]  }
 0x157   : > { %2539 = vmatprep.subr.bf16.mxu1 %v6314_v56  ;;  %v6399_v56 = vld [vmem:[%s7414_s16 + $0x428] ss:$16 sps:$4 sm:$0xff]  }
 0x158   : > { %2513 = vmatmul.mubr.bf16.vlgmr.msra.gmra.mxu0 %v7632_v58 }
 0x159   : > { %2567 = vmatpush1.bf16.msra.mxu0 %v6315_v61  ;;  %2598 = vmatprep.mubr.bf16.mxu0 %v7492_v62  ;;  %v6338_v62 = vld [vmem:[%s7414_s16 + $0x16c] ss:$16 sps:$4 sm:$0xff]   ;;  %v6402_v61 = vld [vmem:[%s7414_s16 + $0x308] ss:$16 sps:$4 sm:$0xff]  }
 0x15a   : > { %2540 = vmatpush2.bf16.msra.mxu1 %v6312_v59  ;;  %2568 = vmatprep.subr.bf16.mxu0 %v6323_v0  ;;  %v6407_v59 = vld [vmem:[%s7414_s16 + $0x40c] ss:$16 sps:$4 sm:$0xff]  }
 0x15b   : > { %2541 = vmatprep.subr.bf16.mxu1 %v6320_v63  ;;  %v6405_v63 = vld [vmem:[%s7414_s16 + $0x408] ss:$16 sps:$4 sm:$0xff]   ;;  %v6410_v0 = vld [vmem:[%s7414_s16 + $0x5ec] ss:$16 sps:$4 sm:$0xff]  }
 0x15d   : > { %2569 = vmatpush1.bf16.msra.mxu0 %v6321_v2  ;;  %v6408_v2 = vld [vmem:[%s7414_s16 + $0x5e8] ss:$16 sps:$4 sm:$0xff]  }
 0x15e   : > { %2542 = vmatpush2.bf16.msra.mxu1 %v6318_v1  ;;  %2570 = vmatprep.subr.bf16.mxu0 %v6329_v4  ;;  %v6413_v1 = vld [vmem:[%s7414_s16 + $0x6ec] ss:$16 sps:$4 sm:$0xff]  }
 0x15f   : > { %2543 = vmatprep.subr.bf16.mxu1 %v6326_v3  ;;  %v6411_v3 = vld [vmem:[%s7414_s16 + $0x6e8] ss:$16 sps:$4 sm:$0xff]   ;;  %v6416_v4 = vld [vmem:[%s7414_s16 + $0x5cc] ss:$16 sps:$4 sm:$0xff]  }
 0x161   : > { %2571 = vmatpush1.bf16.msra.mxu0 %v6327_v6  ;;  %v6504_v6 = vld [vmem:[%s7412_s25 + $0x8] ss:$36 sps:$4 sm:$0xff]  }
 0x162   : > { %2544 = vmatpush2.bf16.msra.mxu1 %v6324_v5  ;;  %2572 = vmatprep.subr.bf16.mxu0 %v6335_v8  ;;  %v6419_v5 = vld [vmem:[%s7414_s16 + $0x6cc] ss:$16 sps:$4 sm:$0xff]   ;;  %v6417_v8 = vld [vmem:[%s7414_s16 + $0x6c8] ss:$16 sps:$4 sm:$0xff]  }
 0x163   : > { %2545 = vmatprep.subr.bf16.mxu1 %v6332_v7  ;;  %v6414_v7 = vld [vmem:[%s7414_s16 + $0x5c8] ss:$16 sps:$4 sm:$0xff]  }
 0x165   : > { %2573 = vmatpush1.bf16.msra.mxu0 %v6333_v10  ;;  %v6425_v10 = vld [vmem:[%s7414_s16 + $0x6ac] ss:$16 sps:$4 sm:$0xff]  }
 0x166   : > { %2546 = vmatpush2.bf16.msra.mxu1 %v6330_v9  ;;  %2574 = vmatprep.subr.bf16.mxu0 %v6341_v11  ;;  %v6422_v9 = vld [vmem:[%s7414_s16 + $0x5ac] ss:$16 sps:$4 sm:$0xff]   ;;  %v6423_v11 = vld [vmem:[%s7414_s16 + $0x6a8] ss:$16 sps:$4 sm:$0xff]  }
 0x167   : > { %2547 = vmatprep.subr.bf16.mxu1 %v6338_v62  ;;  %v6420_v62 = vld [vmem:[%s7414_s16 + $0x5a8] ss:$16 sps:$4 sm:$0xff]  }
 0x169   : > { %2575 = vmatpush1.bf16.msra.mxu0 %v6339_v13  ;;  %v6431_v13 = vld [vmem:[%s7414_s16 + $0x68c] ss:$16 sps:$4 sm:$0xff]  }
 0x16a   : > { %2548 = vmatpush2.bf16.msra.mxu1 %v6336_v12  ;;  %2576 = vmatprep.subr.bf16.mxu0 %v6347_v16  ;;  %v6428_v12 = vld [vmem:[%s7414_s16 + $0x58c] ss:$16 sps:$4 sm:$0xff]   ;;  %v6429_v16 = vld [vmem:[%s7414_s16 + $0x688] ss:$16 sps:$4 sm:$0xff]  }
 0x16b   : > { %2549 = vmatprep.subr.bf16.mxu1 %v6344_v14  ;;  %v6426_v14 = vld [vmem:[%s7414_s16 + $0x588] ss:$16 sps:$4 sm:$0xff]  }
 0x16d   : > { %2577 = vmatpush1.bf16.msra.mxu0 %v6345_v18  ;;  %v6432_v18 = vld [vmem:[%s7414_s16 + $0x568] ss:$16 sps:$4 sm:$0xff]  }
 0x16e   : > { %2550 = vmatpush2.bf16.msra.mxu1 %v6342_v17  ;;  %2578 = vmatprep.subr.bf16.mxu0 %v6353_v20  ;;  %v6437_v17 = vld [vmem:[%s7414_s16 + $0x66c] ss:$16 sps:$4 sm:$0xff]  }
 0x16f   : > { %2551 = vmatprep.subr.bf16.mxu1 %v6350_v19  ;;  %v6435_v19 = vld [vmem:[%s7414_s16 + $0x668] ss:$16 sps:$4 sm:$0xff]   ;;  %v6440_v20 = vld [vmem:[%s7414_s16 + $0x54c] ss:$16 sps:$4 sm:$0xff]  }
 0x171   : > { %2579 = vmatpush1.bf16.msra.mxu0 %v6351_v24  ;;  %v6438_v24 = vld [vmem:[%s7414_s16 + $0x548] ss:$16 sps:$4 sm:$0xff]  }
 0x172   : > { %2552 = vmatpush2.bf16.msra.mxu1 %v6348_v21  ;;  %2580 = vmatprep.subr.bf16.mxu0 %v6359_v26  ;;  %v6443_v21 = vld [vmem:[%s7414_s16 + $0x64c] ss:$16 sps:$4 sm:$0xff]  }
 0x173   : > { %2553 = vmatprep.subr.bf16.mxu1 %v6356_v25  ;;  %v6441_v25 = vld [vmem:[%s7414_s16 + $0x648] ss:$16 sps:$4 sm:$0xff]   ;;  %v6446_v26 = vld [vmem:[%s7414_s16 + $0x52c] ss:$16 sps:$4 sm:$0xff]  }
 0x175   : > { %2581 = vmatpush1.bf16.msra.mxu0 %v6357_v28  ;;  %v6444_v28 = vld [vmem:[%s7414_s16 + $0x528] ss:$16 sps:$4 sm:$0xff]  }
 0x176   : > { %2554 = vmatpush2.bf16.msra.mxu1 %v6354_v27  ;;  %2582 = vmatprep.subr.bf16.mxu0 %v6362_v29  ;;  %v6449_v27 = vld [vmem:[%s7414_s16 + $0x62c] ss:$16 sps:$4 sm:$0xff]   ;;  %v6447_v29 = vld [vmem:[%s7414_s16 + $0x628] ss:$16 sps:$4 sm:$0xff]  }
 0x177   : > { %2609 = vmatprep.subr.bf16.mxu1 %v6365_v30  ;;  %v6452_v30 = vld [vmem:[%s7414_s16 + $0x50c] ss:$16 sps:$4 sm:$0xff]  }
 0x179   : > { %2556 = vmatmul.mubr.bf16.vlgmr.msra.gmra.mxu1 %v7513_v15  ;;  %2583 = vmatpush2.bf16.msra.mxu0 %v6360_v31  ;;  %v6375_v15 = vld [vmem:[%s7414_s16 + $0x4a8] ss:$16 sps:$4 sm:$0xff]   ;;  %v6455_v31 = vld [vmem:[%s7414_s16 + $0x60c] ss:$16 sps:$4 sm:$0xff]  }
 0x17a   : > { %2610 = vmatpush1.bf16.msra.mxu1 %v6363_v33  ;;  %2584 = vmatprep.subr.bf16.mxu0 %v6368_v34  ;;  %v6450_v33 = vld [vmem:[%s7414_s16 + $0x508] ss:$16 sps:$4 sm:$0xff]  }
 0x17b   : > { %2611 = vmatprep.subr.bf16.mxu1 %v6371_v35  ;;  %2641 = vmatprep.mubr.bf16.mxu1 %v7546_v45  ;;  %v6386_v45 = vld [vmem:[%s7414_s16 + $0x36c] ss:$16 sps:$4 sm:$0xff]   ;;  %v6453_v34 = vld [vmem:[%s7414_s16 + $0x608] ss:$16 sps:$4 sm:$0xff]  }
 0x17c   : > { %v6458_v35 = vld [vmem:[%s7414_s16 + $0x7ec] ss:$16 sps:$4 sm:$0xff]  }
 0x17d   : > { %2585 = vmatpush2.bf16.msra.mxu0 %v6366_v36  ;;  %v6461_v36 = vld [vmem:[%s7414_s16 + $0x8ec] ss:$16 sps:$4 sm:$0xff]  }
 0x17e   : > { %2612 = vmatpush1.bf16.msra.mxu1 %v6369_v37  ;;  %2586 = vmatprep.subr.bf16.mxu0 %v6374_v38  ;;  %v6456_v37 = vld [vmem:[%s7414_s16 + $0x7e8] ss:$16 sps:$4 sm:$0xff]  }
 0x17f   : > { %2613 = vmatprep.subr.bf16.mxu1 %v6377_v60  ;;  %v6459_v38 = vld [vmem:[%s7414_s16 + $0x8e8] ss:$16 sps:$4 sm:$0xff]   ;;  %v6464_v60 = vld [vmem:[%s7414_s16 + $0x7cc] ss:$16 sps:$4 sm:$0xff]  }
 0x181   : > { %2587 = vmatpush2.bf16.msra.mxu0 %v6372_v39  ;;  %v6467_v39 = vld [vmem:[%s7414_s16 + $0x8cc] ss:$16 sps:$4 sm:$0xff]  }
 0x182   : > { %2614 = vmatpush1.bf16.msra.mxu1 %v6375_v15  ;;  %2588 = vmatprep.subr.bf16.mxu0 %v6380_v40  ;;  %v6462_v15 = vld [vmem:[%s7414_s16 + $0x7c8] ss:$16 sps:$4 sm:$0xff]  }
 0x183   : > { %2615 = vmatprep.subr.bf16.mxu1 %v6383_v41  ;;  %v6465_v40 = vld [vmem:[%s7414_s16 + $0x8c8] ss:$16 sps:$4 sm:$0xff]   ;;  %v6470_v41 = vld [vmem:[%s7414_s16 + $0x7ac] ss:$16 sps:$4 sm:$0xff]  }
 0x185   : > { %2589 = vmatpush2.bf16.msra.mxu0 %v6378_v42  ;;  %v6473_v42 = vld [vmem:[%s7414_s16 + $0x8ac] ss:$16 sps:$4 sm:$0xff]  }
 0x186   : > { %2616 = vmatpush1.bf16.msra.mxu1 %v6381_v43  ;;  %2590 = vmatprep.subr.bf16.mxu0 %v6386_v45  ;;  %v6468_v43 = vld [vmem:[%s7414_s16 + $0x7a8] ss:$16 sps:$4 sm:$0xff]   ;;  %v6476_v45 = vld [vmem:[%s7414_s16 + $0x78c] ss:$16 sps:$4 sm:$0xff]  }
 0x187   : > { %2617 = vmatprep.subr.bf16.mxu1 %v6389_v44  ;;  %v6479_v44 = vld [vmem:[%s7414_s16 + $0x88c] ss:$16 sps:$4 sm:$0xff]  }
 0x189   : > { %2591 = vmatpush2.bf16.msra.mxu0 %v6384_v47  ;;  %v6474_v47 = vld [vmem:[%s7414_s16 + $0x788] ss:$16 sps:$4 sm:$0xff]  }
 0x18a   : > { %2618 = vmatpush1.bf16.msra.mxu1 %v6387_v48  ;;  %2592 = vmatprep.subr.bf16.mxu0 %v6392_v49  ;;  %v6477_v48 = vld [vmem:[%s7414_s16 + $0x888] ss:$16 sps:$4 sm:$0xff]   ;;  %v6485_v49 = vld [vmem:[%s7414_s16 + $0x86c] ss:$16 sps:$4 sm:$0xff]  }
 0x18b   : > { %2619 = vmatprep.subr.bf16.mxu1 %v6395_v50  ;;  %v6480_v50 = vld [vmem:[%s7414_s16 + $0x768] ss:$16 sps:$4 sm:$0xff]  }
 0x18d   : > { %2593 = vmatpush2.bf16.msra.mxu0 %v6390_v51  ;;  %v6483_v51 = vld [vmem:[%s7414_s16 + $0x868] ss:$16 sps:$4 sm:$0xff]  }
 0x18e   : > { %2620 = vmatpush1.bf16.msra.mxu1 %v6393_v52  ;;  %2594 = vmatprep.subr.bf16.mxu0 %v6398_v53  ;;  %v6488_v52 = vld [vmem:[%s7414_s16 + $0x74c] ss:$16 sps:$4 sm:$0xff]  }
 0x18f   : > { %2621 = vmatprep.subr.bf16.mxu1 %v6401_v54  ;;  %v6491_v53 = vld [vmem:[%s7414_s16 + $0x84c] ss:$16 sps:$4 sm:$0xff]   ;;  %v6486_v54 = vld [vmem:[%s7414_s16 + $0x748] ss:$16 sps:$4 sm:$0xff]  }
 0x191   : > { %2595 = vmatpush2.bf16.msra.mxu0 %v6396_v55  ;;  %v6489_v55 = vld [vmem:[%s7414_s16 + $0x848] ss:$16 sps:$4 sm:$0xff]  }
 0x192   : > { %2622 = vmatpush1.bf16.msra.mxu1 %v6399_v56  ;;  %2596 = vmatprep.subr.bf16.mxu0 %v6404_v57  ;;  %v6494_v56 = vld [vmem:[%s7414_s16 + $0x72c] ss:$16 sps:$4 sm:$0xff]  }
 0x193   : > { %2623 = vmatprep.subr.bf16.mxu1 %v6407_v59  ;;  %v6497_v57 = vld [vmem:[%s7414_s16 + $0x82c] ss:$16 sps:$4 sm:$0xff]   ;;  %v6492_v59 = vld [vmem:[%s7414_s16 + $0x728] ss:$16 sps:$4 sm:$0xff]  }
 0x195   : > { %2597 = vmatpush2.bf16.msra.mxu0 %v6402_v61  ;;  %v6495_v61 = vld [vmem:[%s7414_s16 + $0x828] ss:$16 sps:$4 sm:$0xff]  }
 0x196   : > { %2624 = vmatpush1.bf16.msra.mxu1 %v6405_v63  ;;  %2652 = vmatprep.subr.bf16.mxu0 %v6413_v1  ;;  %v6500_v63 = vld [vmem:[%s7414_s16 + $0x70c] ss:$16 sps:$4 sm:$0xff]   ;;  %v6498_v1 = vld [vmem:[%s7414_s16 + $0x708] ss:$16 sps:$4 sm:$0xff]  }
 0x197   : > { %2625 = vmatprep.subr.bf16.mxu1 %v6410_v0  ;;  %v6503_v0 = vld [vmem:[%s7414_s16 + $0x80c] ss:$16 sps:$4 sm:$0xff]  }
 0x198   : > { %2599 = vmatmul.mubr.bf16.vlgmr.msra.gmra.mxu0 %v6504_v6 }
 0x199   : > { %2653 = vmatpush1.bf16.msra.mxu0 %v6411_v3  ;;  %2684 = vmatprep.mubr.bf16.mxu0 %v7549_v46  ;;  %v6434_v46 = vld [vmem:[%s7414_s16 + $0x56c] ss:$16 sps:$4 sm:$0xff]  }
 0x19a   : > { %2626 = vmatpush2.bf16.msra.mxu1 %v6408_v2  ;;  %2654 = vmatprep.subr.bf16.mxu0 %v6419_v5  ;;  %v6501_v2 = vld [vmem:[%s7414_s16 + $0x808] ss:$16 sps:$4 sm:$0xff]  }
 0x19b   : > { %2627 = vmatprep.subr.bf16.mxu1 %v6416_v4 }
 0x19d   : > { %2655 = vmatpush1.bf16.msra.mxu0 %v6417_v8 }
 0x19e   : > { %2628 = vmatpush2.bf16.msra.mxu1 %v6414_v7  ;;  %2656 = vmatprep.subr.bf16.mxu0 %v6425_v10 }
 0x19f   : > { %2629 = vmatprep.subr.bf16.mxu1 %v6422_v9 }
 0x1a1   : > { %2657 = vmatpush1.bf16.msra.mxu0 %v6423_v11 }
 0x1a2   : > { %2630 = vmatpush2.bf16.msra.mxu1 %v6420_v62  ;;  %2658 = vmatprep.subr.bf16.mxu0 %v6431_v13 }
 0x1a3   : > { %2631 = vmatprep.subr.bf16.mxu1 %v6428_v12 }
 0x1a5   : > { %2659 = vmatpush1.bf16.msra.mxu0 %v6429_v16 }
 0x1a6   : > { %2632 = vmatpush2.bf16.msra.mxu1 %v6426_v14  ;;  %2660 = vmatprep.subr.bf16.mxu0 %v6437_v17 }
 0x1a7   : > { %2633 = vmatprep.subr.bf16.mxu1 %v6434_v46 }
 0x1a9   : > { %2661 = vmatpush1.bf16.msra.mxu0 %v6435_v19 }
 0x1aa   : > { %2634 = vmatpush2.bf16.msra.mxu1 %v6432_v18  ;;  %2662 = vmatprep.subr.bf16.mxu0 %v6443_v21 }
 0x1ab   : > { %2635 = vmatprep.subr.bf16.mxu1 %v6440_v20 }
 0x1ad   : > { %2663 = vmatpush1.bf16.msra.mxu0 %v6441_v25  ;;  %v516_v25 = vld [vmem:[#allocation2 + $0x30] sm:$0xff] }
 0x1ae   : > { %2636 = vmatpush2.bf16.msra.mxu1 %v6438_v24  ;;  %2664 = vmatprep.subr.bf16.mxu0 %v6449_v27 }
 0x1af   : > { %2637 = vmatprep.subr.bf16.mxu1 %v6446_v26 }
 0x1b1   : > { %2665 = vmatpush1.bf16.msra.mxu0 %v6447_v29 }
 0x1b2   : > { %2638 = vmatpush2.bf16.msra.mxu1 %v6444_v28  ;;  %2666 = vmatprep.subr.bf16.mxu0 %v6455_v31 }
 0x1b3   : > { %2639 = vmatprep.subr.bf16.mxu1 %v6452_v30  ;;  %v517_v30 = vld [vmem:[#allocation2] sm:$0xff] }
 0x1b5   : > { %2667 = vmatpush1.bf16.msra.mxu0 %v6453_v34 }
 0x1b6   : > { %2640 = vmatpush2.bf16.msra.mxu1 %v6450_v33  ;;  %2668 = vmatprep.subr.bf16.mxu0 %v6458_v35 }
 0x1b7   : > { %2695 = vmatprep.subr.bf16.mxu1 %v6461_v36 }
 0x1b8   : > { %v2342_v3 = vpop.f32.mrf.mxu0 }
 0x1b9   : > { %2642 = vmatmul.mubr.bf16.vlgmr.msra.gmra.mxu1 %v7590_v22  ;;  %2669 = vmatpush2.bf16.msra.mxu0 %v6456_v37  ;;  %v6471_v22 = vld [vmem:[%s7414_s16 + $0x8a8] ss:$16 sps:$4 sm:$0xff]   ;;  %v2385_v5 = vpop.f32.mrf.mxu1 }
 0x1ba   : > { %2696 = vmatpush1.bf16.msra.mxu1 %v6459_v38  ;;  %2670 = vmatprep.subr.bf16.mxu0 %v6464_v60  ;;  %v2344_v4 = vpop.f32.mrf.mxu0  ;;  %v2386_v13 = vadd.f32 %v2385_v5, %v2342_v3  ;;  %v520_v37 = vld [vmem:[#allocation2 + $0x8] sm:$0xff]  ;;  %v518_v3 = vld [vmem:[#allocation2 + $0x18] sm:$0xff] }
 0x1bb   : > { %2697 = vmatprep.subr.bf16.mxu1 %v6467_v39  ;;  %2727 = vmatprep.mubr.bf16.mxu1 %v7196_v32  ;;  %v6482_v32 = vld [vmem:[%s7414_s16 + $0x76c] ss:$16 sps:$4 sm:$0xff]   ;;  %v2387_v7 = vpop.f32.mrf.mxu1 }
 0x1bc   : > { %v2346_v6 = vpop.f32.mrf.mxu0  ;;  %v2388_v16 = vadd.f32 %v2387_v7, %v2344_v4 }
 0x1bd   : > { %2671 = vmatpush2.bf16.msra.mxu0 %v6462_v15  ;;  %v2389_v9 = vpop.f32.mrf.mxu1 }
 0x1be   : > { %2698 = vmatpush1.bf16.msra.mxu1 %v6465_v40  ;;  %2672 = vmatprep.subr.bf16.mxu0 %v6470_v41  ;;  %v2348_v8 = vpop.f32.mrf.mxu0  ;;  %v2390_v18 = vadd.f32 %v2389_v9, %v2346_v6  ;;  %v521_v40 = vld [vmem:[#allocation2 + $0x20] sm:$0xff] }
 0x1bf   : > { %2699 = vmatprep.subr.bf16.mxu1 %v6473_v42  ;;  %v2391_v62 = vpop.f32.mrf.mxu1 }
 0x1c1   : > { %2673 = vmatpush2.bf16.msra.mxu0 %v6468_v43 }
 0x1c2   : > { %2700 = vmatpush1.bf16.msra.mxu1 %v6471_v22  ;;  %2674 = vmatprep.subr.bf16.mxu0 %v6476_v45 }
 0x1c3   : > { %2701 = vmatprep.subr.bf16.mxu1 %v6479_v44 }
 0x1c5   : > { %2675 = vmatpush2.bf16.msra.mxu0 %v6474_v47 }
 0x1c6   : > { %2702 = vmatpush1.bf16.msra.mxu1 %v6477_v48  ;;  %2676 = vmatprep.subr.bf16.mxu0 %v6482_v32 }
 0x1c7   : > { %2703 = vmatprep.subr.bf16.mxu1 %v6485_v49 }
 0x1c9   : > { %2677 = vmatpush2.bf16.msra.mxu0 %v6480_v50 }
 0x1ca   : > { %2704 = vmatpush1.bf16.msra.mxu1 %v6483_v51  ;;  %2678 = vmatprep.subr.bf16.mxu0 %v6488_v52 }
 0x1cb   : > { %2705 = vmatprep.subr.bf16.mxu1 %v6491_v53 }
 0x1cd   : > { %2679 = vmatpush2.bf16.msra.mxu0 %v6486_v54 }
 0x1ce   : > { %2706 = vmatpush1.bf16.msra.mxu1 %v6489_v55  ;;  %2680 = vmatprep.subr.bf16.mxu0 %v6494_v56 }
 0x1cf   : > { %2707 = vmatprep.subr.bf16.mxu1 %v6497_v57 }
 0x1d1   : > { %2681 = vmatpush2.bf16.msra.mxu0 %v6492_v59 }
 0x1d2   : > { %2708 = vmatpush1.bf16.msra.mxu1 %v6495_v61  ;;  %2682 = vmatprep.subr.bf16.mxu0 %v6500_v63 }
 0x1d3   : > { %2709 = vmatprep.subr.bf16.mxu1 %v6503_v0 }
 0x1d5   : > { %2683 = vmatpush2.bf16.msra.mxu0 %v6498_v1 }
 0x1d6   : > { %2710 = vmatpush1.bf16.msra.mxu1 %v6501_v2 }
 0x1d8   : > { %2685 = vmatmul.mubr.bf16.vlgmr.msra.gmra.mxu0 %v7593_v23 }
 0x1d9   : > { %2728 = vmatmul.mubr.bf16.vlgmr.msra.gmra.mxu1 %v7632_v58  ;;  %v2392_v58 = vadd.f32 %v2391_v62, %v2348_v8 }
 0x1f8   : > { %v2428_v10 = vpop.f32.mrf.mxu0 }
 0x1f9   : > { %v2471_v12 = vpop.f32.mrf.mxu1  ;;  %v2429_v46 = vadd.f32 %v2428_v10, %v2386_v13  ;;  %v519_v10 = vld [vmem:[#allocation2 + $0x10] sm:$0xff] }
 0x1fa   : > { %v2430_v11 = vpop.f32.mrf.mxu0 }
 0x1fb   : > { %v2473_v17 = vpop.f32.mrf.mxu1  ;;  %v2431_v23 = vadd.f32 %v2430_v11, %v2388_v16  ;;  %v2472_v20 = vadd.f32 %v2471_v12, %v2429_v46  ;;  %v522_v46 = vld [vmem:[#allocation2 + $0x28] sm:$0xff] }
 0x1fc   : > { %v2432_v14 = vpop.f32.mrf.mxu0 }
 0x1fd   : > { %v2433_v21 = vadd.f32 %v2432_v14, %v2390_v18  ;;  %v2475_v24 = vpop.f32.mrf.mxu1  ;;  %v2474_v27 = vadd.f32 %v2473_v17, %v2431_v23 }
 0x1fe   : > { %v2434_v19 = vpop.f32.mrf.mxu0 }
 0x1ff   : > { %v2435_v28 = vadd.f32 %v2434_v19, %v2392_v58  ;;  %v2476_v33 = vadd.f32 %v2475_v24, %v2433_v21  ;;  %v2477_v36 = vpop.f32.mrf.mxu1  ;;  %v523_v58 = vld [vmem:[#allocation2 + $0x38] sm:$0xff] }
 0x201   : > { %v2478_v60 = vadd.f32 %v2477_v36, %v2435_v28 }
 0x218   : > { %v2514_v26 = vpop.f32.mrf.mxu0 }
 0x219   : > { %v2515_v29 = vadd.f32 %v2514_v26, %v2472_v20 }
 0x21a   : > { %v2516_v31 = vpop.f32.mrf.mxu0 }
 0x21b   : > { %v2738_v34 = vadd.f32 %v2515_v29, %v516_v25  ;;  %v2517_v35 = vadd.f32 %v2516_v31, %v2474_v27 }
 0x21c   : > { %v2518_v38 = vpop.f32.mrf.mxu0 }
 0x21d   : > { %2746 = vst [vmem:[#allocation2 + $0x30] sm:$0xff] %v2738_v34  ;;  %v2739_v39 = vadd.f32 %v2517_v35, %v517_v30  ;;  %v2519_v15 = vadd.f32 %v2518_v38, %v2476_v33 }
 0x21e   : > { %v2520_v41 = vpop.f32.mrf.mxu0 }
 0x21f   : > { %2747 = vst [vmem:[#allocation2] sm:$0xff] %v2739_v39  ;;  %v2742_v42 = vadd.f32 %v2519_v15, %v520_v37  ;;  %v2521_v43 = vadd.f32 %v2520_v41, %v2478_v60 }
 0x221   : > { %2750 = vst [vmem:[#allocation2 + $0x8] sm:$0xff] %v2742_v42  ;;  %v2743_v22 = vadd.f32 %v2521_v43, %v521_v40 }
 0x223   : > { %2751 = vst [vmem:[#allocation2 + $0x20] sm:$0xff] %v2743_v22 }
 0x239   : > { %v2557_v45 = vpop.f32.mrf.mxu1 }
 0x23b   : > { %v2559_v44 = vpop.f32.mrf.mxu1 }
 0x23d   : > { %v2561_v47 = vpop.f32.mrf.mxu1 }
 0x23f   : > { %v2563_v48 = vpop.f32.mrf.mxu1 }
 0x258   : > { %v2600_v32 = vpop.f32.mrf.mxu0 }
 0x259   : > { %v2601_v54 = vadd.f32 %v2600_v32, %v2557_v45 }
 0x25a   : > { %v2602_v50 = vpop.f32.mrf.mxu0 }
 0x25b   : > { %v2603_v57 = vadd.f32 %v2602_v50, %v2559_v44 }
 0x25c   : > { %v2604_v52 = vpop.f32.mrf.mxu0 }
 0x25d   : > { %v2605_v0 = vadd.f32 %v2604_v52, %v2561_v47 }
 0x25e   : > { %v2606_v55 = vpop.f32.mrf.mxu0 }
 0x25f   : > { %v2607_v6 = vadd.f32 %v2606_v55, %v2563_v48 }
 0x279   : > { %v2643_v49 = vpop.f32.mrf.mxu1 }
 0x27a   : > { %v2644_v59 = vadd.f32 %v2643_v49, %v2601_v54 }
 0x27b   : > { %v2645_v51 = vpop.f32.mrf.mxu1 }
 0x27c   : > { %v2646_v1 = vadd.f32 %v2645_v51, %v2603_v57 }
 0x27d   : > { %v2647_v53 = vpop.f32.mrf.mxu1 }
 0x27e   : > { %v2648_v7 = vadd.f32 %v2647_v53, %v2605_v0 }
 0x27f   : > { %v2649_v56 = vpop.f32.mrf.mxu1 }
 0x280   : > { %v2650_v12 = vadd.f32 %v2649_v56, %v2607_v6 }
 0x298   : > { %v2686_v61 = vpop.f32.mrf.mxu0 }
 0x299   : > { %v2729_v63 = vpop.f32.mrf.mxu1  ;;  %v2687_v2 = vadd.f32 %v2686_v61, %v2644_v59 }
 0x29a   : > { %v2688_v4 = vpop.f32.mrf.mxu0 }
 0x29b   : > { %v2731_v5 = vpop.f32.mrf.mxu1  ;;  %v2730_v8 = vadd.f32 %v2729_v63, %v2687_v2  ;;  %v2689_v9 = vadd.f32 %v2688_v4, %v2646_v1 }
 0x29c   : > { %v2690_v62 = vpop.f32.mrf.mxu0 }
 0x29d   : > { %v2733_v11 = vpop.f32.mrf.mxu1  ;;  %v2740_v13 = vadd.f32 %v2730_v8, %v518_v3  ;;  %v2732_v14 = vadd.f32 %v2731_v5, %v2689_v9  ;;  %v2691_v16 = vadd.f32 %v2690_v62, %v2648_v7 }
 0x29e   : > { %v2692_v17 = vpop.f32.mrf.mxu0 }
 0x29f   : > { %2748 = vst [vmem:[#allocation2 + $0x18] sm:$0xff] %v2740_v13  ;;  %v2741_v18 = vadd.f32 %v2732_v14, %v519_v10  ;;  %v2734_v23 = vadd.f32 %v2733_v11, %v2691_v16  ;;  %v2693_v19 = vadd.f32 %v2692_v17, %v2650_v12  ;;  %v2735_v20 = vpop.f32.mrf.mxu1 }
 0x2a1   : > { %2749 = vst [vmem:[#allocation2 + $0x10] sm:$0xff] %v2741_v18  ;;  %v2744_v21 = vadd.f32 %v2734_v23, %v522_v46  ;;  %v2736_v24 = vadd.f32 %v2735_v20, %v2693_v19  ;;  %2757 = sbr.rel (%p5602_p1) target bundleno = 1491 (0x5d3), region = 122 }
 0x2a3   : > { %2752 = vst [vmem:[#allocation2 + $0x28] sm:$0xff] %v2744_v21  ;;  %v2745_v25 = vadd.f32 %v2736_v24, %v523_v58 }
 0x2a5   : > { %2753 = vst [vmem:[#allocation2 + $0x38] sm:$0xff] %v2745_v25 }
 0x2a6   : > { %v6505_v26 = vld [vmem:[#allocation8 + $0xe4] ss:$16 sps:$4 sm:$0xff]   ;;  %v6509_v28 = vld [vmem:[#allocation8 + $0xe0] ss:$16 sps:$4 sm:$0xff]   ;;  %v2768_v0 = vlaneseq  ;;  %v2766_v16 = vld [vmem:[#allocation6] sm:$0xf] }
 0x2a7   : > { %v6507_v27 = vld [vmem:[#allocation8 + $0x2e4] ss:$16 sps:$4 sm:$0xff]   ;;  %3614 = vmatprep.subr.bf16.mxu0 %v6505_v26  ;;  %v6510_v29 = vld [vmem:[#allocation8 + $0x2e0] ss:$16 sps:$4 sm:$0xff]  }
 0x2a8   : > { %3657 = vmatprep.subr.bf16.mxu1 %v6507_v27  ;;  %v6511_v30 = vld [vmem:[#allocation8 + $0xc4] ss:$16 sps:$4 sm:$0xff]   ;;  %3615 = vmatpush1.bf16.msra.mxu0 %v6509_v28  ;;  %v6515_v33 = vld [vmem:[#allocation8 + $0xc0] ss:$16 sps:$4 sm:$0xff]   ;;  %v2769_v5 = vshrl.u32 %v2768_v0, 7 }
 0x2a9   : > { %3658 = vmatpush1.bf16.msra.mxu1 %v6510_v29  ;;  %v6513_v31 = vld [vmem:[#allocation8 + $0x2c4] ss:$16 sps:$4 sm:$0xff]   ;;  %3616 = vmatprep.subr.bf16.mxu0 %v6511_v30  ;;  %v6516_v34 = vld [vmem:[#allocation8 + $0x2c0] ss:$16 sps:$4 sm:$0xff]  }
 0x2aa   : > { %3659 = vmatprep.subr.bf16.mxu1 %v6513_v31  ;;  %v6517_v35 = vld [vmem:[#allocation8 + $0xa4] ss:$16 sps:$4 sm:$0xff]   ;;  %v6521_v37 = vld [vmem:[#allocation8 + $0xa0] ss:$16 sps:$4 sm:$0xff]   ;;  %v7771_v10 = vsub.s32 1, %v2769_v5  ;;  %v7773_v62 = vsub.s32 3, %v2769_v5 }
 0x2ab   : > { %v6519_v36 = vld [vmem:[#allocation8 + $0x2a4] ss:$16 sps:$4 sm:$0xff]   ;;  %v6522_v38 = vld [vmem:[#allocation8 + $0x2a0] ss:$16 sps:$4 sm:$0xff]   ;;  %v7775_v12 = vsub.s32 0, %v2769_v5  ;;  %v7777_v17 = vsub.s32 2, %v2769_v5 }
 0x2ac   : > { %3617 = vmatpush1.bf16.msra.mxu0 %v6515_v33  ;;  %v6523_v60 = vld [vmem:[#allocation8 + $0x84] ss:$16 sps:$4 sm:$0xff]   ;;  %v6527_v15 = vld [vmem:[#allocation8 + $0x80] ss:$16 sps:$4 sm:$0xff]   ;;  %v2775_v19 = vrot.slane %v2766_v16, %v7771_v10  ;;  %v2783_v20 = vrot.slane %v2766_v16, %v7773_v62 }
 0x2ad   : > { %3660 = vmatpush1.bf16.msra.mxu1 %v6516_v34  ;;  %3618 = vmatprep.subr.bf16.mxu0 %v6517_v35  ;;  %v6525_v39 = vld [vmem:[#allocation8 + $0x284] ss:$16 sps:$4 sm:$0xff]   ;;  %v6528_v40 = vld [vmem:[#allocation8 + $0x280] ss:$16 sps:$4 sm:$0xff]   ;;  %v2771_v25 = vrot.slane %v2766_v16, %v7775_v12 }
 0x2ae   : > { %3661 = vmatprep.subr.bf16.mxu1 %v6519_v36  ;;  %v6529_v41 = vld [vmem:[#allocation8 + $0x64] ss:$16 sps:$4 sm:$0xff]   ;;  %v6533_v43 = vld [vmem:[#allocation8 + $0x60] ss:$16 sps:$4 sm:$0xff]  }
 0x2af   : > { %v6531_v42 = vld [vmem:[#allocation8 + $0x264] ss:$16 sps:$4 sm:$0xff]   ;;  %v6534_v22 = vld [vmem:[#allocation8 + $0x260] ss:$16 sps:$4 sm:$0xff]  }
 0x2b0   : > { %3619 = vmatpush1.bf16.msra.mxu0 %v6521_v37  ;;  %v6535_v45 = vld [vmem:[#allocation8 + $0x44] ss:$16 sps:$4 sm:$0xff]   ;;  %v6539_v47 = vld [vmem:[#allocation8 + $0x40] ss:$16 sps:$4 sm:$0xff]  }
 0x2b1   : > { %3662 = vmatpush1.bf16.msra.mxu1 %v6522_v38  ;;  %3620 = vmatprep.subr.bf16.mxu0 %v6523_v60  ;;  %v6537_v44 = vld [vmem:[#allocation8 + $0x244] ss:$16 sps:$4 sm:$0xff]   ;;  %v6540_v48 = vld [vmem:[#allocation8 + $0x240] ss:$16 sps:$4 sm:$0xff]   ;;  %v2779_v60 = vrot.slane %v2766_v16, %v7777_v17  ;;  %v6604_v16 = vld [vmem:[#allocation8 + $0x2e8] ss:$16 sps:$4 sm:$0xff]  }
 0x2b2   : > { %3663 = vmatprep.subr.bf16.mxu1 %v6525_v39  ;;  %v6541_v32 = vld [vmem:[#allocation8 + $0x24] ss:$16 sps:$4 sm:$0xff]   ;;  %v6545_v50 = vld [vmem:[#allocation8 + $0x20] ss:$16 sps:$4 sm:$0xff]  }
 0x2b3   : > { %v6543_v49 = vld [vmem:[#allocation8 + $0x224] ss:$16 sps:$4 sm:$0xff]   ;;  %v6546_v51 = vld [vmem:[#allocation8 + $0x220] ss:$16 sps:$4 sm:$0xff]  }
 0x2b4   : > { %3621 = vmatpush1.bf16.msra.mxu0 %v6527_v15  ;;  %v6547_v52 = vld [vmem:[#allocation8 + $0x4] ss:$16 sps:$4 sm:$0xff]   ;;  %v6551_v54 = vld [vmem:[#allocation8] ss:$16 sps:$4 sm:$0xff]  }
 0x2b5   : > { %3664 = vmatpush1.bf16.msra.mxu1 %v6528_v40  ;;  %3622 = vmatprep.subr.bf16.mxu0 %v6529_v41  ;;  %v6549_v53 = vld [vmem:[#allocation8 + $0x204] ss:$16 sps:$4 sm:$0xff]   ;;  %v6552_v55 = vld [vmem:[#allocation8 + $0x200] ss:$16 sps:$4 sm:$0xff]  }
 0x2b6   : > { %3665 = vmatprep.subr.bf16.mxu1 %v6531_v42  ;;  %v6553_v56 = vld [vmem:[#allocation8 + $0x1e4] ss:$16 sps:$4 sm:$0xff]   ;;  %v6557_v59 = vld [vmem:[#allocation8 + $0x1e0] ss:$16 sps:$4 sm:$0xff]  }
 0x2b7   : > { %v6555_v57 = vld [vmem:[#allocation8 + $0x3e4] ss:$16 sps:$4 sm:$0xff]   ;;  %v6558_v61 = vld [vmem:[#allocation8 + $0x3e0] ss:$16 sps:$4 sm:$0xff]  }
 0x2b8   : > { %3623 = vmatpush1.bf16.msra.mxu0 %v6533_v43  ;;  %v6559_v63 = vld [vmem:[#allocation8 + $0x1c4] ss:$16 sps:$4 sm:$0xff]   ;;  %v6563_v2 = vld [vmem:[#allocation8 + $0x1c0] ss:$16 sps:$4 sm:$0xff]  }
 0x2b9   : > { %3666 = vmatpush1.bf16.msra.mxu1 %v6534_v22  ;;  %3624 = vmatprep.subr.bf16.mxu0 %v6535_v45  ;;  %v6561_v1 = vld [vmem:[#allocation8 + $0x3c4] ss:$16 sps:$4 sm:$0xff]   ;;  %v6564_v3 = vld [vmem:[#allocation8 + $0x3c0] ss:$16 sps:$4 sm:$0xff]  }
 0x2ba   : > { %3667 = vmatprep.subr.bf16.mxu1 %v6537_v44  ;;  %v6565_v4 = vld [vmem:[#allocation8 + $0x1a4] ss:$16 sps:$4 sm:$0xff]   ;;  %v6569_v7 = vld [vmem:[#allocation8 + $0x1a0] ss:$16 sps:$4 sm:$0xff]  }
 0x2bb   : > { %v6567_v6 = vld [vmem:[#allocation8 + $0x3a4] ss:$16 sps:$4 sm:$0xff]   ;;  %v6570_v8 = vld [vmem:[#allocation8 + $0x3a0] ss:$16 sps:$4 sm:$0xff]  }
 0x2bc   : > { %3625 = vmatpush1.bf16.msra.mxu0 %v6539_v47  ;;  %v6571_v9 = vld [vmem:[#allocation8 + $0x184] ss:$16 sps:$4 sm:$0xff]   ;;  %v2759_v13 = vld [vmem:[#allocation2] sm:$0xff]  ;;  %v2761_v46 = vld [vmem:[#allocation2 + $0x10] sm:$0xff] }
 0x2bd   : > { %3668 = vmatpush1.bf16.msra.mxu1 %v6540_v48  ;;  %3626 = vmatprep.subr.bf16.mxu0 %v6541_v32  ;;  %v6573_v11 = vld [vmem:[#allocation8 + $0x384] ss:$16 sps:$4 sm:$0xff]   ;;  %v2763_v14 = vld [vmem:[#allocation2 + $0x20] sm:$0xff]  ;;  %v2789_v28 = vadd.f32 %v2775_v19, %v2759_v13  ;;  %v2791_v30 = vadd.f32 %v2783_v20, %v2761_v46  ;;  %v2758_v33 = vld [vmem:[#allocation2 + $0x30] sm:$0xff] }
 0x2be   : > { %3669 = vmatprep.subr.bf16.mxu1 %v6543_v49  ;;  %v6575_v18 = vld [vmem:[#allocation8 + $0x180] ss:$16 sps:$4 sm:$0xff]   ;;  %v2765_v58 = vld [vmem:[#allocation2 + $0x38] sm:$0xff]  ;;  %v2793_v29 = vadd.f32 %v2775_v19, %v2763_v14  ;;  %v2762_v34 = vld [vmem:[#allocation2 + $0x8] sm:$0xff]  ;;  %v2788_v22 = vadd.f32 %v2771_v25, %v2758_v33 }
 0x2bf   : > { %v6576_v23 = vld [vmem:[#allocation8 + $0x380] ss:$16 sps:$4 sm:$0xff]   ;;  %v6577_v21 = vld [vmem:[#allocation8 + $0x164] ss:$16 sps:$4 sm:$0xff]   ;;  %v2795_v31 = vadd.f32 %v2783_v20, %v2765_v58  ;;  %vm2797_vm0 = vcmp.gt.f32.partialorder %v2789_v28, 0.0  ;;  %vm2799_vm2 = vcmp.gt.f32.partialorder %v2791_v30, 0.0  ;;  %v2792_v32 = vadd.f32 %v2771_v25, %v2762_v34 }
 0x2c0   : > { %3627 = vmatpush1.bf16.msra.mxu0 %v6545_v50  ;;  %v6579_v24 = vld [vmem:[#allocation8 + $0x364] ss:$16 sps:$4 sm:$0xff]   ;;  %v6581_v26 = vld [vmem:[#allocation8 + $0x160] ss:$16 sps:$4 sm:$0xff]   ;;  %vm2801_vm1 = vcmp.gt.f32.partialorder %v2793_v29, 0.0  ;;  %vm2796_vm4 = vcmp.gt.f32.partialorder %v2788_v22, 0.0 }
 0x2c1   : > { %3670 = vmatpush1.bf16.msra.mxu1 %v6546_v51  ;;  %3628 = vmatprep.subr.bf16.mxu0 %v6547_v52  ;;  %v6582_v27 = vld [vmem:[#allocation8 + $0x360] ss:$16 sps:$4 sm:$0xff]   ;;  %v6583_v35 = vld [vmem:[#allocation8 + $0x144] ss:$16 sps:$4 sm:$0xff]   ;;  %v2805_v39 = vmul.f32 0.2, %v2789_v28 }
 0x2c2   : > { %3671 = vmatprep.subr.bf16.mxu1 %v6549_v53  ;;  %v6585_v36 = vld [vmem:[#allocation8 + $0x344] ss:$16 sps:$4 sm:$0xff]   ;;  %v2809_v15 = vmul.f32 0.2, %v2793_v29  ;;  %vm2803_vm3 = vcmp.gt.f32.partialorder %v2795_v31, 0.0  ;;  %vm2800_vm5 = vcmp.gt.f32.partialorder %v2792_v32, 0.0 }
 0x2c3   : > { %v2760_v37 = vld [vmem:[#allocation2 + $0x18] sm:$0xff]  ;;  %v2764_v38 = vld [vmem:[#allocation2 + $0x28] sm:$0xff]  ;;  %v2807_v40 = vmul.f32 0.2, %v2791_v30  ;;  %v2811_v41 = vmul.f32 0.2, %v2795_v31  ;;  %v2813_v42 = vsel %vm2797_vm0, %v2789_v28, %v2805_v39 }
 0x2c4   : > { %3629 = vmatpush1.bf16.msra.mxu0 %v6551_v54  ;;  %v2817_v43 = vsel %vm2801_vm1, %v2793_v29, %v2809_v15  ;;  %v6587_v45 = vld [vmem:[#allocation8 + $0x140] ss:$16 sps:$4 sm:$0xff]   ;;  %v2790_v51 = vadd.f32 %v2779_v60, %v2760_v37  ;;  %v2794_v52 = vadd.f32 %v2779_v60, %v2764_v38  ;;  %v6589_v53 = vld [vmem:[#allocation8 + $0x124] ss:$16 sps:$4 sm:$0xff]   ;;  %v6601_v14 = vld [vmem:[#allocation8 + $0xe8] ss:$16 sps:$4 sm:$0xff]  }
 0x2c5   : > { %3672 = vmatpush1.bf16.msra.mxu1 %v6552_v55  ;;  %3630 = vmatprep.subr.bf16.mxu0 %v6553_v56  ;;  %v7783_v44 = vpack.c.bf16 %v2817_v43, %v2813_v42  ;;  %v2815_v47 = vsel %vm2799_vm2, %v2791_v30, %v2807_v40  ;;  %v2819_v48 = vsel %vm2803_vm3, %v2795_v31, %v2811_v41  ;;  %v6588_v49 = vld [vmem:[#allocation8 + $0x340] ss:$16 sps:$4 sm:$0xff]   ;;  %v6591_v54 = vld [vmem:[#allocation8 + $0x324] ss:$16 sps:$4 sm:$0xff]   ;;  %v6609_v46 = vld [vmem:[#allocation8 + $0xcc] ss:$16 sps:$4 sm:$0xff]  }
 0x2c6   : > { %3673 = vmatprep.subr.bf16.mxu1 %v6555_v57  ;;  %v2823_v50 = vpack.c.bf16 %v2819_v48, %v2815_v47  ;;  %v6593_v55 = vld [vmem:[#allocation8 + $0x120] ss:$16 sps:$4 sm:$0xff]   ;;  %v6595_v57 = vld [vmem:[#allocation8 + $0x104] ss:$16 sps:$4 sm:$0xff]   ;;  %v2806_v0 = vmul.f32 0.2, %v2790_v51 }
 0x2c7   : > { %v6594_v56 = vld [vmem:[#allocation8 + $0x320] ss:$16 sps:$4 sm:$0xff]   ;;  %3646 = vmatprep.mubr.bf16.mxu0 %v7783_v44  ;;  %vm2798_vm6 = vcmp.gt.f32.partialorder %v2790_v51, 0.0  ;;  %vm2802_vm7 = vcmp.gt.f32.partialorder %v2794_v52, 0.0  ;;  %v6610_v19 = vld [vmem:[#allocation8 + $0x2c8] ss:$16 sps:$4 sm:$0xff]  }
 0x2c8   : > { %3631 = vmatpush2.bf16.msra.mxu0 %v6557_v59  ;;  %3689 = vmatprep.mubr.bf16.mxu1 %v2823_v50  ;;  %v6597_v59 = vld [vmem:[#allocation8 + $0x304] ss:$16 sps:$4 sm:$0xff]   ;;  %v6615_v58 = vld [vmem:[#allocation8 + $0xac] ss:$16 sps:$4 sm:$0xff]   ;;  %v6622_v28 = vld [vmem:[#allocation8 + $0x288] ss:$16 sps:$4 sm:$0xff]  }
 0x2c9   : > { %3674 = vmatpush2.bf16.msra.mxu1 %v6558_v61  ;;  %3632 = vmatprep.subr.bf16.mxu0 %v6559_v63  ;;  %v2804_v61 = vmul.f32 0.2, %v2788_v22  ;;  %v2808_v63 = vmul.f32 0.2, %v2792_v32  ;;  %v6618_v20 = vld [vmem:[#allocation8 + $0x2ac] ss:$16 sps:$4 sm:$0xff]  }
 0x2ca   : > { %3675 = vmatprep.subr.bf16.mxu1 %v6561_v1  ;;  %v2810_v1 = vmul.f32 0.2, %v2794_v52  ;;  %v6621_v25 = vld [vmem:[#allocation8 + $0x8c] ss:$16 sps:$4 sm:$0xff]   ;;  %v6625_v31 = vld [vmem:[#allocation8 + $0x68] ss:$16 sps:$4 sm:$0xff]  }
 0x2cb   : > { %v2816_v5 = vsel %vm2800_vm5, %v2792_v32, %v2808_v63  ;;  %v6627_v29 = vld [vmem:[#allocation8 + $0x6c] ss:$16 sps:$4 sm:$0xff]   ;;  %v6628_v33 = vld [vmem:[#allocation8 + $0x268] ss:$16 sps:$4 sm:$0xff]  }
 0x2cc   : > { %3633 = vmatpush2.bf16.msra.mxu0 %v6563_v2  ;;  %v6599_v2 = vld [vmem:[#allocation8 + $0x100] ss:$16 sps:$4 sm:$0xff]   ;;  %v6630_v30 = vld [vmem:[#allocation8 + $0x26c] ss:$16 sps:$4 sm:$0xff]   ;;  %v6634_v37 = vld [vmem:[#allocation8 + $0x248] ss:$16 sps:$4 sm:$0xff]  }
 0x2cd   : > { %3676 = vmatpush2.bf16.msra.mxu1 %v6564_v3  ;;  %3634 = vmatprep.subr.bf16.mxu0 %v6565_v4  ;;  %v2812_v3 = vsel %vm2796_vm4, %v2788_v22, %v2804_v61  ;;  %v6600_v4 = vld [vmem:[#allocation8 + $0x300] ss:$16 sps:$4 sm:$0xff]   ;;  %v6633_v34 = vld [vmem:[#allocation8 + $0x4c] ss:$16 sps:$4 sm:$0xff]   ;;  %v6637_v39 = vld [vmem:[#allocation8 + $0x28] ss:$16 sps:$4 sm:$0xff]  }
 0x2ce   : > { %3677 = vmatprep.subr.bf16.mxu1 %v6567_v6  ;;  %v2814_v6 = vsel %vm2798_vm6, %v2790_v51, %v2806_v0  ;;  %v6639_v38 = vld [vmem:[#allocation8 + $0x2c] ss:$16 sps:$4 sm:$0xff]   ;;  %v6640_v15 = vld [vmem:[#allocation8 + $0x228] ss:$16 sps:$4 sm:$0xff]  }
 0x2cf   : > { %v6642_v60 = vld [vmem:[#allocation8 + $0x22c] ss:$16 sps:$4 sm:$0xff]   ;;  %v6643_v42 = vld [vmem:[#allocation8 + $0x8] ss:$16 sps:$4 sm:$0xff]  }
 0x2d0   : > { %3635 = vmatpush2.bf16.msra.mxu0 %v6569_v7  ;;  %v2818_v7 = vsel %vm2802_vm7, %v2794_v52, %v2810_v1  ;;  %v6645_v40 = vld [vmem:[#allocation8 + $0xc] ss:$16 sps:$4 sm:$0xff]   ;;  %v6646_v43 = vld [vmem:[#allocation8 + $0x208] ss:$16 sps:$4 sm:$0xff]  }
 0x2d1   : > { %3678 = vmatpush2.bf16.msra.mxu1 %v6570_v8  ;;  %3636 = vmatprep.subr.bf16.mxu0 %v6571_v9  ;;  %v6603_v8 = vld [vmem:[#allocation8 + $0xec] ss:$16 sps:$4 sm:$0xff]   ;;  %v7788_v13 = vpack.c.bf16 %v2818_v7, %v2814_v6  ;;  %v6652_v47 = vld [vmem:[#allocation8 + $0x3e8] ss:$16 sps:$4 sm:$0xff]  }
 0x2d2   : > { %3679 = vmatprep.subr.bf16.mxu1 %v6573_v11  ;;  %v6606_v9 = vld [vmem:[#allocation8 + $0x2ec] ss:$16 sps:$4 sm:$0xff]   ;;  %v7786_v11 = vpack.c.bf16 %v2816_v5, %v2812_v3  ;;  %v6673_v0 = vld [vmem:[#allocation8 + $0x168] ss:$16 sps:$4 sm:$0xff]  }
 0x2d3   : > { %v6648_v41 = vld [vmem:[#allocation8 + $0x20c] ss:$16 sps:$4 sm:$0xff]   ;;  %v6676_v1 = vld [vmem:[#allocation8 + $0x368] ss:$16 sps:$4 sm:$0xff]  }
 0x2d4   : > { %3637 = vmatpush2.bf16.msra.mxu0 %v6575_v18  ;;  %v6612_v18 = vld [vmem:[#allocation8 + $0x2cc] ss:$16 sps:$4 sm:$0xff]   ;;  %v6682_v5 = vld [vmem:[#allocation8 + $0x348] ss:$16 sps:$4 sm:$0xff]  }
 0x2d5   : > { %3680 = vmatpush2.bf16.msra.mxu1 %v6576_v23  ;;  %3638 = vmatprep.subr.bf16.mxu0 %v6577_v21  ;;  %v6607_v23 = vld [vmem:[#allocation8 + $0xc8] ss:$16 sps:$4 sm:$0xff]   ;;  %v6651_v22 = vld [vmem:[#allocation8 + $0x1ec] ss:$16 sps:$4 sm:$0xff]  }
 0x2d6   : > { %3681 = vmatprep.subr.bf16.mxu1 %v6579_v24  ;;  %v6613_v21 = vld [vmem:[#allocation8 + $0xa8] ss:$16 sps:$4 sm:$0xff]   ;;  %v6657_v48 = vld [vmem:[#allocation8 + $0x1cc] ss:$16 sps:$4 sm:$0xff]  }
 0x2d7   : > { %v6616_v24 = vld [vmem:[#allocation8 + $0x2a8] ss:$16 sps:$4 sm:$0xff]   ;;  %v6660_v32 = vld [vmem:[#allocation8 + $0x3cc] ss:$16 sps:$4 sm:$0xff]  }
 0x2d8   : > { %3639 = vmatpush2.bf16.msra.mxu0 %v6581_v26  ;;  %v6624_v26 = vld [vmem:[#allocation8 + $0x28c] ss:$16 sps:$4 sm:$0xff]  }
 0x2d9   : > { %3682 = vmatpush2.bf16.msra.mxu1 %v6582_v27  ;;  %3640 = vmatprep.subr.bf16.mxu0 %v6583_v35  ;;  %v6619_v27 = vld [vmem:[#allocation8 + $0x88] ss:$16 sps:$4 sm:$0xff]   ;;  %v6636_v35 = vld [vmem:[#allocation8 + $0x24c] ss:$16 sps:$4 sm:$0xff]  }
 0x2da   : > { %3683 = vmatprep.subr.bf16.mxu1 %v6585_v36  ;;  %v6631_v36 = vld [vmem:[#allocation8 + $0x48] ss:$16 sps:$4 sm:$0xff]   ;;  %v6663_v51 = vld [vmem:[#allocation8 + $0x1ac] ss:$16 sps:$4 sm:$0xff]  }
 0x2db   : > { %v6666_v52 = vld [vmem:[#allocation8 + $0x3ac] ss:$16 sps:$4 sm:$0xff]  }
 0x2dc   : > { %3641 = vmatpush2.bf16.msra.mxu0 %v6587_v45  ;;  %v6654_v45 = vld [vmem:[#allocation8 + $0x3ec] ss:$16 sps:$4 sm:$0xff]  }
 0x2dd   : > { %3684 = vmatpush2.bf16.msra.mxu1 %v6588_v49  ;;  %3642 = vmatprep.subr.bf16.mxu0 %v6589_v53  ;;  %v6655_v49 = vld [vmem:[#allocation8 + $0x1c8] ss:$16 sps:$4 sm:$0xff]   ;;  %v6675_v61 = vld [vmem:[#allocation8 + $0x16c] ss:$16 sps:$4 sm:$0xff]  }
 0x2de   : > { %3685 = vmatprep.subr.bf16.mxu1 %v6591_v54  ;;  %v6661_v53 = vld [vmem:[#allocation8 + $0x1a8] ss:$16 sps:$4 sm:$0xff]   ;;  %v6678_v63 = vld [vmem:[#allocation8 + $0x36c] ss:$16 sps:$4 sm:$0xff]  }
 0x2df   : > { %v6664_v54 = vld [vmem:[#allocation8 + $0x3a8] ss:$16 sps:$4 sm:$0xff]   ;;  %v6684_v3 = vld [vmem:[#allocation8 + $0x34c] ss:$16 sps:$4 sm:$0xff]  }
 0x2e0   : > { %3643 = vmatpush2.bf16.msra.mxu0 %v6593_v55  ;;  %v6669_v55 = vld [vmem:[#allocation8 + $0x18c] ss:$16 sps:$4 sm:$0xff]  }
 0x2e1   : > { %3686 = vmatpush2.bf16.msra.mxu1 %v6594_v56  ;;  %3644 = vmatprep.subr.bf16.mxu0 %v6595_v57  ;;  %v6672_v56 = vld [vmem:[#allocation8 + $0x38c] ss:$16 sps:$4 sm:$0xff]   ;;  %v6667_v57 = vld [vmem:[#allocation8 + $0x188] ss:$16 sps:$4 sm:$0xff]  }
 0x2e2   : > { %3687 = vmatprep.subr.bf16.mxu1 %v6597_v59  ;;  %v6670_v59 = vld [vmem:[#allocation8 + $0x388] ss:$16 sps:$4 sm:$0xff]   ;;  %v6687_v6 = vld [vmem:[#allocation8 + $0x12c] ss:$16 sps:$4 sm:$0xff]  }
 0x2e3   : > { %v6690_v7 = vld [vmem:[#allocation8 + $0x32c] ss:$16 sps:$4 sm:$0xff]  }
 0x2e4   : > { %3645 = vmatpush2.bf16.msra.mxu0 %v6599_v2  ;;  %v6681_v2 = vld [vmem:[#allocation8 + $0x14c] ss:$16 sps:$4 sm:$0xff]  }
 0x2e5   : > { %3688 = vmatpush2.bf16.msra.mxu1 %v6600_v4  ;;  %3700 = vmatprep.subr.bf16.mxu0 %v6603_v8  ;;  %v6679_v4 = vld [vmem:[#allocation8 + $0x148] ss:$16 sps:$4 sm:$0xff]  }
 0x2e6   : > { %3743 = vmatprep.subr.bf16.mxu1 %v6606_v9  ;;  %v6685_v8 = vld [vmem:[#allocation8 + $0x128] ss:$16 sps:$4 sm:$0xff]  }
 0x2e7   : > { %3647 = vmatmul.mubr.bf16.vlgmr.msra.gmra.mxu0 %v7786_v11  ;;  %v6688_v9 = vld [vmem:[#allocation8 + $0x328] ss:$16 sps:$4 sm:$0xff]  }
 0x2e8   : > { %3690 = vmatmul.mubr.bf16.vlgmr.msra.gmra.mxu1 %v7788_v13  ;;  %3701 = vmatpush1.bf16.msra.mxu0 %v6601_v14  ;;  %v6693_v14 = vld [vmem:[#allocation8 + $0x10c] ss:$16 sps:$4 sm:$0xff]  }
 0x2e9   : > { %3744 = vmatpush1.bf16.msra.mxu1 %v6604_v16  ;;  %3702 = vmatprep.subr.bf16.mxu0 %v6609_v46  ;;  %v6696_v16 = vld [vmem:[#allocation8 + $0x30c] ss:$16 sps:$4 sm:$0xff]   ;;  %v6691_v46 = vld [vmem:[#allocation8 + $0x108] ss:$16 sps:$4 sm:$0xff]  }
 0x2ea   : > { %3745 = vmatprep.subr.bf16.mxu1 %v6612_v18  ;;  %3732 = vmatprep.mubr.bf16.mxu0 %v7783_v44  ;;  %v6649_v44 = vld [vmem:[#allocation8 + $0x1e8] ss:$16 sps:$4 sm:$0xff]  }
 0x2eb   : > { %3775 = vmatprep.mubr.bf16.mxu1 %v2823_v50  ;;  %v6658_v50 = vld [vmem:[#allocation8 + $0x3c8] ss:$16 sps:$4 sm:$0xff]  }
 0x2ec   : > { %3703 = vmatpush1.bf16.msra.mxu0 %v6607_v23  ;;  %v6694_v18 = vld [vmem:[#allocation8 + $0x308] ss:$16 sps:$4 sm:$0xff]  }
 0x2ed   : > { %3746 = vmatpush1.bf16.msra.mxu1 %v6610_v19  ;;  %3704 = vmatprep.subr.bf16.mxu0 %v6615_v58  ;;  %v6699_v23 = vld [vmem:[#allocation11 + $0xe4] ss:$16 sps:$4 sm:$0xff]   ;;  %v6697_v19 = vld [vmem:[#allocation11 + $0xe0] ss:$16 sps:$4 sm:$0xff]  }
 0x2ee   : > { %3747 = vmatprep.subr.bf16.mxu1 %v6618_v20  ;;  %v6702_v58 = vld [vmem:[#allocation11 + $0xc4] ss:$16 sps:$4 sm:$0xff]   ;;  %v6700_v20 = vld [vmem:[#allocation11 + $0xc0] ss:$16 sps:$4 sm:$0xff]  }
 0x2f0   : > { %3705 = vmatpush1.bf16.msra.mxu0 %v6613_v21  ;;  %v6705_v21 = vld [vmem:[#allocation11 + $0xa4] ss:$16 sps:$4 sm:$0xff]  }
 0x2f1   : > { %3748 = vmatpush1.bf16.msra.mxu1 %v6616_v24  ;;  %3706 = vmatprep.subr.bf16.mxu0 %v6621_v25  ;;  %v6703_v24 = vld [vmem:[#allocation11 + $0xa0] ss:$16 sps:$4 sm:$0xff]   ;;  %v6708_v25 = vld [vmem:[#allocation11 + $0x84] ss:$16 sps:$4 sm:$0xff]  }
 0x2f2   : > { %3749 = vmatprep.subr.bf16.mxu1 %v6624_v26  ;;  %v6706_v26 = vld [vmem:[#allocation11 + $0x80] ss:$16 sps:$4 sm:$0xff]  }
 0x2f4   : > { %3707 = vmatpush1.bf16.msra.mxu0 %v6619_v27  ;;  %v6711_v27 = vld [vmem:[#allocation11 + $0x64] ss:$16 sps:$4 sm:$0xff]  }
 0x2f5   : > { %3750 = vmatpush1.bf16.msra.mxu1 %v6622_v28  ;;  %3708 = vmatprep.subr.bf16.mxu0 %v6627_v29  ;;  %v6709_v28 = vld [vmem:[#allocation11 + $0x60] ss:$16 sps:$4 sm:$0xff]   ;;  %v6714_v29 = vld [vmem:[#allocation11 + $0x44] ss:$16 sps:$4 sm:$0xff]  }
 0x2f6   : > { %3751 = vmatprep.subr.bf16.mxu1 %v6630_v30  ;;  %v6712_v30 = vld [vmem:[#allocation11 + $0x40] ss:$16 sps:$4 sm:$0xff]  }
 0x2f8   : > { %3709 = vmatpush1.bf16.msra.mxu0 %v6625_v31  ;;  %v6747_v31 = vld [vmem:[#allocation11 + $0x2e4] ss:$16 sps:$4 sm:$0xff]  }
 0x2f9   : > { %3752 = vmatpush1.bf16.msra.mxu1 %v6628_v33  ;;  %3710 = vmatprep.subr.bf16.mxu0 %v6633_v34  ;;  %v6745_v33 = vld [vmem:[#allocation11 + $0x2e0] ss:$16 sps:$4 sm:$0xff]  }
 0x2fa   : > { %3753 = vmatprep.subr.bf16.mxu1 %v6636_v35  ;;  %v6751_v34 = vld [vmem:[#allocation11 + $0x2c0] ss:$16 sps:$4 sm:$0xff]   ;;  %v6753_v35 = vld [vmem:[#allocation11 + $0x2c4] ss:$16 sps:$4 sm:$0xff]  }
 0x2fc   : > { %3711 = vmatpush1.bf16.msra.mxu0 %v6631_v36  ;;  %v6720_v36 = vld [vmem:[#allocation11 + $0x4] ss:$16 sps:$4 sm:$0xff]  }
 0x2fd   : > { %3754 = vmatpush1.bf16.msra.mxu1 %v6634_v37  ;;  %3712 = vmatprep.subr.bf16.mxu0 %v6639_v38  ;;  %v6718_v37 = vld [vmem:[#allocation11] ss:$16 sps:$4 sm:$0xff]  }
 0x2fe   : > { %3755 = vmatprep.subr.bf16.mxu1 %v6642_v60  ;;  %v6757_v38 = vld [vmem:[#allocation11 + $0x2a0] ss:$16 sps:$4 sm:$0xff]   ;;  %v6759_v60 = vld [vmem:[#allocation11 + $0x2a4] ss:$16 sps:$4 sm:$0xff]  }
 0x300   : > { %3713 = vmatpush1.bf16.msra.mxu0 %v6637_v39  ;;  %v6723_v39 = vld [vmem:[#allocation11 + $0x1e4] ss:$16 sps:$4 sm:$0xff]  }
 0x301   : > { %3756 = vmatpush1.bf16.msra.mxu1 %v6640_v15  ;;  %3714 = vmatprep.subr.bf16.mxu0 %v6645_v40  ;;  %v6721_v15 = vld [vmem:[#allocation11 + $0x1e0] ss:$16 sps:$4 sm:$0xff]  }
 0x302   : > { %3757 = vmatprep.subr.bf16.mxu1 %v6648_v41  ;;  %v6763_v40 = vld [vmem:[#allocation11 + $0x280] ss:$16 sps:$4 sm:$0xff]   ;;  %v6765_v41 = vld [vmem:[#allocation11 + $0x284] ss:$16 sps:$4 sm:$0xff]  }
 0x304   : > { %3715 = vmatpush1.bf16.msra.mxu0 %v6643_v42  ;;  %v6726_v42 = vld [vmem:[#allocation11 + $0x1c4] ss:$16 sps:$4 sm:$0xff]  }
 0x305   : > { %3758 = vmatpush1.bf16.msra.mxu1 %v6646_v43  ;;  %3716 = vmatprep.subr.bf16.mxu0 %v6651_v22  ;;  %v6724_v43 = vld [vmem:[#allocation11 + $0x1c0] ss:$16 sps:$4 sm:$0xff]  }
 0x306   : > { %3759 = vmatprep.subr.bf16.mxu1 %v6654_v45  ;;  %v6769_v22 = vld [vmem:[#allocation11 + $0x260] ss:$16 sps:$4 sm:$0xff]   ;;  %v6771_v45 = vld [vmem:[#allocation11 + $0x264] ss:$16 sps:$4 sm:$0xff]  }
 0x308   : > { %3717 = vmatpush2.bf16.msra.mxu0 %v6649_v44  ;;  %v6729_v44 = vld [vmem:[#allocation11 + $0x1a4] ss:$16 sps:$4 sm:$0xff]  }
 0x309   : > { %3760 = vmatpush2.bf16.msra.mxu1 %v6652_v47  ;;  %3718 = vmatprep.subr.bf16.mxu0 %v6657_v48  ;;  %v6727_v47 = vld [vmem:[#allocation11 + $0x1a0] ss:$16 sps:$4 sm:$0xff]  }
 0x30a   : > { %3761 = vmatprep.subr.bf16.mxu1 %v6660_v32  ;;  %v6775_v48 = vld [vmem:[#allocation11 + $0x240] ss:$16 sps:$4 sm:$0xff]   ;;  %v6777_v32 = vld [vmem:[#allocation11 + $0x244] ss:$16 sps:$4 sm:$0xff]  }
 0x30c   : > { %3719 = vmatpush2.bf16.msra.mxu0 %v6655_v49  ;;  %v6732_v49 = vld [vmem:[#allocation11 + $0x184] ss:$16 sps:$4 sm:$0xff]  }
 0x30d   : > { %3762 = vmatpush2.bf16.msra.mxu1 %v6658_v50  ;;  %3720 = vmatprep.subr.bf16.mxu0 %v6663_v51  ;;  %v6730_v50 = vld [vmem:[#allocation11 + $0x180] ss:$16 sps:$4 sm:$0xff]  }
 0x30e   : > { %3763 = vmatprep.subr.bf16.mxu1 %v6666_v52  ;;  %v6781_v51 = vld [vmem:[#allocation11 + $0x220] ss:$16 sps:$4 sm:$0xff]   ;;  %v6783_v52 = vld [vmem:[#allocation11 + $0x224] ss:$16 sps:$4 sm:$0xff]  }
 0x310   : > { %3721 = vmatpush2.bf16.msra.mxu0 %v6661_v53  ;;  %v6735_v53 = vld [vmem:[#allocation11 + $0x164] ss:$16 sps:$4 sm:$0xff]  }
 0x311   : > { %3764 = vmatpush2.bf16.msra.mxu1 %v6664_v54  ;;  %3722 = vmatprep.subr.bf16.mxu0 %v6669_v55  ;;  %v6787_v54 = vld [vmem:[#allocation11 + $0x200] ss:$16 sps:$4 sm:$0xff]   ;;  %v6789_v55 = vld [vmem:[#allocation11 + $0x204] ss:$16 sps:$4 sm:$0xff]  }
 0x312   : > { %3765 = vmatprep.subr.bf16.mxu1 %v6672_v56  ;;  %v6733_v56 = vld [vmem:[#allocation11 + $0x160] ss:$16 sps:$4 sm:$0xff]  }
 0x314   : > { %3723 = vmatpush2.bf16.msra.mxu0 %v6667_v57  ;;  %v6738_v57 = vld [vmem:[#allocation11 + $0x144] ss:$16 sps:$4 sm:$0xff]  }
 0x315   : > { %3766 = vmatpush2.bf16.msra.mxu1 %v6670_v59  ;;  %3724 = vmatprep.subr.bf16.mxu0 %v6675_v61  ;;  %v6793_v59 = vld [vmem:[#allocation11 + $0x3e0] ss:$16 sps:$4 sm:$0xff]   ;;  %v6795_v61 = vld [vmem:[#allocation11 + $0x3e4] ss:$16 sps:$4 sm:$0xff]  }
 0x316   : > { %3767 = vmatprep.subr.bf16.mxu1 %v6678_v63  ;;  %v6736_v63 = vld [vmem:[#allocation11 + $0x140] ss:$16 sps:$4 sm:$0xff]  }
 0x318   : > { %3725 = vmatpush2.bf16.msra.mxu0 %v6673_v0  ;;  %v6741_v0 = vld [vmem:[#allocation11 + $0x124] ss:$16 sps:$4 sm:$0xff]  }
 0x319   : > { %3768 = vmatpush2.bf16.msra.mxu1 %v6676_v1  ;;  %3726 = vmatprep.subr.bf16.mxu0 %v6681_v2  ;;  %v6799_v1 = vld [vmem:[#allocation11 + $0x3c0] ss:$16 sps:$4 sm:$0xff]   ;;  %v6801_v2 = vld [vmem:[#allocation11 + $0x3c4] ss:$16 sps:$4 sm:$0xff]  }
 0x31a   : > { %3769 = vmatprep.subr.bf16.mxu1 %v6684_v3  ;;  %v6739_v3 = vld [vmem:[#allocation11 + $0x120] ss:$16 sps:$4 sm:$0xff]  }
 0x31c   : > { %3727 = vmatpush2.bf16.msra.mxu0 %v6679_v4  ;;  %v6744_v4 = vld [vmem:[#allocation11 + $0x104] ss:$16 sps:$4 sm:$0xff]  }
 0x31d   : > { %3770 = vmatpush2.bf16.msra.mxu1 %v6682_v5  ;;  %3728 = vmatprep.subr.bf16.mxu0 %v6687_v6  ;;  %v6805_v5 = vld [vmem:[#allocation11 + $0x3a0] ss:$16 sps:$4 sm:$0xff]   ;;  %v6807_v6 = vld [vmem:[#allocation11 + $0x3a4] ss:$16 sps:$4 sm:$0xff]  }
 0x31e   : > { %3771 = vmatprep.subr.bf16.mxu1 %v6690_v7  ;;  %v6742_v7 = vld [vmem:[#allocation11 + $0x100] ss:$16 sps:$4 sm:$0xff]  }
 0x320   : > { %3729 = vmatpush2.bf16.msra.mxu0 %v6685_v8  ;;  %v6750_v8 = vld [vmem:[#allocation11 + $0xec] ss:$16 sps:$4 sm:$0xff]  }
 0x321   : > { %3772 = vmatpush2.bf16.msra.mxu1 %v6688_v9  ;;  %3730 = vmatprep.subr.bf16.mxu0 %v6693_v14  ;;  %v6811_v9 = vld [vmem:[#allocation11 + $0x380] ss:$16 sps:$4 sm:$0xff]   ;;  %v6813_v14 = vld [vmem:[#allocation11 + $0x384] ss:$16 sps:$4 sm:$0xff]  }
 0x322   : > { %3773 = vmatprep.subr.bf16.mxu1 %v6696_v16  ;;  %v6819_v16 = vld [vmem:[#allocation11 + $0x364] ss:$16 sps:$4 sm:$0xff]  }
 0x324   : > { %3731 = vmatpush2.bf16.msra.mxu0 %v6691_v46  ;;  %v6817_v46 = vld [vmem:[#allocation11 + $0x360] ss:$16 sps:$4 sm:$0xff]  }
 0x325   : > { %3774 = vmatpush2.bf16.msra.mxu1 %v6694_v18  ;;  %4604 = vmatprep.subr.bf16.mxu0 %v6699_v23  ;;  %v6825_v18 = vld [vmem:[#allocation11 + $0x344] ss:$16 sps:$4 sm:$0xff]   ;;  %v6823_v23 = vld [vmem:[#allocation11 + $0x340] ss:$16 sps:$4 sm:$0xff]  }
 0x326   : > { %4647 = vmatprep.subr.bf16.mxu1 %v6747_v31 }
 0x327   : > { %3733 = vmatmul.mubr.bf16.vlgmr.msra.gmra.mxu0 %v7786_v11  ;;  %v6717_v11 = vld [vmem:[#allocation11 + $0x24] ss:$16 sps:$4 sm:$0xff]  }
 0x328   : > { %3776 = vmatmul.mubr.bf16.vlgmr.msra.gmra.mxu1 %v7788_v13  ;;  %4605 = vmatpush1.bf16.msra.mxu0 %v6697_v19  ;;  %v6715_v13 = vld [vmem:[#allocation11 + $0x20] ss:$16 sps:$4 sm:$0xff]   ;;  %v6831_v19 = vld [vmem:[#allocation11 + $0x324] ss:$16 sps:$4 sm:$0xff]  }
 0x329   : > { %4606 = vmatprep.subr.bf16.mxu0 %v6702_v58  ;;  %4648 = vmatpush1.bf16.msra.mxu1 %v6745_v33  ;;  %v6829_v58 = vld [vmem:[#allocation11 + $0x320] ss:$16 sps:$4 sm:$0xff]  }
 0x32a   : > { %4649 = vmatprep.subr.bf16.mxu1 %v6753_v35 }
 0x32c   : > { %4607 = vmatpush1.bf16.msra.mxu0 %v6700_v20  ;;  %v6835_v20 = vld [vmem:[#allocation11 + $0x300] ss:$16 sps:$4 sm:$0xff]  }
 0x32d   : > { %4608 = vmatprep.subr.bf16.mxu0 %v6705_v21  ;;  %4650 = vmatpush1.bf16.msra.mxu1 %v6751_v34  ;;  %v6837_v21 = vld [vmem:[#allocation11 + $0x304] ss:$16 sps:$4 sm:$0xff]  }
 0x32e   : > { %4651 = vmatprep.subr.bf16.mxu1 %v6759_v60 }
 0x330   : > { %4609 = vmatpush1.bf16.msra.mxu0 %v6703_v24  ;;  %v6843_v24 = vld [vmem:[#allocation11 + $0x2ec] ss:$16 sps:$4 sm:$0xff]  }
 0x331   : > { %4610 = vmatprep.subr.bf16.mxu0 %v6708_v25  ;;  %4652 = vmatpush1.bf16.msra.mxu1 %v6757_v38  ;;  %v7795_v25 = vld [vmem:[#allocation9] sm:$0xf] }
 0x332   : > { %4653 = vmatprep.subr.bf16.mxu1 %v6765_v41 }
 0x334   : > { %4611 = vmatpush1.bf16.msra.mxu0 %v6706_v26  ;;  %v2957_v26 = vrot.slane %v7795_v25, %v7775_v12 }
 0x335   : > { %4612 = vmatprep.subr.bf16.mxu0 %v6711_v27  ;;  %4654 = vmatpush1.bf16.msra.mxu1 %v6763_v40  ;;  %v2961_v27 = vrot.slane %v7795_v25, %v7771_v10 }
 0x336   : > { %4655 = vmatprep.subr.bf16.mxu1 %v6771_v45 }
 0x338   : > { %4613 = vmatpush1.bf16.msra.mxu0 %v6709_v28 }
 0x339   : > { %4614 = vmatprep.subr.bf16.mxu0 %v6714_v29  ;;  %4656 = vmatpush1.bf16.msra.mxu1 %v6769_v22 }
 0x33a   : > { %4657 = vmatprep.subr.bf16.mxu1 %v6777_v32 }
 0x33c   : > { %4615 = vmatpush1.bf16.msra.mxu0 %v6712_v30 }
 0x33d   : > { %4616 = vmatprep.subr.bf16.mxu0 %v6717_v11  ;;  %4658 = vmatpush1.bf16.msra.mxu1 %v6775_v48 }
 0x33e   : > { %4659 = vmatprep.subr.bf16.mxu1 %v6783_v52  ;;  %v6754_v52 = vld [vmem:[#allocation11 + $0xc8] ss:$16 sps:$4 sm:$0xff]  }
 0x340   : > { %4617 = vmatpush1.bf16.msra.mxu0 %v6715_v13 }
 0x341   : > { %4618 = vmatprep.subr.bf16.mxu0 %v6720_v36  ;;  %4660 = vmatpush1.bf16.msra.mxu1 %v6781_v51  ;;  %v6756_v51 = vld [vmem:[#allocation11 + $0xcc] ss:$16 sps:$4 sm:$0xff]  }
 0x342   : > { %4661 = vmatprep.subr.bf16.mxu1 %v6789_v55  ;;  %v6768_v55 = vld [vmem:[#allocation11 + $0x8c] ss:$16 sps:$4 sm:$0xff]  }
 0x344   : > { %4619 = vmatpush1.bf16.msra.mxu0 %v6718_v37 }
 0x345   : > { %4620 = vmatprep.subr.bf16.mxu0 %v6723_v39  ;;  %4662 = vmatpush1.bf16.msra.mxu1 %v6787_v54  ;;  %v6760_v54 = vld [vmem:[#allocation11 + $0xa8] ss:$16 sps:$4 sm:$0xff]  }
 0x346   : > { %4663 = vmatprep.subr.bf16.mxu1 %v6795_v61  ;;  %v6780_v61 = vld [vmem:[#allocation11 + $0x4c] ss:$16 sps:$4 sm:$0xff]  }
 0x348   : > { %4621 = vmatpush2.bf16.msra.mxu0 %v6721_v15 }
 0x349   : > { %4622 = vmatprep.subr.bf16.mxu0 %v6726_v42  ;;  %4664 = vmatpush2.bf16.msra.mxu1 %v6793_v59  ;;  %v6772_v59 = vld [vmem:[#allocation11 + $0x68] ss:$16 sps:$4 sm:$0xff]  }
 0x34a   : > { %4665 = vmatprep.subr.bf16.mxu1 %v6801_v2  ;;  %v6792_v2 = vld [vmem:[#allocation11 + $0xc] ss:$16 sps:$4 sm:$0xff]  }
 0x34c   : > { %4623 = vmatpush2.bf16.msra.mxu0 %v6724_v43 }
 0x34d   : > { %4624 = vmatprep.subr.bf16.mxu0 %v6729_v44  ;;  %4666 = vmatpush2.bf16.msra.mxu1 %v6799_v1  ;;  %v6784_v1 = vld [vmem:[#allocation11 + $0x28] ss:$16 sps:$4 sm:$0xff]  }
 0x34e   : > { %4667 = vmatprep.subr.bf16.mxu1 %v6807_v6  ;;  %v6804_v6 = vld [vmem:[#allocation11 + $0x1cc] ss:$16 sps:$4 sm:$0xff]  }
 0x350   : > { %4625 = vmatpush2.bf16.msra.mxu0 %v6727_v47 }
 0x351   : > { %4626 = vmatprep.subr.bf16.mxu0 %v6732_v49  ;;  %4668 = vmatpush2.bf16.msra.mxu1 %v6805_v5  ;;  %v6748_v49 = vld [vmem:[#allocation11 + $0xe8] ss:$16 sps:$4 sm:$0xff]  }
 0x352   : > { %4669 = vmatprep.subr.bf16.mxu1 %v6813_v14  ;;  %v6796_v5 = vld [vmem:[#allocation11 + $0x1e8] ss:$16 sps:$4 sm:$0xff]   ;;  %v6816_v14 = vld [vmem:[#allocation11 + $0x18c] ss:$16 sps:$4 sm:$0xff]  }
 0x354   : > { %4627 = vmatpush2.bf16.msra.mxu0 %v6730_v50 }
 0x355   : > { %4628 = vmatprep.subr.bf16.mxu0 %v6735_v53  ;;  %4670 = vmatpush2.bf16.msra.mxu1 %v6811_v9  ;;  %v6762_v53 = vld [vmem:[#allocation11 + $0xac] ss:$16 sps:$4 sm:$0xff]   ;;  %v6808_v9 = vld [vmem:[#allocation11 + $0x1a8] ss:$16 sps:$4 sm:$0xff]  }
 0x356   : > { %4671 = vmatprep.subr.bf16.mxu1 %v6819_v16  ;;  %v6814_v16 = vld [vmem:[#allocation11 + $0x188] ss:$16 sps:$4 sm:$0xff]  }
 0x358   : > { %4629 = vmatpush2.bf16.msra.mxu0 %v6733_v56  ;;  %v6766_v56 = vld [vmem:[#allocation11 + $0x88] ss:$16 sps:$4 sm:$0xff]  }
 0x359   : > { %4630 = vmatprep.subr.bf16.mxu0 %v6738_v57  ;;  %4672 = vmatpush2.bf16.msra.mxu1 %v6817_v46  ;;  %v6774_v57 = vld [vmem:[#allocation11 + $0x6c] ss:$16 sps:$4 sm:$0xff]  }
 0x35a   : > { %4673 = vmatprep.subr.bf16.mxu1 %v6825_v18  ;;  %v6822_v46 = vld [vmem:[#allocation11 + $0x16c] ss:$16 sps:$4 sm:$0xff]   ;;  %v2965_v18 = vrot.slane %v7795_v25, %v7777_v17 }
 0x35c   : > { %4631 = vmatpush2.bf16.msra.mxu0 %v6736_v63  ;;  %v6778_v63 = vld [vmem:[#allocation11 + $0x48] ss:$16 sps:$4 sm:$0xff]  }
 0x35d   : > { %4632 = vmatprep.subr.bf16.mxu0 %v6741_v0  ;;  %4674 = vmatpush2.bf16.msra.mxu1 %v6823_v23  ;;  %v6786_v0 = vld [vmem:[#allocation11 + $0x2c] ss:$16 sps:$4 sm:$0xff]   ;;  %v6820_v23 = vld [vmem:[#allocation11 + $0x168] ss:$16 sps:$4 sm:$0xff]  }
 0x35e   : > { %4675 = vmatprep.subr.bf16.mxu1 %v6831_v19  ;;  %v2969_v19 = vrot.slane %v7795_v25, %v7773_v62  ;;  %v6832_v25 = vld [vmem:[#allocation11 + $0x128] ss:$16 sps:$4 sm:$0xff]  }
 0x360   : > { %4633 = vmatpush2.bf16.msra.mxu0 %v6739_v3  ;;  %v6790_v3 = vld [vmem:[#allocation11 + $0x8] ss:$16 sps:$4 sm:$0xff]  }
 0x361   : > { %4634 = vmatprep.subr.bf16.mxu0 %v6744_v4  ;;  %4676 = vmatpush2.bf16.msra.mxu1 %v6829_v58  ;;  %v6798_v4 = vld [vmem:[#allocation11 + $0x1ec] ss:$16 sps:$4 sm:$0xff]  }
 0x362   : > { %4677 = vmatprep.subr.bf16.mxu1 %v6837_v21  ;;  %v6828_v21 = vld [vmem:[#allocation11 + $0x14c] ss:$16 sps:$4 sm:$0xff]  }
 0x364   : > { %4635 = vmatpush2.bf16.msra.mxu0 %v6742_v7  ;;  %v6802_v7 = vld [vmem:[#allocation11 + $0x1c8] ss:$16 sps:$4 sm:$0xff]  }
 0x365   : > { %4690 = vmatprep.subr.bf16.mxu0 %v6750_v8  ;;  %4678 = vmatpush2.bf16.msra.mxu1 %v6835_v20  ;;  %v6810_v8 = vld [vmem:[#allocation11 + $0x1ac] ss:$16 sps:$4 sm:$0xff]  }
 0x366   : > { %4733 = vmatprep.subr.bf16.mxu1 %v6843_v24 }
 0x3a7   : > { %v3648_v28 = vpop.f32.mrf.mxu0 }
 0x3a8   : > { %v3691_v29 = vpop.f32.mrf.mxu1  ;;  %v3649_v11 = vadd.f32 %v3648_v28, %v2957_v26 }
 0x3a9   : > { %v3650_v30 = vpop.f32.mrf.mxu0 }
 0x3aa   : > { %v3693_v31 = vpop.f32.mrf.mxu1  ;;  %v3651_v33 = vadd.f32 %v3650_v30, %v2961_v27  ;;  %v3692_v38 = vadd.f32 %v3691_v29, %v3649_v11  ;;  %v6826_v29 = vld [vmem:[#allocation11 + $0x148] ss:$16 sps:$4 sm:$0xff]  }
 0x3ab   : > { %v3652_v13 = vpop.f32.mrf.mxu0 }
 0x3ac   : > { %v3653_v34 = vadd.f32 %v3652_v13, %v2957_v26  ;;  %v3695_v35 = vpop.f32.mrf.mxu1  ;;  %v3694_v36 = vadd.f32 %v3693_v31, %v3651_v33  ;;  %v3794_v43 = vmul.f32 0.2, %v3692_v38  ;;  %vm3786_vm10 = vcmp.gt.f32.partialorder %v3692_v38, 0.0  ;;  %v6834_v31 = vld [vmem:[#allocation11 + $0x12c] ss:$16 sps:$4 sm:$0xff]  }
 0x3ad   : > { %v3654_v37 = vpop.f32.mrf.mxu0 }
 0x3ae   : > { %v3696_v60 = vadd.f32 %v3695_v35, %v3653_v34  ;;  %v3655_v39 = vadd.f32 %v3654_v37, %v2961_v27  ;;  %v3697_v40 = vpop.f32.mrf.mxu1  ;;  %v3795_v41 = vmul.f32 0.2, %v3694_v36  ;;  %vm3787_vm9 = vcmp.gt.f32.partialorder %v3694_v36, 0.0 }
 0x3af   : > { %v3802_v48 = vsel %vm3786_vm10, %v3692_v38, %v3794_v43  ;;  %v6840_v38 = vld [vmem:[#allocation11 + $0x10c] ss:$16 sps:$4 sm:$0xff]  }
 0x3b0   : > { %v3798_v15 = vmul.f32 0.2, %v3696_v60  ;;  %vm3790_vm8 = vcmp.gt.f32.partialorder %v3696_v60, 0.0  ;;  %v3698_v42 = vadd.f32 %v3697_v40, %v3655_v39  ;;  %v3803_v44 = vsel %vm3787_vm9, %v3694_v36, %v3795_v41 }
 0x3b2   : > { %vm3791_vm11 = vcmp.gt.f32.partialorder %v3698_v42, 0.0  ;;  %v3799_v22 = vmul.f32 0.2, %v3698_v42  ;;  %v3806_v45 = vsel %vm3790_vm8, %v3696_v60, %v3798_v15 }
 0x3b3   : > { %v7801_v50 = vpack.c.bf16 %v3806_v45, %v3802_v48 }
 0x3b4   : > { %v3807_v47 = vsel %vm3791_vm11, %v3698_v42, %v3799_v22  ;;  %v6838_v42 = vld [vmem:[#allocation11 + $0x108] ss:$16 sps:$4 sm:$0xff]  }
 0x3b5   : > { %v3811_v32 = vpack.c.bf16 %v3807_v47, %v3803_v44 }
 0x3b7   : > { %4636 = vmatprep.mubr.bf16.mxu0 %v3811_v32 }
 0x3b8   : > { %4637 = vmatmul.mubr.bf16.vlgmr.msra.gmra.mxu0 %v7801_v50 }
 0x3b9   : > { %4691 = vmatpush1.bf16.msra.mxu0 %v6748_v49  ;;  %4722 = vmatprep.mubr.bf16.mxu0 %v3811_v32  ;;  %v6841_v32 = vld [vmem:[#allocation11 + $0x2e8] ss:$16 sps:$4 sm:$0xff]  }
 0x3ba   : > { %4692 = vmatprep.subr.bf16.mxu0 %v6756_v51  ;;  %v6846_v51 = vld [vmem:[#allocation11 + $0x2cc] ss:$16 sps:$4 sm:$0xff]  }
 0x3bd   : > { %4693 = vmatpush1.bf16.msra.mxu0 %v6754_v52  ;;  %v6844_v52 = vld [vmem:[#allocation11 + $0x2c8] ss:$16 sps:$4 sm:$0xff]  }
 0x3be   : > { %4694 = vmatprep.subr.bf16.mxu0 %v6762_v53  ;;  %v6849_v53 = vld [vmem:[#allocation11 + $0x2ac] ss:$16 sps:$4 sm:$0xff]  }
 0x3c1   : > { %4695 = vmatpush1.bf16.msra.mxu0 %v6760_v54  ;;  %v6847_v54 = vld [vmem:[#allocation11 + $0x2a8] ss:$16 sps:$4 sm:$0xff]  }
 0x3c2   : > { %4696 = vmatprep.subr.bf16.mxu0 %v6768_v55  ;;  %v6852_v55 = vld [vmem:[#allocation11 + $0x28c] ss:$16 sps:$4 sm:$0xff]  }
 0x3c5   : > { %4697 = vmatpush1.bf16.msra.mxu0 %v6766_v56  ;;  %v6889_v56 = vld [vmem:[#allocation14 + $0x78] sm:$0xff]  }
 0x3c6   : > { %4698 = vmatprep.subr.bf16.mxu0 %v6774_v57  ;;  %v6890_v57 = vld [vmem:[#allocation14 + $0x38] sm:$0xff]  }
 0x3c9   : > { %4699 = vmatpush1.bf16.msra.mxu0 %v6772_v59  ;;  %v6891_v59 = vld [vmem:[#allocation14 + $0x70] sm:$0xff]  }
 0x3ca   : > { %4700 = vmatprep.subr.bf16.mxu0 %v6780_v61  ;;  %v6850_v61 = vld [vmem:[#allocation11 + $0x288] ss:$16 sps:$4 sm:$0xff]  }
 0x3cd   : > { %4701 = vmatpush1.bf16.msra.mxu0 %v6778_v63  ;;  %v6855_v63 = vld [vmem:[#allocation11 + $0x26c] ss:$16 sps:$4 sm:$0xff]  }
 0x3ce   : > { %4702 = vmatprep.subr.bf16.mxu0 %v6786_v0  ;;  %v6893_v0 = vld [vmem:[#allocation14 + $0x68] sm:$0xff]  }
 0x3d1   : > { %4703 = vmatpush1.bf16.msra.mxu0 %v6784_v1  ;;  %v6853_v1 = vld [vmem:[#allocation11 + $0x268] ss:$16 sps:$4 sm:$0xff]  }
 0x3d2   : > { %4704 = vmatprep.subr.bf16.mxu0 %v6792_v2  ;;  %v6858_v2 = vld [vmem:[#allocation11 + $0x24c] ss:$16 sps:$4 sm:$0xff]  }
 0x3d5   : > { %4705 = vmatpush1.bf16.msra.mxu0 %v6790_v3  ;;  %v6894_v3 = vld [vmem:[#allocation14 + $0x28] sm:$0xff]  }
 0x3d6   : > { %4706 = vmatprep.subr.bf16.mxu0 %v6798_v4  ;;  %v6895_v4 = vld [vmem:[#allocation14 + $0x60] sm:$0xff]  }
 0x3d9   : > { %4707 = vmatpush2.bf16.msra.mxu0 %v6796_v5  ;;  %v6856_v5 = vld [vmem:[#allocation11 + $0x248] ss:$16 sps:$4 sm:$0xff]  }
 0x3da   : > { %4708 = vmatprep.subr.bf16.mxu0 %v6804_v6  ;;  %v6861_v6 = vld [vmem:[#allocation11 + $0x22c] ss:$16 sps:$4 sm:$0xff]  }
 0x3dd   : > { %4709 = vmatpush2.bf16.msra.mxu0 %v6802_v7  ;;  %v6896_v7 = vld [vmem:[#allocation14 + $0x20] sm:$0xff]  }
 0x3de   : > { %4710 = vmatprep.subr.bf16.mxu0 %v6810_v8  ;;  %v6859_v8 = vld [vmem:[#allocation11 + $0x228] ss:$16 sps:$4 sm:$0xff]  }
 0x3e1   : > { %4711 = vmatpush2.bf16.msra.mxu0 %v6808_v9  ;;  %v6864_v9 = vld [vmem:[#allocation11 + $0x20c] ss:$16 sps:$4 sm:$0xff]  }
 0x3e2   : > { %4712 = vmatprep.subr.bf16.mxu0 %v6816_v14  ;;  %v6862_v14 = vld [vmem:[#allocation11 + $0x208] ss:$16 sps:$4 sm:$0xff]  }
 0x3e5   : > { %4713 = vmatpush2.bf16.msra.mxu0 %v6814_v16  ;;  %v6867_v16 = vld [vmem:[#allocation11 + $0x3ec] ss:$16 sps:$4 sm:$0xff]  }
 0x3e6   : > { %4714 = vmatprep.subr.bf16.mxu0 %v6822_v46  ;;  %v6865_v46 = vld [vmem:[#allocation11 + $0x3e8] ss:$16 sps:$4 sm:$0xff]  }
 0x3e7   : > { %v3734_v58 = vpop.f32.mrf.mxu0 }
 0x3e8   : > { %v3777_v20 = vpop.f32.mrf.mxu1  ;;  %v3735_v27 = vadd.f32 %v3734_v58, %v2965_v18  ;;  %v6871_v58 = vld [vmem:[#allocation11 + $0x3a8] ss:$16 sps:$4 sm:$0xff]  }
 0x3e9   : > { %v3736_v24 = vpop.f32.mrf.mxu0  ;;  %4715 = vmatpush2.bf16.msra.mxu0 %v6820_v23  ;;  %v6868_v23 = vld [vmem:[#allocation11 + $0x3c8] ss:$16 sps:$4 sm:$0xff]  }
 0x3ea   : > { %v3779_v26 = vpop.f32.mrf.mxu1  ;;  %v3737_v28 = vadd.f32 %v3736_v24, %v2969_v19  ;;  %4716 = vmatprep.subr.bf16.mxu0 %v6828_v21  ;;  %v3778_v35 = vadd.f32 %v3777_v20, %v3735_v27  ;;  %v6876_v20 = vld [vmem:[#allocation11 + $0x38c] ss:$16 sps:$4 sm:$0xff]   ;;  %v6874_v21 = vld [vmem:[#allocation11 + $0x388] ss:$16 sps:$4 sm:$0xff]  }
 0x3eb   : > { %v3738_v30 = vpop.f32.mrf.mxu0  ;;  %v6879_v24 = vld [vmem:[#allocation11 + $0x36c] ss:$16 sps:$4 sm:$0xff]  }
 0x3ec   : > { %v3739_v11 = vadd.f32 %v3738_v30, %v2965_v18  ;;  %v3781_v33 = vpop.f32.mrf.mxu1  ;;  %v3780_v13 = vadd.f32 %v3779_v26, %v3737_v28  ;;  %v3796_v41 = vmul.f32 0.2, %v3778_v35  ;;  %vm3788_vm14 = vcmp.gt.f32.partialorder %v3778_v35, 0.0  ;;  %v6870_v18 = vld [vmem:[#allocation11 + $0x3cc] ss:$16 sps:$4 sm:$0xff]  }
 0x3ed   : > { %v3740_v34 = vpop.f32.mrf.mxu0  ;;  %4717 = vmatpush2.bf16.msra.mxu0 %v6826_v29  ;;  %v6877_v26 = vld [vmem:[#allocation11 + $0x368] ss:$16 sps:$4 sm:$0xff]   ;;  %v6882_v27 = vld [vmem:[#allocation11 + $0x34c] ss:$16 sps:$4 sm:$0xff]  }
 0x3ee   : > { %v3782_v36 = vadd.f32 %v3781_v33, %v3739_v11  ;;  %v3741_v37 = vadd.f32 %v3740_v34, %v2969_v19  ;;  %4718 = vmatprep.subr.bf16.mxu0 %v6834_v31  ;;  %v3783_v39 = vpop.f32.mrf.mxu1  ;;  %v3797_v15 = vmul.f32 0.2, %v3780_v13  ;;  %vm3789_vm13 = vcmp.gt.f32.partialorder %v3780_v13, 0.0  ;;  %v6873_v19 = vld [vmem:[#allocation11 + $0x3ac] ss:$16 sps:$4 sm:$0xff]   ;;  %v6899_v34 = vld [vmem:[#allocation14 + $0x50] sm:$0xff]  }
 0x3ef   : > { %v3804_v47 = vsel %vm3788_vm14, %v3778_v35, %v3796_v41  ;;  %v6880_v28 = vld [vmem:[#allocation11 + $0x348] ss:$16 sps:$4 sm:$0xff]   ;;  %v6885_v29 = vld [vmem:[#allocation11 + $0x32c] ss:$16 sps:$4 sm:$0xff]  }
 0x3f0   : > { %v3800_v60 = vmul.f32 0.2, %v3782_v36  ;;  %vm3792_vm12 = vcmp.gt.f32.partialorder %v3782_v36, 0.0  ;;  %v3784_v40 = vadd.f32 %v3783_v39, %v3741_v37  ;;  %v3805_v45 = vsel %vm3789_vm13, %v3780_v13, %v3797_v15  ;;  %v6883_v30 = vld [vmem:[#allocation11 + $0x328] ss:$16 sps:$4 sm:$0xff]   ;;  %v6897_v33 = vld [vmem:[#allocation14 + $0x58] sm:$0xff]  }
 0x3f1   : > { %4719 = vmatpush2.bf16.msra.mxu0 %v6832_v25  ;;  %v6888_v31 = vld [vmem:[#allocation11 + $0x30c] ss:$16 sps:$4 sm:$0xff]   ;;  %v6886_v11 = vld [vmem:[#allocation11 + $0x308] ss:$16 sps:$4 sm:$0xff]  }
 0x3f2   : > { %vm3793_vm15 = vcmp.gt.f32.partialorder %v3784_v40, 0.0  ;;  %v3801_v43 = vmul.f32 0.2, %v3784_v40  ;;  %4720 = vmatprep.subr.bf16.mxu0 %v6840_v38  ;;  %v3808_v22 = vsel %vm3792_vm12, %v3782_v36, %v3800_v60  ;;  %v6898_v13 = vld [vmem:[#allocation14 + $0x18] sm:$0xff]   ;;  %v6900_v35 = vld [vmem:[#allocation14 + $0x10] sm:$0xff]   ;;  %v6901_v36 = vld [vmem:[#allocation14 + $0x48] sm:$0xff]  }
 0x3f3   : > { %v7808_v49 = vpack.c.bf16 %v3808_v22, %v3804_v47  ;;  %v6902_v25 = vld [vmem:[#allocation14 + $0x8] sm:$0xff]   ;;  %v6903_v37 = vld [vmem:[#allocation14 + $0x40] sm:$0xff]   ;;  %v6905_v60 = vld [vmem:[#allocation14 + $0xf8] sm:$0xff]  }
 0x3f4   : > { %v3809_v44 = vsel %vm3793_vm15, %v3784_v40, %v3801_v43  ;;  %v6904_v38 = vld [vmem:[#allocation14] sm:$0xff]   ;;  %v6906_v39 = vld [vmem:[#allocation14 + $0xb8] sm:$0xff]   ;;  %v6907_v15 = vld [vmem:[#allocation14 + $0xf0] sm:$0xff]  }
 0x3f5   : > { %4721 = vmatpush2.bf16.msra.mxu0 %v6838_v42  ;;  %v3813_v48 = vpack.c.bf16 %v3809_v44, %v3805_v45  ;;  %v6908_v40 = vld [vmem:[#allocation14 + $0xb0] sm:$0xff]   ;;  %v6909_v41 = vld [vmem:[#allocation14 + $0xe8] sm:$0xff]   ;;  %v6911_v43 = vld [vmem:[#allocation14 + $0xe0] sm:$0xff]  }
 0x3f6   : > { %5898 = vmatprep.subr.bf16.mxu0 %v6889_v56  ;;  %v6910_v42 = vld [vmem:[#allocation14 + $0xa8] sm:$0xff]   ;;  %v6912_v22 = vld [vmem:[#allocation14 + $0xa0] sm:$0xff]   ;;  %v6913_v45 = vld [vmem:[#allocation14 + $0xd8] sm:$0xff]  }
 0x3f7   : > { %4679 = vmatprep.mubr.bf16.mxu1 %v3813_v48  ;;  %v6914_v44 = vld [vmem:[#allocation14 + $0x98] sm:$0xff]   ;;  %v6915_v47 = vld [vmem:[#allocation14 + $0xd0] sm:$0xff]  }
 0x3f8   : > { %4723 = vmatmul.mubr.bf16.vlgmr.msra.gmra.mxu0 %v7801_v50  ;;  %4680 = vmatmul.mubr.bf16.vlgmr.msra.gmra.mxu1 %v7808_v49  ;;  %v6892_v50 = vld [vmem:[#allocation14 + $0x30] sm:$0xff]  }
 0x3f9   : > { %4734 = vmatpush1.bf16.msra.mxu1 %v6841_v32  ;;  %4765 = vmatprep.mubr.bf16.mxu1 %v3813_v48  ;;  %v6916_v48 = vld [vmem:[#allocation14 + $0x90] sm:$0xff]   ;;  %v6917_v32 = vld [vmem:[#allocation14 + $0xc8] sm:$0xff]  }
 0x3fa   : > { %4735 = vmatprep.subr.bf16.mxu1 %v6846_v51  ;;  %5899 = vmatpush3.bf16.msra.mxu0 %v6890_v57  ;;  %v6919_v51 = vld [vmem:[#allocation14 + $0xc0] sm:$0xff]  }
 0x3fb   : > { %5900 = vmatprep.subr.bf16.mxu0 %v6891_v59 }
 0x3fd   : > { %4736 = vmatpush1.bf16.msra.mxu1 %v6844_v52  ;;  %v6920_v52 = vld [vmem:[#allocation14 + $0x80] sm:$0xff]  }
 0x3fe   : > { %4737 = vmatprep.subr.bf16.mxu1 %v6849_v53  ;;  %5901 = vmatpush3.bf16.msra.mxu0 %v6892_v50 }
 0x3ff   : > { %5902 = vmatprep.subr.bf16.mxu0 %v6893_v0 }
 0x401   : > { %4738 = vmatpush1.bf16.msra.mxu1 %v6847_v54 }
 0x402   : > { %4739 = vmatprep.subr.bf16.mxu1 %v6852_v55  ;;  %5903 = vmatpush3.bf16.msra.mxu0 %v6894_v3  ;;  %v3942_v55 = vld [vmem:[#allocation12] sm:$0xf] }
 0x403   : > { %5904 = vmatprep.subr.bf16.mxu0 %v6895_v4  ;;  %v3951_v56 = vrot.slane %v3942_v55, %v7771_v10  ;;  %v3947_v57 = vrot.slane %v3942_v55, %v7775_v12 }
 0x405   : > { %4740 = vmatpush1.bf16.msra.mxu1 %v6850_v61 }
 0x406   : > { %4741 = vmatprep.subr.bf16.mxu1 %v6855_v63  ;;  %5905 = vmatpush3.bf16.msra.mxu0 %v6896_v7 }
 0x407   : > { %5906 = vmatprep.subr.bf16.mxu0 %v6897_v33 }
 0x409   : > { %4742 = vmatpush1.bf16.msra.mxu1 %v6853_v1 }
 0x40a   : > { %4743 = vmatprep.subr.bf16.mxu1 %v6858_v2  ;;  %5907 = vmatpush3.bf16.msra.mxu0 %v6898_v13 }
 0x40b   : > { %5908 = vmatprep.subr.bf16.mxu0 %v6899_v34 }
 0x40d   : > { %4744 = vmatpush1.bf16.msra.mxu1 %v6856_v5 }
 0x40e   : > { %4745 = vmatprep.subr.bf16.mxu1 %v6861_v6  ;;  %5909 = vmatpush3.bf16.msra.mxu0 %v6900_v35 }
 0x40f   : > { %5910 = vmatprep.subr.bf16.mxu0 %v6901_v36 }
 0x411   : > { %4746 = vmatpush1.bf16.msra.mxu1 %v6859_v8 }
 0x412   : > { %4747 = vmatprep.subr.bf16.mxu1 %v6864_v9  ;;  %5911 = vmatpush3.bf16.msra.mxu0 %v6902_v25 }
 0x413   : > { %5912 = vmatprep.subr.bf16.mxu0 %v6903_v37 }
 0x415   : > { %4748 = vmatpush1.bf16.msra.mxu1 %v6862_v14 }
 0x416   : > { %4749 = vmatprep.subr.bf16.mxu1 %v6867_v16  ;;  %5913 = vmatpush3.bf16.msra.mxu0 %v6904_v38 }
 0x419   : > { %4750 = vmatpush2.bf16.msra.mxu1 %v6865_v46 }
 0x41a   : > { %4751 = vmatprep.subr.bf16.mxu1 %v6870_v18 }
 0x41d   : > { %4752 = vmatpush2.bf16.msra.mxu1 %v6868_v23 }
 0x41e   : > { %4753 = vmatprep.subr.bf16.mxu1 %v6873_v19 }
 0x421   : > { %4754 = vmatpush2.bf16.msra.mxu1 %v6871_v58 }
 0x422   : > { %4755 = vmatprep.subr.bf16.mxu1 %v6876_v20 }
 0x425   : > { %4756 = vmatpush2.bf16.msra.mxu1 %v6874_v21 }
 0x426   : > { %4757 = vmatprep.subr.bf16.mxu1 %v6879_v24 }
 0x429   : > { %4758 = vmatpush2.bf16.msra.mxu1 %v6877_v26  ;;  %v3959_v26 = vrot.slane %v3942_v55, %v7773_v62 }
 0x42a   : > { %4759 = vmatprep.subr.bf16.mxu1 %v6882_v27  ;;  %v3955_v27 = vrot.slane %v3942_v55, %v7777_v17 }
 0x42d   : > { %4760 = vmatpush2.bf16.msra.mxu1 %v6880_v28 }
 0x42e   : > { %4761 = vmatprep.subr.bf16.mxu1 %v6885_v29 }
 0x431   : > { %4762 = vmatpush2.bf16.msra.mxu1 %v6883_v30 }
 0x432   : > { %4763 = vmatprep.subr.bf16.mxu1 %v6888_v31 }
 0x435   : > { %4764 = vmatpush2.bf16.msra.mxu1 %v6886_v11 }
 0x436   : > { %5920 = vmatprep.subr.bf16.mxu1 %v6905_v60 }
 0x438   : > { %4766 = vmatmul.mubr.bf16.vlgmr.msra.gmra.mxu1 %v7808_v49  ;;  %v6918_v49 = vld [vmem:[#allocation14 + $0x88] sm:$0xff]  }
 0x439   : > { %5921 = vmatpush3.bf16.msra.mxu1 %v6906_v39 }
 0x43a   : > { %5922 = vmatprep.subr.bf16.mxu1 %v6907_v15 }
 0x43d   : > { %5923 = vmatpush3.bf16.msra.mxu1 %v6908_v40 }
 0x43e   : > { %5924 = vmatprep.subr.bf16.mxu1 %v6909_v41 }
 0x441   : > { %5925 = vmatpush3.bf16.msra.mxu1 %v6910_v42 }
 0x442   : > { %5926 = vmatprep.subr.bf16.mxu1 %v6911_v43 }
 0x445   : > { %5927 = vmatpush3.bf16.msra.mxu1 %v6912_v22 }
 0x446   : > { %5928 = vmatprep.subr.bf16.mxu1 %v6913_v45 }
 0x449   : > { %5929 = vmatpush3.bf16.msra.mxu1 %v6914_v44 }
 0x44a   : > { %5930 = vmatprep.subr.bf16.mxu1 %v6915_v47 }
 0x44d   : > { %5931 = vmatpush3.bf16.msra.mxu1 %v6916_v48 }
 0x44e   : > { %5932 = vmatprep.subr.bf16.mxu1 %v6917_v32 }
 0x451   : > { %5933 = vmatpush3.bf16.msra.mxu1 %v6918_v49  ;;  %v5859_v49 = vld [vmem:[#allocation15] ss:$0 sm:$0xff] }
 0x452   : > { %5934 = vmatprep.subr.bf16.mxu1 %v6919_v51 }
 0x455   : > { %5935 = vmatpush3.bf16.msra.mxu1 %v6920_v52 }
 0x478   : > { %v4638_v53 = vpop.f32.mrf.mxu0 }
 0x479   : > { %v4639_v50 = vadd.f32 %v4638_v53, %v3947_v57 }
 0x47a   : > { %v4640_v54 = vpop.f32.mrf.mxu0 }
 0x47b   : > { %v4641_v63 = vadd.f32 %v4640_v54, %v3951_v56 }
 0x47c   : > { %v4642_v59 = vpop.f32.mrf.mxu0 }
 0x47d   : > { %v4643_v3 = vadd.f32 %v4642_v59, %v3947_v57 }
 0x47e   : > { %v4644_v0 = vpop.f32.mrf.mxu0 }
 0x47f   : > { %v4645_v6 = vadd.f32 %v4644_v0, %v3951_v56 }
 0x4b8   : > { %v4681_v61 = vpop.f32.mrf.mxu1  ;;  %v4724_v21 = vpop.f32.mrf.mxu0 }
 0x4b9   : > { %v4682_v4 = vadd.f32 %v4681_v61, %v4639_v50  ;;  %v4725_v31 = vadd.f32 %v4724_v21, %v3955_v27 }
 0x4ba   : > { %v4683_v1 = vpop.f32.mrf.mxu1  ;;  %v4726_v24 = vpop.f32.mrf.mxu0 }
 0x4bb   : > { %v4684_v2 = vadd.f32 %v4683_v1, %v4641_v63  ;;  %v4784_v16 = vmul.f32 0.2, %v4682_v4  ;;  %vm4776_vm2 = vcmp.gt.f32.partialorder %v4682_v4, 0.0  ;;  %v4727_v30 = vadd.f32 %v4726_v24, %v3959_v26 }
 0x4bc   : > { %v4685_v5 = vpop.f32.mrf.mxu1  ;;  %v4728_v28 = vpop.f32.mrf.mxu0 }
 0x4bd   : > { %v4686_v7 = vadd.f32 %v4685_v5, %v4643_v3  ;;  %v4785_v9 = vmul.f32 0.2, %v4684_v2  ;;  %vm4777_vm0 = vcmp.gt.f32.partialorder %v4684_v2, 0.0  ;;  %v4792_v19 = vsel %vm4776_vm2, %v4682_v4, %v4784_v16 }
 0x4be   : > { %v4687_v8 = vpop.f32.mrf.mxu1  ;;  %v4730_v11 = vpop.f32.mrf.mxu0  ;;  %v4729_v13 = vadd.f32 %v4728_v28, %v3955_v27 }
 0x4bf   : > { %v4688_v14 = vadd.f32 %v4687_v8, %v4645_v6  ;;  %vm4780_vm1 = vcmp.gt.f32.partialorder %v4686_v7, 0.0  ;;  %v4788_v10 = vmul.f32 0.2, %v4686_v7  ;;  %v4793_v18 = vsel %vm4777_vm0, %v4684_v2, %v4785_v9 }
 0x4c0   : > { %v4731_v25 = vadd.f32 %v4730_v11, %v3959_v26 }
 0x4c1   : > { %vm4781_vm3 = vcmp.gt.f32.partialorder %v4688_v14, 0.0  ;;  %v4789_v12 = vmul.f32 0.2, %v4688_v14  ;;  %v4796_v46 = vsel %vm4780_vm1, %v4686_v7, %v4788_v10 }
 0x4c2   : > { %v4800_v20 = vpack.c.bf16 %v4796_v46, %v4792_v19 }
 0x4c3   : > { %v4797_v23 = vsel %vm4781_vm3, %v4688_v14, %v4789_v12 }
 0x4c4   : > { %v4801_v58 = vpack.c.bf16 %v4797_v23, %v4793_v18 }
 0x4c6   : > { %5099 = vmatprep.mubr.bf16.mxu0 %v4801_v58 }
 0x4c7   : > { %5100 = vmatmul.mubr.bf16.vlgmr.msra.gmra.mxu0 %v4800_v20 }
 0x4f8   : > { %v4767_v29 = vpop.f32.mrf.mxu1 }
 0x4f9   : > { %v4768_v35 = vadd.f32 %v4767_v29, %v4725_v31 }
 0x4fa   : > { %v4769_v33 = vpop.f32.mrf.mxu1 }
 0x4fb   : > { %v4770_v34 = vadd.f32 %v4769_v33, %v4727_v30  ;;  %v4786_v62 = vmul.f32 0.2, %v4768_v35  ;;  %vm4778_vm6 = vcmp.gt.f32.partialorder %v4768_v35, 0.0 }
 0x4fc   : > { %v4771_v36 = vpop.f32.mrf.mxu1 }
 0x4fd   : > { %v4772_v37 = vadd.f32 %v4771_v36, %v4729_v13  ;;  %v4787_v60 = vmul.f32 0.2, %v4770_v34  ;;  %vm4779_vm5 = vcmp.gt.f32.partialorder %v4770_v34, 0.0  ;;  %v4794_v43 = vsel %vm4778_vm6, %v4768_v35, %v4786_v62 }
 0x4fe   : > { %v4773_v38 = vpop.f32.mrf.mxu1 }
 0x4ff   : > { %vm4782_vm4 = vcmp.gt.f32.partialorder %v4772_v37, 0.0  ;;  %v4790_v39 = vmul.f32 0.2, %v4772_v37  ;;  %v4774_v15 = vadd.f32 %v4773_v38, %v4731_v25  ;;  %v4795_v41 = vsel %vm4779_vm5, %v4770_v34, %v4787_v60 }
 0x501   : > { %vm4783_vm7 = vcmp.gt.f32.partialorder %v4774_v15, 0.0  ;;  %v4791_v17 = vmul.f32 0.2, %v4774_v15  ;;  %v4798_v40 = vsel %vm4782_vm4, %v4772_v37, %v4790_v39 }
 0x502   : > { %v4802_v45 = vpack.c.bf16 %v4798_v40, %v4794_v43 }
 0x503   : > { %v4799_v42 = vsel %vm4783_vm7, %v4774_v15, %v4791_v17 }
 0x504   : > { %v4803_v22 = vpack.c.bf16 %v4799_v42, %v4795_v41 }
 0x506   : > { %5140 = vmatprep.mubr.bf16.mxu1 %v4803_v22 }
 0x507   : > { %5141 = vmatmul.mubr.bf16.vlgmr.msra.gmra.mxu1 %v4802_v45 }
 0x587   : > { %v5914_v44 = vpop.f32.mrf.mxu0 }
 0x589   : > { %v5915_v47 = vpop.f32.mrf.mxu0 }
 0x58a   : > { %v5916_v32 = vadd.f32 %v5915_v47, %v5914_v44 }
 0x58b   : > { %v5917_v48 = vpop.f32.mrf.mxu0 }
 0x58c   : > { %v5102_v54 = vadd.f32 %v5916_v32, %v5859_v49 }
 0x58d   : > { %v5918_v51 = vpop.f32.mrf.mxu0 }
 0x58e   : > { %v5919_v55 = vadd.f32 %v5918_v51, %v5917_v48 }
 0x590   : > { %v5105_v63 = vadd.f32 %v5919_v55, %v5859_v49 }
 0x5c7   : > { %v5936_v52 = vpop.f32.mrf.mxu1 }
 0x5c9   : > { %v5937_v53 = vpop.f32.mrf.mxu1 }
 0x5ca   : > { %v5938_v56 = vadd.f32 %v5937_v53, %v5936_v52 }
 0x5cb   : > { %v5939_v57 = vpop.f32.mrf.mxu1 }
 0x5cc   : > { %v5143_v59 = vadd.f32 %v5938_v56, %v5102_v54 }
 0x5cd   : > { %v5940_v61 = vpop.f32.mrf.mxu1 }
 0x5ce   : > { %5149 = vst [vmem:[%s7845_s9] sm:$0xff] %v5143_v59  ;;  %v5941_v50 = vadd.f32 %v5940_v61, %v5939_v57 }
 0x5d0   : > { %v5146_v0 = vadd.f32 %v5941_v50, %v5105_v63 }
 0x5d2   : > { %5150 = vst [vmem:[%s7845_s9 + $0x8] sm:$0xff] %v5146_v0 }
 0x5d3 PF: > { %p23_p2 = scmp.ge.s32.totalorder %s7269_s14, 6   ;;  %s7870_s30 = smov %s7171_s10 }
 0x5d4   : > { %s7871_s10 = smov %s7175_s11  ;;  %s7872_s11 = smov %s7279_s17 }
 0x5d5   : > { %s7873_s12 = smov %s7269_s14  ;;  %25 = sbr.rel (!%p23_p2) target bundleno = 9 (0x9), region = 168 }
 0x5da   :  { %5162 = vsyncpa [#allocation5], 1 }
 0x5db   :  { %5164 = vsyncpa [#allocation5 + $0x1], 1 }
 0x5dc   :  { %5165 = vsyncpa [#allocation7], 1 }
 0x5dd   :  { %5166 = vsyncpa [#allocation10], 1 }
 0x5de   :  { %5167 = vsyncpa [#allocation13], 1 }
 0x5df   :  { %5168 = vsyncpa [#allocation16], 1 }

</bundles_post_ra>
